<compile_context>
chip_gen: v7x
topology: tpu7x:2x2x1
jax: 0.10.0
libtpu: 0.0.40
codegen_flags: <defaults>
</compile_context>

<pallas_src>
import jax
import jax.numpy as jnp
from jax.experimental import pallas as pl
from jax.experimental.pallas import tpu as pltpu

# ---------------- model config (ViT2NetXL) ----------------
IMG_H, IMG_W = 240, 320
PATCH = 40
CHANNELS = 3
NUM_CLASSES = 3
DIM = 192
DEPTH = 6
HEADS = 12
DIM_HEAD = 64                        # vit-pytorch default
INNER = HEADS * DIM_HEAD             # 768
MLP_DIM = 192
NUM_PATCHES = (IMG_H // PATCH) * (IMG_W // PATCH)   # 6 * 8 = 48
PATCH_DIM = CHANNELS * PATCH * PATCH                # 4800
SEQ = NUM_PATCHES + 1                               # 49 valid tokens
SEQ_PAD = 64                                        # padded to a sublane multiple
CLS_ROW = NUM_PATCHES                               # cls token stored at row 48
LN_EPS = 1e-5
BN_EPS = 1e-5
B_TILE_MAX = 8                       # samples merged per transformer block (VMEM cap)


def _pick_batch_tile(batch):
    """Largest divisor of `batch` that (a) caps VMEM at ~8 samples per block and
    (b) keeps >=2 batch tiles when batch >= 2 so the leading "parallel" grid
    axis can shard across v7x's two TensorCores."""
    target = max(1, min(B_TILE_MAX, batch // 2 if batch >= 2 else 1))
    for t in range(target, 0, -1):
        if batch % t == 0:
            return t
    return 1


# ---------------- small helpers ----------------
def _layernorm(x, w, b):
    mu = jnp.mean(x, axis=-1, keepdims=True)
    var = jnp.mean((x - mu) ** 2, axis=-1, keepdims=True)
    return (x - mu) * jax.lax.rsqrt(var + LN_EPS) * w + b


# ---------------- patch embedding + token assembly (BN folded) ----------------
def _embed_kernel(p_ref, w_ref, b_ref, cp_ref, o_ref):
    pb = p_ref.shape[0]
    # (pb, 48, 4800) -> (pb*48, 4800): leading-dim merge, layout preserving.
    p2d = p_ref[...].reshape(pb * NUM_PATCHES, PATCH_DIM)
    emb = jnp.dot(p2d, w_ref[...], preferred_element_type=jnp.float32) + b_ref[...]
    emb = emb.reshape(pb, NUM_PATCHES, DIM) + cp_ref[:NUM_PATCHES, :]   # + pos_emb
    # rows 0..47 = patch tokens, row 48 = cls + pos, rows 49..63 = zero pad
    o_ref[:, :NUM_PATCHES, :] = emb
    o_ref[:, NUM_PATCHES:, :] = jnp.broadcast_to(
        cp_ref[NUM_PATCHES:, :][None], (pb, SEQ_PAD - NUM_PATCHES, DIM))


def embed_tokens(patches, prep, bt):
    B = patches.shape[0]
    return pl.pallas_call(
        _embed_kernel,
        out_shape=jax.ShapeDtypeStruct((B, SEQ_PAD, DIM), jnp.float32),
        grid=(B // bt,),
        in_specs=[
            pl.BlockSpec((bt, NUM_PATCHES, PATCH_DIM), lambda i: (i, 0, 0)),
            pl.BlockSpec((PATCH_DIM, DIM), lambda i: (0, 0)),
            pl.BlockSpec((1, DIM), lambda i: (0, 0)),
            pl.BlockSpec((SEQ_PAD, DIM), lambda i: (0, 0)),
        ],
        out_specs=pl.BlockSpec((bt, SEQ_PAD, DIM), lambda i: (i, 0, 0)),
        compiler_params=pltpu.CompilerParams(dimension_semantics=("parallel",)),
    )(patches, prep["w_patch"], prep["b_patch"], prep["cls_pos"])


# ---------------- fused 6-layer transformer + mlp head ----------------
def _transformer_kernel(x_ref, ln1w_ref, ln1b_ref, wqkv_ref, wout_ref, bout_ref,
                        ln2w_ref, ln2b_ref, wff1_ref, bff1_ref, wff2_ref,
                        bff2_ref, hlnw_ref, hlnb_ref, whead_ref, bhead_ref,
                        o_ref, acc_ref):
    d = pl.program_id(1)
    bt = acc_ref.shape[0]

    @pl.when(d == 0)
    def _():
        acc_ref[...] = x_ref[...]

    x = acc_ref[...].reshape(bt * SEQ_PAD, DIM)            # (M, DIM) f32, M = bt*64

    # ---- PreNorm multi-head attention ----
    xn = _layernorm(x, ln1w_ref[0], ln1b_ref[0]).astype(jnp.bfloat16)
    qkv = jnp.dot(xn, wqkv_ref[0], preferred_element_type=jnp.float32)
    qkv = qkv.astype(jnp.bfloat16)                         # cast BEFORE relayout
    qkv = jnp.transpose(qkv.reshape(bt, SEQ_PAD, 3 * HEADS, DIM_HEAD),
                        (0, 2, 1, 3))                      # (bt, 3H, S, Dh)
    q = qkv[:, :HEADS].reshape(bt * HEADS, SEQ_PAD, DIM_HEAD)   # scale folded in W_q
    k = qkv[:, HEADS:2 * HEADS].reshape(bt * HEADS, SEQ_PAD, DIM_HEAD)
    v = qkv[:, 2 * HEADS:].reshape(bt * HEADS, SEQ_PAD, DIM_HEAD)

    dots = jnp.einsum('bqd,bkd->bqk', q, k,
                      preferred_element_type=jnp.float32)  # (bt*H, S, S) f32
    kmask = jax.lax.broadcasted_iota(jnp.int32, (1, 1, SEQ_PAD), 2) < SEQ
    dots = jnp.where(kmask, dots, -1e30)                   # mask padded keys
    m = jnp.max(dots, axis=-1, keepdims=True)
    e = jnp.exp(dots - m)
    denom = jnp.sum(e, axis=-1, keepdims=True)
    attn = (e * pl.reciprocal(denom, approx=False)).astype(jnp.bfloat16)

    ctx = jnp.einsum('bqk,bkd->bqd', attn, v,
                     preferred_element_type=jnp.float32)   # (bt*H, S, Dh) f32
    ctx = ctx.astype(jnp.bfloat16)                         # cast BEFORE relayout
    ctx = jnp.transpose(ctx.reshape(bt, HEADS, SEQ_PAD, DIM_HEAD),
                        (0, 2, 1, 3)).reshape(bt * SEQ_PAD, INNER)   # '(h d)' order
    attn_out = jnp.dot(ctx, wout_ref[0],
                       preferred_element_type=jnp.float32) + bout_ref[0]
    x = x + attn_out                                       # residual

    # ---- PreNorm FeedForward ----
    xn2 = _layernorm(x, ln2w_ref[0], ln2b_ref[0]).astype(jnp.bfloat16)
    h1 = jnp.dot(xn2, wff1_ref[0], preferred_element_type=jnp.float32) + bff1_ref[0]
    h1 = jax.nn.gelu(h1, approximate=False).astype(jnp.bfloat16)   # nn.GELU() exact
    ff = jnp.dot(h1, wff2_ref[0], preferred_element_type=jnp.float32) + bff2_ref[0]
    x = x + ff                                             # residual
    x3d = x.reshape(bt, SEQ_PAD, DIM)
    acc_ref[...] = x3d                                     # stays VMEM-resident

    # ---- epilogue: pool='cls' + LayerNorm + Linear head (fused) ----
    @pl.when(d == DEPTH - 1)
    def _():
        cls_tok = x3d[:, CLS_ROW, :]                       # (bt, DIM)
        cn = _layernorm(cls_tok, hlnw_ref[...], hlnb_ref[...])
        o_ref[0] = (jnp.dot(cn, whead_ref[...],
                            preferred_element_type=jnp.float32) + bhead_ref[...])


def transformer_head(tokens, prep, bt):
    B = tokens.shape[0]
    nt = B // bt

    def wspec(shape):
        n = len(shape)
        return pl.BlockSpec((1,) + shape, lambda b, d, _n=n: (d,) + (0,) * _n)

    def cspec(shape):
        n = len(shape)
        return pl.BlockSpec(shape, lambda b, d, _n=n: (0,) * _n)

    out = pl.pallas_call(
        _transformer_kernel,
        out_shape=jax.ShapeDtypeStruct((nt, bt, NUM_CLASSES), jnp.float32),
        grid=(nt, DEPTH),
        in_specs=[
            pl.BlockSpec((bt, SEQ_PAD, DIM), lambda b, d: (b, 0, 0)),
            wspec((1, DIM)), wspec((1, DIM)),                 # ln1 w/b
            wspec((DIM, 3 * INNER)),                          # w_qkv (bf16)
            wspec((INNER, DIM)), wspec((1, DIM)),             # w_out / b_out
            wspec((1, DIM)), wspec((1, DIM)),                 # ln2 w/b
            wspec((DIM, MLP_DIM)), wspec((1, MLP_DIM)),       # ff1
            wspec((MLP_DIM, DIM)), wspec((1, DIM)),           # ff2
            cspec((1, DIM)), cspec((1, DIM)),                 # head LN w/b
            cspec((DIM, NUM_CLASSES)), cspec((1, NUM_CLASSES)),  # head linear
        ],
        out_specs=pl.BlockSpec((1, bt, NUM_CLASSES), lambda b, d: (b, 0, 0)),
        scratch_shapes=[pltpu.VMEM((bt, SEQ_PAD, DIM), jnp.float32)],
        compiler_params=pltpu.CompilerParams(
            dimension_semantics=("parallel", "arbitrary")),
    )(tokens, prep["ln1_w"], prep["ln1_b"], prep["w_qkv"], prep["w_out"],
      prep["b_out"], prep["ln2_w"], prep["ln2_b"], prep["w_ff1"],
      prep["b_ff1"], prep["w_ff2"], prep["b_ff2"],
      prep["mlp_ln_w"], prep["mlp_ln_b"], prep["w_head"], prep["b_head"])
    return out.reshape(B, NUM_CLASSES)


# ---------------- glue (patch extraction / parameter prep) ----------------
def to_patches(x):
    # NCHW -> (B, num_patches, C*P*P) with '(c p1 p2)' inner order
    # (the patch-embed weight rows are permuted to match).
    B = x.shape[0]
    x = x.reshape(B, CHANNELS, IMG_H // PATCH, PATCH, IMG_W // PATCH, PATCH)
    x = x.transpose(0, 2, 4, 1, 3, 5)        # b, hp, wp, c, p1, p2
    return x.reshape(B, NUM_PATCHES, PATCH_DIM)


def prepare_params(params):
    """Fold BN + attention scale, permute/stack weights for the kernels."""
    prep = {}

    # --- fold eval-mode BatchNorm2d into the patch embedding (exact) ---
    bn_scale = params["bn_gamma"] / jnp.sqrt(params["bn_var"] + BN_EPS)
    bn_shift = params["bn_beta"] - params["bn_mean"] * bn_scale
    # w_patch rows are in einops '(p1 p2 c)' order; permute to '(c p1 p2)'.
    w_p = params["w_patch"].reshape(PATCH, PATCH, CHANNELS, DIM)
    w_p = jnp.transpose(w_p, (2, 0, 1, 3)).reshape(CHANNELS, PATCH * PATCH, DIM)
    extra_b = jnp.einsum('c,cpd->d', bn_shift, w_p)          # shift_row @ W
    w_fold = (w_p * bn_scale[:, None, None]).reshape(PATCH_DIM, DIM)
    prep["w_patch"] = w_fold.astype(jnp.bfloat16)
    prep["b_patch"] = params["b_patch"] + extra_b[None, :]

    # --- cls token + positional embedding, remapped to the internal token
    #     order [48 patch rows, cls row, 15 zero pad rows] ---
    pos = params["pos_emb"][0]                               # (SEQ, DIM)
    cls_pos = jnp.zeros((SEQ_PAD, DIM), jnp.float32)
    cls_pos = cls_pos.at[:NUM_PATCHES].set(pos[1:SEQ])
    cls_pos = cls_pos.at[CLS_ROW].set(pos[0] + params["cls_token"].reshape(DIM))
    prep["cls_pos"] = cls_pos

    # --- stack per-layer transformer weights along a leading depth axis ---
    def stack(name):
        return jnp.stack([lyr[name] for lyr in params["layers"]], axis=0)

    w_qkv = stack("w_qkv")                                   # (DEPTH, DIM, 3*INNER)
    w_qkv = w_qkv.at[:, :, :INNER].multiply(DIM_HEAD ** -0.5)  # fold attn scale into Q
    prep["w_qkv"] = w_qkv.astype(jnp.bfloat16)
    prep["w_out"] = stack("w_out").astype(jnp.bfloat16)      # (DEPTH, INNER, DIM)
    prep["w_ff1"] = stack("w_ff1").astype(jnp.bfloat16)      # (DEPTH, DIM, MLP_DIM)
    prep["w_ff2"] = stack("w_ff2").astype(jnp.bfloat16)      # (DEPTH, MLP_DIM, DIM)
    for name in ("ln1_w", "ln1_b", "b_out", "ln2_w", "ln2_b", "b_ff1", "b_ff2"):
        prep[name] = stack(name)                             # f32

    prep["mlp_ln_w"] = params["mlp_ln_w"]
    prep["mlp_ln_b"] = params["mlp_ln_b"]
    prep["w_head"] = params["w_head"]
    prep["b_head"] = params["b_head"]
    return prep


def vit2netxl_forward(x, prep):
    B = x.shape[0]
    bt = _pick_batch_tile(B)
    # patch extraction (XLA transpose) + BN-folded patch embedding + token
    # assembly (cls/pos/pad) inside the Pallas kernel
    patches = to_patches(x).astype(jnp.bfloat16)             # (B, 48, 4800)
    tokens = embed_tokens(patches, prep, bt)                 # (B, SEQ_PAD, DIM) f32
    # fused 6-layer transformer + cls-pool + mlp head (single pallas_call)
    return transformer_head(tokens, prep, bt)                # (B, NUM_CLASSES)


def init_params(key):
    keys = iter(jax.random.split(key, 64))

    def nrm(shape, std=0.02):
        return std * jax.random.normal(next(keys), shape, dtype=jnp.float32)

    p = {}
    # BatchNorm2d(3) (eval-mode running stats + affine)
    p["bn_gamma"] = 1.0 + 0.1 * jax.random.normal(next(keys), (CHANNELS,), jnp.float32)
    p["bn_beta"] = 0.1 * jax.random.normal(next(keys), (CHANNELS,), jnp.float32)
    p["bn_mean"] = 0.1 * jax.random.normal(next(keys), (CHANNELS,), jnp.float32)
    p["bn_var"] = 1.0 + 0.1 * jnp.abs(jax.random.normal(next(keys), (CHANNELS,), jnp.float32))
    # patch embedding (rows in einops '(p1 p2 c)' order, like PyTorch)
    p["w_patch"] = nrm((PATCH_DIM, DIM))
    p["b_patch"] = jnp.zeros((1, DIM), jnp.float32)
    # cls token / positional embedding
    p["cls_token"] = nrm((1, 1, DIM))
    p["pos_emb"] = nrm((1, SEQ, DIM))
    # transformer layers
    layers = []
    for _ in range(DEPTH):
        layers.append({
            "ln1_w": jnp.ones((1, DIM), jnp.float32),
            "ln1_b": jnp.zeros((1, DIM), jnp.float32),
            "w_qkv": nrm((DIM, 3 * INNER)),                 # to_qkv has no bias
            "w_out": nrm((INNER, DIM)),
            "b_out": jnp.zeros((1, DIM), jnp.float32),
            "ln2_w": jnp.ones((1, DIM), jnp.float32),
            "ln2_b": jnp.zeros((1, DIM), jnp.float32),
            "w_ff1": nrm((DIM, MLP_DIM)),
            "b_ff1": jnp.zeros((1, MLP_DIM), jnp.float32),
            "w_ff2": nrm((MLP_DIM, DIM)),
            "b_ff2": jnp.zeros((1, DIM), jnp.float32),
        })
    p["layers"] = layers
    # mlp head
    p["mlp_ln_w"] = jnp.ones((1, DIM), jnp.float32)
    p["mlp_ln_b"] = jnp.zeros((1, DIM), jnp.float32)
    p["w_head"] = nrm((DIM, NUM_CLASSES))
    p["b_head"] = jnp.zeros((1, NUM_CLASSES), jnp.float32)
    return p


if __name__ == "__main__":
    key = jax.random.PRNGKey(0)
    pkey, xkey = jax.random.split(key)
    params = init_params(pkey)
    prep = prepare_params(params)
    x = jax.random.normal(xkey, (2, CHANNELS, IMG_H, IMG_W), dtype=jnp.float32)
    out = jax.block_until_ready(vit2netxl_forward(x, prep))
    assert out.shape == (2, NUM_CLASSES), out.shape
    assert bool(jnp.all(jnp.isfinite(out)))
    print("KERNEL_OK")
</pallas_src>

<mosaic_0001>
module attributes {stable_mosaic.version = 11 : i64} {
  func.func @_embed_kernel(%arg0: i32, %arg1: memref<1x48x4800xbf16, #tpu.memory_space<vmem>>, %arg2: memref<4800x192xbf16, #tpu.memory_space<vmem>>, %arg3: memref<1x192xf32, #tpu.memory_space<vmem>>, %arg4: memref<64x192xf32, #tpu.memory_space<vmem>>, %arg5: memref<1x64x192xf32, #tpu.memory_space<vmem>>) attributes {dimension_semantics = [#tpu.dimension_semantics<parallel>], iteration_bounds = array<i64: 2>, scalar_prefetch = 0 : i64, scratch_operands = 0 : i64, tpu.core_type = #tpu.core_type<tc>, window_params = [{transform_indices = @transform_0, window_bounds = array<i64: 1, 48, 4800>}, {pipeline_mode = #tpu.pipeline_mode<synchronous>, transform_indices = @transform_1, window_bounds = array<i64: 4800, 192>}, {pipeline_mode = #tpu.pipeline_mode<synchronous>, transform_indices = @transform_2, window_bounds = array<i64: 1, 192>}, {pipeline_mode = #tpu.pipeline_mode<synchronous>, transform_indices = @transform_3, window_bounds = array<i64: 64, 192>}, {transform_indices = @transform_4, window_bounds = array<i64: 1, 64, 192>}]} {
    %c0 = arith.constant 0 : index
    %c0_0 = arith.constant 0 : index
    %c0_1 = arith.constant 0 : index
    %0 = vector.load %arg1[%c0, %c0_0, %c0_1] : memref<1x48x4800xbf16, #tpu.memory_space<vmem>>, vector<1x48x4800xbf16>
    %1 = vector.shape_cast %0 : vector<1x48x4800xbf16> to vector<48x4800xbf16>
    %c0_2 = arith.constant 0 : index
    %c0_3 = arith.constant 0 : index
    %2 = vector.load %arg2[%c0_2, %c0_3] : memref<4800x192xbf16, #tpu.memory_space<vmem>>, vector<4800x192xbf16>
    %cst = arith.constant dense<0.000000e+00> : vector<48x192xf32>
    %3 = tpu.matmul %1, %2, %cst {dimension_numbers = #tpu.dot_dimension_numbers<[1], [0], [0], [1], [0, 0, 1, 1], [], []>} : vector<48x4800xbf16>, vector<4800x192xbf16>, vector<48x192xf32> -> vector<48x192xf32>
    %c0_4 = arith.constant 0 : index
    %c0_5 = arith.constant 0 : index
    %4 = vector.load %arg3[%c0_4, %c0_5] : memref<1x192xf32, #tpu.memory_space<vmem>>, vector<1x192xf32>
    %5 = vector.broadcast %4 : vector<1x192xf32> to vector<48x192xf32>
    %6 = arith.addf %3, %5 : vector<48x192xf32>
    %7 = vector.shape_cast %6 : vector<48x192xf32> to vector<1x48x192xf32>
    %c0_6 = arith.constant 0 : index
    %c0_7 = arith.constant 0 : index
    %8 = vector.load %arg4[%c0_6, %c0_7] : memref<64x192xf32, #tpu.memory_space<vmem>>, vector<48x192xf32>
    %9 = vector.shape_cast %8 : vector<48x192xf32> to vector<1x48x192xf32>
    %10 = arith.addf %7, %9 : vector<1x48x192xf32>
    %c0_8 = arith.constant 0 : index
    %c0_9 = arith.constant 0 : index
    %c0_10 = arith.constant 0 : index
    %11 = vector.load %arg5[%c0_8, %c0_9, %c0_10] : memref<1x64x192xf32, #tpu.memory_space<vmem>>, vector<1x48x192xf32>
    tpu.vector_store %arg5[%c0_8, %c0_9, %c0_10], %10 {strides = array<i32>} : memref<1x64x192xf32, #tpu.memory_space<vmem>>, vector<1x48x192xf32>,
    %c48 = arith.constant 48 : index
    %c0_11 = arith.constant 0 : index
    %12 = vector.load %arg4[%c48, %c0_11] : memref<64x192xf32, #tpu.memory_space<vmem>>, vector<16x192xf32>
    %13 = vector.shape_cast %12 : vector<16x192xf32> to vector<1x16x192xf32>
    %c0_12 = arith.constant 0 : index
    %c48_13 = arith.constant 48 : index
    %c0_14 = arith.constant 0 : index
    %14 = vector.load %arg5[%c0_12, %c48_13, %c0_14] : memref<1x64x192xf32, #tpu.memory_space<vmem>>, vector<1x16x192xf32>
    tpu.vector_store %arg5[%c0_12, %c48_13, %c0_14], %13 {strides = array<i32>} : memref<1x64x192xf32, #tpu.memory_space<vmem>>, vector<1x16x192xf32>,
    return
  }
  func.func @transform_0(%arg0: i32) -> (i32, i32, i32) {
    %c0_i32 = arith.constant 0 : i32
    %c0_i32_0 = arith.constant 0 : i32
    %c0_i32_1 = arith.constant 0 : i32
    return %arg0, %c0_i32, %c0_i32_0 : i32, i32, i32
  }
  func.func @transform_1(%arg0: i32) -> (i32, i32) {
    %c0_i32 = arith.constant 0 : i32
    %c0_i32_0 = arith.constant 0 : i32
    %c0_i32_1 = arith.constant 0 : i32
    return %c0_i32, %c0_i32_0 : i32, i32
  }
  func.func @transform_2(%arg0: i32) -> (i32, i32) {
    %c0_i32 = arith.constant 0 : i32
    %c0_i32_0 = arith.constant 0 : i32
    %c0_i32_1 = arith.constant 0 : i32
    return %c0_i32, %c0_i32_0 : i32, i32
  }
  func.func @transform_3(%arg0: i32) -> (i32, i32) {
    %c0_i32 = arith.constant 0 : i32
    %c0_i32_0 = arith.constant 0 : i32
    %c0_i32_1 = arith.constant 0 : i32
    return %c0_i32, %c0_i32_0 : i32, i32
  }
  func.func @transform_4(%arg0: i32) -> (i32, i32, i32) {
    %c0_i32 = arith.constant 0 : i32
    %c0_i32_0 = arith.constant 0 : i32
    %c0_i32_1 = arith.constant 0 : i32
    return %arg0, %c0_i32, %c0_i32_0 : i32, i32, i32
  }
}

</mosaic_0001>

<bundles_post_ra>
// kernel: tpu_custom_call.1
= control target key start
LH: loop header
LB: loop body
LE: loop exit
PB: predicated region body
PF: predicated region fallthrough
CT: control target
= control target key end

     0   :  { %9 = vsyncpa [#allocation3], 0  ;;  %s10107_s0 = inlined_call_operand.vmem [shape: bf16[2,48,4800], index: 0, kind: input, shape index: {}]   ;;  %s10108_s1 = inlined_call_operand.vmem [shape: bf16[4800,192], index: 1, kind: input, shape index: {}]   ;;  %s10109_s2 = inlined_call_operand.vmem [shape: f32[1,192], index: 2, kind: input, shape index: {}]   ;;  %s10110_s3 = inlined_call_operand.vmem [shape: f32[64,192], index: 3, kind: input, shape index: {}]   ;;  %s10111_s4 = inlined_call_operand.hbm [shape: f32[2,64,192], index: 4, kind: output, shape index: {}]  }
   0x1   :  { %11 = vsyncpa [#allocation3 + $0x1], 0  ;;  %s8003_s15 = smov 0   ;;  %s8005_s16 = smov 0  }
   0x2   :  { %s8007_s17 = smov 0   ;;  %s8009_s18 = smov 0  }
   0x3 LB: > { %s8024_s19 = sadd.s32 4294967295, %s7973_s18   ;;  %s5817_s20 = sadd.s32 4294967294, %s7973_s18   ;;  %s7973_s18 = sphi %s8009_s18, %s10117_s18   ;;  %s7969_s17 = sphi %s8007_s17, %s10116_s17   ;;  %s7965_s16 = sphi %s8005_s16, %s10115_s16   ;;  %s7961_s15 = sphi %s8003_s15, %s10114_s15  }
   0x4   : > { %s8028_s21 = sadd.s32 1, %s7973_s18   ;;  %s113_s22 = sadd.s32 1, %s7969_s17 }
   0x5   : > { %s110_s23 = ssub.s32 %s7973_s18, %s8028_s21  ;;  %p123_p0 = scmp.ne.s32.totalorder %s7969_s17, %s7965_s16 }
   0x6   : > { %p111_p1 = scmp.eq.s32.totalorder %s110_s23, 0  ;;  %p124_p2 = scmp.eq.s32.totalorder %s8024_s19, 1 }
   0x7   : > { %p129_p3 = scmp.ne.s32.totalorder %s7965_s16, %s7961_s15  ;;  %p130_p4 = scmp.eq.s32.totalorder %s5817_s20, 1 }
   0x8   : > { %s8039_s24 = scalar_select %p111_p1, %s7969_s17, %s113_s22  }
   0x9   : > { %p8041_p5 = por %p124_p2, %p123_p0  ;;  %p8045_p6 = por %p130_p4, %p129_p3 }
   0xa   : > { %p5820_p7 = scmp.ge.s32.totalorder %s7973_s18, 1  ;;  %p165_p8 = scmp.lt.s32.totalorder %s7973_s18, 3 }
   0xc   : > { %p166_p9 = pnand %p5820_p7, %p165_p8 }
   0xd   : > { %v6840_v0 = vld [vmem:[%s10108_s1 + $0x4] ss:$8 sps:$4 sm:$0xff] (!%p166_p9)   ;;  %v6844_v2 = vld [vmem:[%s10108_s1] ss:$8 sps:$4 sm:$0xff] (!%p166_p9)   ;;  %v6846_v4 = vld [vmem:[%s10108_s1 + $0x14] ss:$8 sps:$4 sm:$0xff] (!%p166_p9)  }
   0xe   : > { %169 = sbr.rel (%p166_p9) target bundleno = 880 (0x370), region = 36  ;;  %v6842_v1 = vld [vmem:[%s10108_s1 + $0x904] ss:$8 sps:$4 sm:$0xff] (!%p166_p9)   ;;  %4500 = vmatprep.subr.bf16.mxu1 (!%p166_p9), %v6840_v0  ;;  %v6845_v3 = vld [vmem:[%s10108_s1 + $0x900] ss:$8 sps:$4 sm:$0xff] (!%p166_p9)   ;;  %p191_p10 = scmp.lt.s32.totalorder (!%p166_p9), %s8024_s19, 1 }
   0xf   : > { %5067 = vmatprep.subr.bf16.mxu0 (!%p166_p9), %v6842_v1  ;;  %4501 = vmatpush1.bf16.msra.mxu1 (!%p166_p9), %v6844_v2  ;;  %v6848_v5 = vld [vmem:[%s10108_s1 + $0x914] ss:$8 sps:$4 sm:$0xff] (!%p166_p9)   ;;  %v6850_v6 = vld [vmem:[%s10108_s1 + $0x10] ss:$8 sps:$4 sm:$0xff] (!%p166_p9)   ;;  %v6852_v8 = vld [vmem:[%s10108_s1 + $0x24] ss:$8 sps:$4 sm:$0xff] (!%p166_p9)  }
  0x10   : > { %5068 = vmatpush1.bf16.msra.mxu0 (!%p166_p9), %v6845_v3  ;;  %4502 = vmatprep.subr.bf16.mxu1 (!%p166_p9), %v6846_v4  ;;  %v6851_v7 = vld [vmem:[%s10108_s1 + $0x910] ss:$8 sps:$4 sm:$0xff] (!%p166_p9)   ;;  %v6854_v9 = vld [vmem:[%s10108_s1 + $0x924] ss:$8 sps:$4 sm:$0xff] (!%p166_p9)   ;;  %v6856_v10 = vld [vmem:[%s10108_s1 + $0x20] ss:$8 sps:$4 sm:$0xff] (!%p166_p9)  }
  0x11   : > { %5069 = vmatprep.subr.bf16.mxu0 (!%p166_p9), %v6848_v5  ;;  %v6857_v11 = vld [vmem:[%s10108_s1 + $0x920] ss:$8 sps:$4 sm:$0xff] (!%p166_p9)   ;;  %v6858_v12 = vld [vmem:[%s10108_s1 + $0x34] ss:$8 sps:$4 sm:$0xff] (!%p166_p9)   ;;  %v6862_v14 = vld [vmem:[%s10108_s1 + $0x30] ss:$8 sps:$4 sm:$0xff] (!%p166_p9)  }
  0x12   : > { %v6860_v13 = vld [vmem:[%s10108_s1 + $0x934] ss:$8 sps:$4 sm:$0xff] (!%p166_p9)   ;;  %v6863_v15 = vld [vmem:[%s10108_s1 + $0x930] ss:$8 sps:$4 sm:$0xff] (!%p166_p9)   ;;  %v6864_v16 = vld [vmem:[%s10108_s1 + $0x44] ss:$8 sps:$4 sm:$0xff] (!%p166_p9)  }
  0x13   : > { %4503 = vmatpush1.bf16.msra.mxu1 (!%p166_p9), %v6850_v6  ;;  %v6866_v17 = vld [vmem:[%s10108_s1 + $0x944] ss:$8 sps:$4 sm:$0xff] (!%p166_p9)   ;;  %v6868_v18 = vld [vmem:[%s10108_s1 + $0x40] ss:$8 sps:$4 sm:$0xff] (!%p166_p9)   ;;  %v6870_v20 = vld [vmem:[%s10108_s1 + $0x54] ss:$8 sps:$4 sm:$0xff] (!%p166_p9)  }
  0x14   : > { %5070 = vmatpush1.bf16.msra.mxu0 (!%p166_p9), %v6851_v7  ;;  %4504 = vmatprep.subr.bf16.mxu1 (!%p166_p9), %v6852_v8  ;;  %v6869_v19 = vld [vmem:[%s10108_s1 + $0x940] ss:$8 sps:$4 sm:$0xff] (!%p166_p9)   ;;  %v6872_v21 = vld [vmem:[%s10108_s1 + $0x954] ss:$8 sps:$4 sm:$0xff] (!%p166_p9)   ;;  %v6874_v22 = vld [vmem:[%s10108_s1 + $0x50] ss:$8 sps:$4 sm:$0xff] (!%p166_p9)  }
  0x15   : > { %5071 = vmatprep.subr.bf16.mxu0 %v6854_v9  ;;  %v6875_v23 = vld [vmem:[%s10108_s1 + $0x950] ss:$8 sps:$4 sm:$0xff]   ;;  %v6876_v24 = vld [vmem:[%s10108_s1 + $0x64] ss:$8 sps:$4 sm:$0xff]   ;;  %v6880_v26 = vld [vmem:[%s10108_s1 + $0x60] ss:$8 sps:$4 sm:$0xff]  }
  0x16   : > { %v6878_v25 = vld [vmem:[%s10108_s1 + $0x964] ss:$8 sps:$4 sm:$0xff]   ;;  %v6881_v27 = vld [vmem:[%s10108_s1 + $0x960] ss:$8 sps:$4 sm:$0xff]   ;;  %v6882_v28 = vld [vmem:[%s10108_s1 + $0x74] ss:$8 sps:$4 sm:$0xff]  }
  0x17   : > { %4505 = vmatpush1.bf16.msra.mxu1 %v6856_v10  ;;  %v6884_v29 = vld [vmem:[%s10108_s1 + $0x974] ss:$8 sps:$4 sm:$0xff]   ;;  %v6886_v30 = vld [vmem:[%s10108_s1 + $0x70] ss:$8 sps:$4 sm:$0xff]   ;;  %v6888_v32 = vld [vmem:[%s10108_s1 + $0x84] ss:$8 sps:$4 sm:$0xff]  }
  0x18   : > { %5072 = vmatpush1.bf16.msra.mxu0 %v6857_v11  ;;  %4506 = vmatprep.subr.bf16.mxu1 %v6858_v12  ;;  %v6887_v31 = vld [vmem:[%s10108_s1 + $0x970] ss:$8 sps:$4 sm:$0xff]   ;;  %v6890_v33 = vld [vmem:[%s10108_s1 + $0x984] ss:$8 sps:$4 sm:$0xff]   ;;  %v6892_v34 = vld [vmem:[%s10108_s1 + $0x80] ss:$8 sps:$4 sm:$0xff]  }
  0x19   : > { %5073 = vmatprep.subr.bf16.mxu0 %v6860_v13  ;;  %v6893_v35 = vld [vmem:[%s10108_s1 + $0x980] ss:$8 sps:$4 sm:$0xff]   ;;  %v6894_v36 = vld [vmem:[%s10108_s1 + $0x94] ss:$8 sps:$4 sm:$0xff]   ;;  %s192_s7 = scalar_select %p191_p10, %s8024_s19, 1  ;;  %vm4490_vm0 = vcmask 523264  }
  0x1a   : > { %v6896_v37 = vld [vmem:[%s10108_s1 + $0x994] ss:$8 sps:$4 sm:$0xff]   ;;  %v6898_v38 = vld [vmem:[%s10108_s1 + $0x90] ss:$8 sps:$4 sm:$0xff]   ;;  %v6900_v40 = vld [vmem:[%s10108_s1 + $0xa4] ss:$8 sps:$4 sm:$0xff]  }
  0x1b   : > { %4507 = vmatpush1.bf16.msra.mxu1 %v6862_v14  ;;  %v6899_v39 = vld [vmem:[%s10108_s1 + $0x990] ss:$8 sps:$4 sm:$0xff]   ;;  %s6798_s22 = smul.u32 912, %s192_s7  ;;  %v6902_v41 = vld [vmem:[%s10108_s1 + $0x9a4] ss:$8 sps:$4 sm:$0xff]   ;;  %s188_s11 = sand.u32 1, %s7965_s16  }
  0x1c   : > { %5074 = vmatpush1.bf16.msra.mxu0 %v6863_v15  ;;  %4508 = vmatprep.subr.bf16.mxu1 %v6864_v16  ;;  %v6904_v42 = vld [vmem:[%s10108_s1 + $0xa0] ss:$8 sps:$4 sm:$0xff]   ;;  %v6906_v44 = vld [vmem:[%s10108_s1 + $0xb4] ss:$8 sps:$4 sm:$0xff]   ;;  %v6910_v46 = vld [vmem:[%s10108_s1 + $0xb0] ss:$8 sps:$4 sm:$0xff]  }
  0x1d   : > { %5075 = vmatprep.subr.bf16.mxu0 %v6866_v17  ;;  %v6905_v43 = vld [vmem:[%s10108_s1 + $0x9a0] ss:$8 sps:$4 sm:$0xff]   ;;  %s8191_s10 = scalar_lea.vmem %s10107_s0, %s6798_s22  ;;  %v6908_v45 = vld [vmem:[%s10108_s1 + $0x9b4] ss:$8 sps:$4 sm:$0xff]   ;;  %v6911_v47 = vld [vmem:[%s10108_s1 + $0x9b0] ss:$8 sps:$4 sm:$0xff]  }
  0x1e   : > { %v6938_v48 = vld [vmem:[%s8191_s10 + $0x4] ss:$152 sps:$4 sm:$0xff]   ;;  %v6916_v52 = vld [vmem:[%s10108_s1 + $0xc0] ss:$8 sps:$4 sm:$0xff]   ;;  %v6922_v56 = vld [vmem:[%s10108_s1 + $0xd0] ss:$8 sps:$4 sm:$0xff]  }
  0x1f   : > { %4509 = vmatpush1.bf16.msra.mxu1 %v6868_v18  ;;  %v6912_v49 = vld [vmem:[%s10108_s1 + $0xc4] ss:$8 sps:$4 sm:$0xff]   ;;  %4532 = vmatprep.mubr.bf16.mxu1 %v6938_v48  ;;  %v6917_v53 = vld [vmem:[%s10108_s1 + $0x9c0] ss:$8 sps:$4 sm:$0xff]   ;;  %v6918_v54 = vld [vmem:[%s10108_s1 + $0xd4] ss:$8 sps:$4 sm:$0xff]  }
  0x20   : > { %5076 = vmatpush1.bf16.msra.mxu0 %v6869_v19  ;;  %4510 = vmatprep.subr.bf16.mxu1 %v6870_v20  ;;  %v6914_v50 = vld [vmem:[%s10108_s1 + $0x9c4] ss:$8 sps:$4 sm:$0xff]   ;;  %v6920_v55 = vld [vmem:[%s10108_s1 + $0x9d4] ss:$8 sps:$4 sm:$0xff]   ;;  %v6923_v57 = vld [vmem:[%s10108_s1 + $0x9d0] ss:$8 sps:$4 sm:$0xff]  }
  0x21   : > { %5077 = vmatprep.subr.bf16.mxu0 %v6872_v21  ;;  %v6944_v51 = vld [vmem:[%s8191_s10 + $0x4c] ss:$152 sps:$4 sm:$0xff]   ;;  %v6928_v60 = vld [vmem:[%s10108_s1 + $0xe0] ss:$8 sps:$4 sm:$0xff]   ;;  %v6930_v62 = vld [vmem:[%s10108_s1 + $0xf4] ss:$8 sps:$4 sm:$0xff]  }
  0x22   : > { %5099 = vmatprep.mubr.bf16.mxu0 %v6944_v51  ;;  %v6924_v58 = vld [vmem:[%s10108_s1 + $0xe4] ss:$8 sps:$4 sm:$0xff]   ;;  %v6929_v61 = vld [vmem:[%s10108_s1 + $0x9e0] ss:$8 sps:$4 sm:$0xff]   ;;  %v6932_v63 = vld [vmem:[%s10108_s1 + $0x9f4] ss:$8 sps:$4 sm:$0xff]  }
  0x23   : > { %4511 = vmatpush1.bf16.msra.mxu1 %v6874_v22  ;;  %v6926_v59 = vld [vmem:[%s10108_s1 + $0x9e4] ss:$8 sps:$4 sm:$0xff]   ;;  %v6934_v0 = vld [vmem:[%s10108_s1 + $0xf0] ss:$8 sps:$4 sm:$0xff]   ;;  %v6939_v5 = vld [vmem:[%s10108_s1 + $0x100] ss:$8 sps:$4 sm:$0xff]  }
  0x24   : > { %5078 = vmatpush1.bf16.msra.mxu0 %v6875_v23  ;;  %4512 = vmatprep.subr.bf16.mxu1 %v6876_v24  ;;  %v6935_v1 = vld [vmem:[%s10108_s1 + $0x9f0] ss:$8 sps:$4 sm:$0xff]   ;;  %v6941_v2 = vld [vmem:[%s10108_s1 + $0x104] ss:$8 sps:$4 sm:$0xff]   ;;  %v6942_v6 = vld [vmem:[%s8191_s10 + $0x48] ss:$152 sps:$4 sm:$0xff]  }
  0x25   : > { %5079 = vmatprep.subr.bf16.mxu0 %v6878_v25  ;;  %v6947_v3 = vld [vmem:[%s10108_s1 + $0xa04] ss:$8 sps:$4 sm:$0xff]   ;;  %v6936_v4 = vld [vmem:[%s8191_s10] ss:$152 sps:$4 sm:$0xff]   ;;  %v6950_v8 = vld [vmem:[%s10108_s1 + $0x114] ss:$8 sps:$4 sm:$0xff]  }
  0x26   : > { %v6945_v7 = vld [vmem:[%s10108_s1 + $0xa00] ss:$8 sps:$4 sm:$0xff]   ;;  %v6953_v9 = vld [vmem:[%s10108_s1 + $0xa14] ss:$8 sps:$4 sm:$0xff]   ;;  %v6948_v10 = vld [vmem:[%s10108_s1 + $0x110] ss:$8 sps:$4 sm:$0xff]  }
  0x27   : > { %4513 = vmatpush1.bf16.msra.mxu1 %v6880_v26  ;;  %v6951_v11 = vld [vmem:[%s10108_s1 + $0xa10] ss:$8 sps:$4 sm:$0xff]   ;;  %v6956_v12 = vld [vmem:[%s10108_s1 + $0x124] ss:$8 sps:$4 sm:$0xff]   ;;  %v6954_v14 = vld [vmem:[%s10108_s1 + $0x120] ss:$8 sps:$4 sm:$0xff]  }
  0x28   : > { %5080 = vmatpush1.bf16.msra.mxu0 %v6881_v27  ;;  %4514 = vmatprep.subr.bf16.mxu1 %v6882_v28  ;;  %v6959_v13 = vld [vmem:[%s10108_s1 + $0xa24] ss:$8 sps:$4 sm:$0xff]   ;;  %v6957_v15 = vld [vmem:[%s10108_s1 + $0xa20] ss:$8 sps:$4 sm:$0xff]   ;;  %v6962_v16 = vld [vmem:[%s10108_s1 + $0x134] ss:$8 sps:$4 sm:$0xff]  }
  0x29   : > { %5081 = vmatprep.subr.bf16.mxu0 %v6884_v29  ;;  %v6965_v17 = vld [vmem:[%s10108_s1 + $0xa34] ss:$8 sps:$4 sm:$0xff]   ;;  %v6960_v18 = vld [vmem:[%s10108_s1 + $0x130] ss:$8 sps:$4 sm:$0xff]   ;;  %v6968_v20 = vld [vmem:[%s10108_s1 + $0x144] ss:$8 sps:$4 sm:$0xff]  }
  0x2a   : > { %v6963_v19 = vld [vmem:[%s10108_s1 + $0xa30] ss:$8 sps:$4 sm:$0xff]   ;;  %v6971_v21 = vld [vmem:[%s10108_s1 + $0xa44] ss:$8 sps:$4 sm:$0xff]   ;;  %v6966_v23 = vld [vmem:[%s10108_s1 + $0x140] ss:$8 sps:$4 sm:$0xff]  }
  0x2b   : > { %4515 = vmatpush1.bf16.msra.mxu1 %v6886_v30  ;;  %v7014_v22 = vld [vmem:[%s8191_s10 + $0x134] ss:$152 sps:$4 sm:$0xff]   ;;  %v6969_v24 = vld [vmem:[%s10108_s1 + $0xa40] ss:$8 sps:$4 sm:$0xff]   ;;  %v7025_v29 = vld [vmem:[%s8191_s10 + $0x178] ss:$152 sps:$4 sm:$0xff]  }
  0x2c   : > { %5082 = vmatpush1.bf16.msra.mxu0 %v6887_v31  ;;  %4516 = vmatprep.subr.bf16.mxu1 %v6888_v32  ;;  %v7019_v25 = vld [vmem:[%s8191_s10 + $0x17c] ss:$152 sps:$4 sm:$0xff]   ;;  %v7024_v28 = vld [vmem:[%s8191_s10 + $0x130] ss:$152 sps:$4 sm:$0xff]   ;;  %v6980_v32 = vld [vmem:[%s10108_s1 + $0x164] ss:$8 sps:$4 sm:$0xff]  }
  0x2d   : > { %5083 = vmatprep.subr.bf16.mxu0 %v6890_v33  ;;  %v6974_v26 = vld [vmem:[%s10108_s1 + $0x154] ss:$8 sps:$4 sm:$0xff]   ;;  %v6972_v30 = vld [vmem:[%s10108_s1 + $0x150] ss:$8 sps:$4 sm:$0xff]   ;;  %v6983_v33 = vld [vmem:[%s10108_s1 + $0xa64] ss:$8 sps:$4 sm:$0xff]  }
  0x2e   : > { %v6977_v27 = vld [vmem:[%s10108_s1 + $0xa54] ss:$8 sps:$4 sm:$0xff]   ;;  %v6975_v31 = vld [vmem:[%s10108_s1 + $0xa50] ss:$8 sps:$4 sm:$0xff]   ;;  %v6993_v48 = vld [vmem:[%s10108_s1 + $0xa80] ss:$8 sps:$4 sm:$0xff]  }
  0x2f   : > { %4517 = vmatpush1.bf16.msra.mxu1 %v6892_v34  ;;  %v7032_v34 = vld [vmem:[%s8191_s10 + $0x264] ss:$152 sps:$4 sm:$0xff]   ;;  %v7058_v51 = vld [vmem:[%s8191_s10 + $0x54] ss:$152 sps:$4 sm:$0xff]   ;;  %s5821_s14 = sshll.u32 %s188_s11, 7  ;;  %s6545_s22 = sshll.u32 %s8024_s19, 11 }
  0x30   : > { %5084 = vmatpush1.bf16.msra.mxu0 %v6893_v35  ;;  %4518 = vmatprep.subr.bf16.mxu1 %v6894_v36  ;;  %v6978_v35 = vld [vmem:[%s10108_s1 + $0x160] ss:$8 sps:$4 sm:$0xff]   ;;  %s9659_s28 = scalar_lea.vmem [#allocation2], %s5821_s14  ;;  %s10055_s8 = scalar_lea.hbm %s10111_s4, %s6545_s22 }
  0x31   : > { %5085 = vmatprep.subr.bf16.mxu0 %v6896_v37  ;;  %v6981_v36 = vld [vmem:[%s10108_s1 + $0xa60] ss:$8 sps:$4 sm:$0xff]   ;;  %v7037_v37 = vld [vmem:[%s8191_s10 + $0x2ac] ss:$152 sps:$4 sm:$0xff]   ;;  %s5755_s27 = sshll.u32 %s9659_s28, 4  ;;  %s10066_s19 = scalar_lea.sflag [#allocation3], %s188_s11  ;;  %s10057_s27 = int_to_ptr.vmem [resolvable:$true] %s5755_s27 }
  0x32   : > { %s7975_s7 = smov [#allocation2]  }
  0x33   : > { %4519 = vmatpush1.bf16.msra.mxu1 %v6898_v38  ;;  %v6986_v38 = vld [vmem:[%s10108_s1 + $0x174] ss:$8 sps:$4 sm:$0xff]   ;;  %s7915_s9 = sshll.u32 %s7975_s7, 4  ;;  %s7916_s9 = int_to_ptr.vmem [resolvable:$false] %s7915_s9 }
  0x34   : > { %5086 = vmatpush1.bf16.msra.mxu0 %v6899_v39  ;;  %4520 = vmatprep.subr.bf16.mxu1 %v6900_v40  ;;  %v6989_v39 = vld [vmem:[%s10108_s1 + $0xa74] ss:$8 sps:$4 sm:$0xff]   ;;  %v7042_v40 = vld [vmem:[%s8191_s10 + $0x260] ss:$152 sps:$4 sm:$0xff]   ;;  %s7917_s12 = scalar_lea.vmem %s7916_s9, 4096  ;;  %p7918_p0 = scmp.lt.s32.totalorder %s10057_s27, %s7916_s9 }
  0x35   : > { %5087 = vmatprep.subr.bf16.mxu0 %v6902_v41  ;;  %v7043_v41 = vld [vmem:[%s8191_s10 + $0x2a8] ss:$152 sps:$4 sm:$0xff]  }
  0x37   : > { %4521 = vmatpush1.bf16.msra.mxu1 %v6904_v42  ;;  %v6984_v42 = vld [vmem:[%s10108_s1 + $0x170] ss:$8 sps:$4 sm:$0xff]  }
  0x38   : > { %5088 = vmatpush1.bf16.msra.mxu0 %v6905_v43  ;;  %4522 = vmatprep.subr.bf16.mxu1 %v6906_v44  ;;  %v6987_v43 = vld [vmem:[%s10108_s1 + $0xa70] ss:$8 sps:$4 sm:$0xff]   ;;  %v6992_v44 = vld [vmem:[%s10108_s1 + $0x184] ss:$8 sps:$4 sm:$0xff]  }
  0x39   : > { %5089 = vmatprep.subr.bf16.mxu0 %v6908_v45  ;;  %v6995_v45 = vld [vmem:[%s10108_s1 + $0xa84] ss:$8 sps:$4 sm:$0xff]  }
  0x3b   : > { %4523 = vmatpush1.bf16.msra.mxu1 %v6910_v46  ;;  %v6990_v46 = vld [vmem:[%s10108_s1 + $0x180] ss:$8 sps:$4 sm:$0xff]  }
  0x3c   : > { %5090 = vmatpush1.bf16.msra.mxu0 %v6911_v47  ;;  %4524 = vmatprep.subr.bf16.mxu1 %v6912_v49  ;;  %v7052_v47 = vld [vmem:[%s8191_s10 + $0xc] ss:$152 sps:$4 sm:$0xff]   ;;  %v6998_v49 = vld [vmem:[%s10108_s1 + $0x194] ss:$8 sps:$4 sm:$0xff]  }
  0x3d   : > { %5091 = vmatprep.subr.bf16.mxu0 %v6914_v50  ;;  %v7001_v50 = vld [vmem:[%s10108_s1 + $0xa94] ss:$8 sps:$4 sm:$0xff]  }
  0x3f   : > { %4525 = vmatpush1.bf16.msra.mxu1 %v6916_v52  ;;  %v6996_v52 = vld [vmem:[%s10108_s1 + $0x190] ss:$8 sps:$4 sm:$0xff]  }
  0x40   : > { %5092 = vmatpush1.bf16.msra.mxu0 %v6917_v53  ;;  %4526 = vmatprep.subr.bf16.mxu1 %v6918_v54  ;;  %v6999_v53 = vld [vmem:[%s10108_s1 + $0xa90] ss:$8 sps:$4 sm:$0xff]   ;;  %v7004_v54 = vld [vmem:[%s10108_s1 + $0x1a4] ss:$8 sps:$4 sm:$0xff]  }
  0x41   : > { %5093 = vmatprep.subr.bf16.mxu0 %v6920_v55  ;;  %v7007_v55 = vld [vmem:[%s10108_s1 + $0xaa4] ss:$8 sps:$4 sm:$0xff]  }
  0x43   : > { %4527 = vmatpush1.bf16.msra.mxu1 %v6922_v56  ;;  %v7002_v56 = vld [vmem:[%s10108_s1 + $0x1a0] ss:$8 sps:$4 sm:$0xff]  }
  0x44   : > { %5094 = vmatpush1.bf16.msra.mxu0 %v6923_v57  ;;  %4528 = vmatprep.subr.bf16.mxu1 %v6924_v58  ;;  %v7005_v57 = vld [vmem:[%s10108_s1 + $0xaa0] ss:$8 sps:$4 sm:$0xff]   ;;  %v7010_v58 = vld [vmem:[%s10108_s1 + $0x1b4] ss:$8 sps:$4 sm:$0xff]  }
  0x45   : > { %5095 = vmatprep.subr.bf16.mxu0 %v6926_v59  ;;  %v7013_v59 = vld [vmem:[%s10108_s1 + $0xab4] ss:$8 sps:$4 sm:$0xff]  }
  0x47   : > { %4529 = vmatpush1.bf16.msra.mxu1 %v6928_v60  ;;  %v7008_v60 = vld [vmem:[%s10108_s1 + $0x1b0] ss:$8 sps:$4 sm:$0xff]  }
  0x48   : > { %5096 = vmatpush1.bf16.msra.mxu0 %v6929_v61  ;;  %4530 = vmatprep.subr.bf16.mxu1 %v6930_v62  ;;  %v7011_v61 = vld [vmem:[%s10108_s1 + $0xab0] ss:$8 sps:$4 sm:$0xff]   ;;  %v7018_v62 = vld [vmem:[%s10108_s1 + $0x1c4] ss:$8 sps:$4 sm:$0xff]  }
  0x49   : > { %5097 = vmatprep.subr.bf16.mxu0 %v6932_v63  ;;  %v7023_v63 = vld [vmem:[%s10108_s1 + $0xac4] ss:$8 sps:$4 sm:$0xff]  }
  0x4b   : > { %4531 = vmatpush1.bf16.msra.mxu1 %v6934_v0  ;;  %v7016_v0 = vld [vmem:[%s10108_s1 + $0x1c0] ss:$8 sps:$4 sm:$0xff]  }
  0x4c   : > { %5098 = vmatpush1.bf16.msra.mxu0 %v6935_v1  ;;  %4563 = vmatprep.subr.bf16.mxu1 %v6941_v2  ;;  %v7021_v1 = vld [vmem:[%s10108_s1 + $0xac0] ss:$8 sps:$4 sm:$0xff]   ;;  %v7028_v2 = vld [vmem:[%s10108_s1 + $0x1d4] ss:$8 sps:$4 sm:$0xff]  }
  0x4d   : > { %5130 = vmatprep.subr.bf16.mxu0 %v6947_v3  ;;  %v7031_v3 = vld [vmem:[%s10108_s1 + $0xad4] ss:$8 sps:$4 sm:$0xff]  }
  0x4e   : > { %4533 = vmatmul.mubr.bf16.vlgmr.msra.gmra.mrb[0].mxu1 %v6936_v4  ;;  %v7026_v4 = vld [vmem:[%s10108_s1 + $0x1d0] ss:$8 sps:$4 sm:$0xff]  }
  0x4f   : > { %5100 = vmatmul.mubr.bf16.vlgmr.msra.gmra.mrb[0].mxu0 %v6942_v6  ;;  %4564 = vmatpush1.bf16.msra.mxu1 %v6939_v5  ;;  %v7029_v5 = vld [vmem:[%s10108_s1 + $0xad0] ss:$8 sps:$4 sm:$0xff]   ;;  %v7036_v6 = vld [vmem:[%s10108_s1 + $0x1e4] ss:$8 sps:$4 sm:$0xff]  }
  0x50   : > { %5131 = vmatpush1.bf16.msra.mxu0 %v6945_v7  ;;  %4565 = vmatprep.subr.bf16.mxu1 %v6950_v8  ;;  %v7041_v7 = vld [vmem:[%s10108_s1 + $0xae4] ss:$8 sps:$4 sm:$0xff]   ;;  %v7034_v8 = vld [vmem:[%s10108_s1 + $0x1e0] ss:$8 sps:$4 sm:$0xff]  }
  0x51   : > { %5132 = vmatprep.subr.bf16.mxu0 %v6953_v9  ;;  %4542 = vmatprep.mubr.bf16.mxu1 %v7014_v22  ;;  %v7039_v9 = vld [vmem:[%s10108_s1 + $0xae0] ss:$8 sps:$4 sm:$0xff]   ;;  %v7128_v22 = vld [vmem:[%s8191_s10 + $0x13c] ss:$152 sps:$4 sm:$0xff]  }
  0x52   : > { %5109 = vmatprep.mubr.bf16.mxu0 %v7019_v25  ;;  %v7065_v25 = vld [vmem:[%s10108_s1 + $0xb10] ss:$8 sps:$4 sm:$0xff]  }
  0x53   : > { %4566 = vmatpush1.bf16.msra.mxu1 %v6948_v10  ;;  %v7046_v10 = vld [vmem:[%s10108_s1 + $0x1f4] ss:$8 sps:$4 sm:$0xff]  }
  0x54   : > { %5133 = vmatpush1.bf16.msra.mxu0 %v6951_v11  ;;  %4567 = vmatprep.subr.bf16.mxu1 %v6956_v12  ;;  %v7049_v11 = vld [vmem:[%s10108_s1 + $0xaf4] ss:$8 sps:$4 sm:$0xff]   ;;  %v7044_v12 = vld [vmem:[%s10108_s1 + $0x1f0] ss:$8 sps:$4 sm:$0xff]  }
  0x55   : > { %5134 = vmatprep.subr.bf16.mxu0 %v6959_v13  ;;  %v7047_v13 = vld [vmem:[%s10108_s1 + $0xaf0] ss:$8 sps:$4 sm:$0xff]  }
  0x56   : > { %4543 = vmatmul.mubr.bf16.gmra.mrb[4].mxu1 %v7024_v28  ;;  %v7068_v28 = vld [vmem:[%s10108_s1 + $0x220] ss:$8 sps:$4 sm:$0xff]  }
  0x57   : > { %4568 = vmatpush1.bf16.msra.mxu1 %v6954_v14  ;;  %5110 = vmatmul.mubr.bf16.gmra.mrb[4].mxu0 %v7025_v29  ;;  %v7055_v14 = vld [vmem:[%s10108_s1 + $0x204] ss:$8 sps:$4 sm:$0xff]   ;;  %v7071_v29 = vld [vmem:[%s10108_s1 + $0xb20] ss:$8 sps:$4 sm:$0xff]  }
  0x58   : > { %5135 = vmatpush1.bf16.msra.mxu0 %v6957_v15  ;;  %4569 = vmatprep.subr.bf16.mxu1 %v6962_v16  ;;  %v7061_v15 = vld [vmem:[%s10108_s1 + $0xb04] ss:$8 sps:$4 sm:$0xff]   ;;  %v7050_v16 = vld [vmem:[%s8191_s10 + $0x8] ss:$152 sps:$4 sm:$0xff]  }
  0x59   : > { %5136 = vmatprep.subr.bf16.mxu0 %v6965_v17  ;;  %4552 = vmatprep.mubr.bf16.mxu1 %v7032_v34  ;;  %v7053_v17 = vld [vmem:[%s10108_s1 + $0x200] ss:$8 sps:$4 sm:$0xff]   ;;  %v7146_v34 = vld [vmem:[%s8191_s10 + $0x26c] ss:$152 sps:$4 sm:$0xff]  }
  0x5a   : > { %5119 = vmatprep.mubr.bf16.mxu0 %v7037_v37  ;;  %v7077_v37 = vld [vmem:[%s10108_s1 + $0xb30] ss:$8 sps:$4 sm:$0xff]  }
  0x5b   : > { %4570 = vmatpush1.bf16.msra.mxu1 %v6960_v18  ;;  %v7056_v18 = vld [vmem:[%s8191_s10 + $0x50] ss:$152 sps:$4 sm:$0xff]  }
  0x5c   : > { %5137 = vmatpush1.bf16.msra.mxu0 %v6963_v19  ;;  %4571 = vmatprep.subr.bf16.mxu1 %v6968_v20  ;;  %v7059_v19 = vld [vmem:[%s10108_s1 + $0xb00] ss:$8 sps:$4 sm:$0xff]   ;;  %v7064_v20 = vld [vmem:[%s10108_s1 + $0x214] ss:$8 sps:$4 sm:$0xff]  }
  0x5d   : > { %5138 = vmatprep.subr.bf16.mxu0 %v6971_v21  ;;  %v7067_v21 = vld [vmem:[%s10108_s1 + $0xb14] ss:$8 sps:$4 sm:$0xff]  }
  0x5e   : > { %4553 = vmatmul.mubr.bf16.gmra.mrb[8].mxu1 %v7042_v40  ;;  %v7080_v40 = vld [vmem:[%s10108_s1 + $0x240] ss:$8 sps:$4 sm:$0xff]  }
  0x5f   : > { %4572 = vmatpush1.bf16.msra.mxu1 %v6966_v23  ;;  %5120 = vmatmul.mubr.bf16.gmra.mrb[8].mxu0 %v7043_v41  ;;  %v7133_v23 = vld [vmem:[%s8191_s10 + $0x184] ss:$152 sps:$4 sm:$0xff]   ;;  %v7083_v41 = vld [vmem:[%s10108_s1 + $0xb40] ss:$8 sps:$4 sm:$0xff]  }
  0x60   : > { %5139 = vmatpush1.bf16.msra.mxu0 %v6969_v24  ;;  %4573 = vmatprep.subr.bf16.mxu1 %v6974_v26  ;;  %v7062_v24 = vld [vmem:[%s10108_s1 + $0x210] ss:$8 sps:$4 sm:$0xff]   ;;  %v7070_v26 = vld [vmem:[%s10108_s1 + $0x224] ss:$8 sps:$4 sm:$0xff]  }
  0x61   : > { %5140 = vmatprep.subr.bf16.mxu0 %v6977_v27  ;;  %4595 = vmatprep.mubr.bf16.mxu1 %v7052_v47  ;;  %v7073_v27 = vld [vmem:[%s10108_s1 + $0xb24] ss:$8 sps:$4 sm:$0xff]  }
  0x62   : > { %5162 = vmatprep.mubr.bf16.mxu0 %v7058_v51  ;;  %v7166_v47 = vld [vmem:[%s8191_s10 + $0x14] ss:$152 sps:$4 sm:$0xff]  }
  0x63   : > { %4574 = vmatpush1.bf16.msra.mxu1 %v6972_v30  ;;  %v7138_v30 = vld [vmem:[%s8191_s10 + $0x138] ss:$152 sps:$4 sm:$0xff]   ;;  %v7097_v51 = vld [vmem:[%s10108_s1 + $0xb64] ss:$8 sps:$4 sm:$0xff]  }
  0x64   : > { %5141 = vmatpush1.bf16.msra.mxu0 %v6975_v31  ;;  %4575 = vmatprep.subr.bf16.mxu1 %v6980_v32  ;;  %v7139_v31 = vld [vmem:[%s8191_s10 + $0x180] ss:$152 sps:$4 sm:$0xff]   ;;  %v7076_v32 = vld [vmem:[%s10108_s1 + $0x234] ss:$8 sps:$4 sm:$0xff]  }
  0x65   : > { %5142 = vmatprep.subr.bf16.mxu0 %v6983_v33  ;;  %v7079_v33 = vld [vmem:[%s10108_s1 + $0xb34] ss:$8 sps:$4 sm:$0xff]  }
  0x67   : > { %4576 = vmatpush1.bf16.msra.mxu1 %v6978_v35  ;;  %v7151_v35 = vld [vmem:[%s8191_s10 + $0x2b4] ss:$152 sps:$4 sm:$0xff]  }
  0x68   : > { %5143 = vmatpush1.bf16.msra.mxu0 %v6981_v36  ;;  %4577 = vmatprep.subr.bf16.mxu1 %v6986_v38  ;;  %v7074_v36 = vld [vmem:[%s10108_s1 + $0x230] ss:$8 sps:$4 sm:$0xff]   ;;  %v7082_v38 = vld [vmem:[%s10108_s1 + $0x244] ss:$8 sps:$4 sm:$0xff]  }
  0x69   : > { %5144 = vmatprep.subr.bf16.mxu0 %v6989_v39  ;;  %v7085_v39 = vld [vmem:[%s10108_s1 + $0xb44] ss:$8 sps:$4 sm:$0xff]  }
  0x6b   : > { %4578 = vmatpush1.bf16.msra.mxu1 %v6984_v42  ;;  %v7156_v42 = vld [vmem:[%s8191_s10 + $0x268] ss:$152 sps:$4 sm:$0xff]  }
  0x6c   : > { %5145 = vmatpush1.bf16.msra.mxu0 %v6987_v43  ;;  %4579 = vmatprep.subr.bf16.mxu1 %v6992_v44  ;;  %v7157_v43 = vld [vmem:[%s8191_s10 + $0x2b0] ss:$152 sps:$4 sm:$0xff]   ;;  %v7088_v44 = vld [vmem:[%s10108_s1 + $0x254] ss:$8 sps:$4 sm:$0xff]  }
  0x6d   : > { %5146 = vmatprep.subr.bf16.mxu0 %v6995_v45  ;;  %v7091_v45 = vld [vmem:[%s10108_s1 + $0xb54] ss:$8 sps:$4 sm:$0xff]  }
  0x6f   : > { %4580 = vmatpush1.bf16.msra.mxu1 %v6990_v46  ;;  %v7086_v46 = vld [vmem:[%s10108_s1 + $0x250] ss:$8 sps:$4 sm:$0xff]  }
  0x70   : > { %5147 = vmatpush1.bf16.msra.mxu0 %v6993_v48  ;;  %4581 = vmatprep.subr.bf16.mxu1 %v6998_v49  ;;  %v7089_v48 = vld [vmem:[%s10108_s1 + $0xb50] ss:$8 sps:$4 sm:$0xff]   ;;  %v7172_v49 = vld [vmem:[%s8191_s10 + $0x5c] ss:$152 sps:$4 sm:$0xff]  }
  0x71   : > { %5148 = vmatprep.subr.bf16.mxu0 %v7001_v50  ;;  %v7094_v50 = vld [vmem:[%s10108_s1 + $0x264] ss:$8 sps:$4 sm:$0xff]  }
  0x73   : > { %4582 = vmatpush1.bf16.msra.mxu1 %v6996_v52  ;;  %v7092_v52 = vld [vmem:[%s10108_s1 + $0x260] ss:$8 sps:$4 sm:$0xff]  }
  0x74   : > { %5149 = vmatpush1.bf16.msra.mxu0 %v6999_v53  ;;  %4583 = vmatprep.subr.bf16.mxu1 %v7004_v54  ;;  %v7095_v53 = vld [vmem:[%s10108_s1 + $0xb60] ss:$8 sps:$4 sm:$0xff]   ;;  %v7100_v54 = vld [vmem:[%s10108_s1 + $0x274] ss:$8 sps:$4 sm:$0xff]  }
  0x75   : > { %5150 = vmatprep.subr.bf16.mxu0 %v7007_v55  ;;  %v7103_v55 = vld [vmem:[%s10108_s1 + $0xb74] ss:$8 sps:$4 sm:$0xff]  }
  0x77   : > { %4584 = vmatpush1.bf16.msra.mxu1 %v7002_v56  ;;  %v7098_v56 = vld [vmem:[%s10108_s1 + $0x270] ss:$8 sps:$4 sm:$0xff]  }
  0x78   : > { %5151 = vmatpush1.bf16.msra.mxu0 %v7005_v57  ;;  %4585 = vmatprep.subr.bf16.mxu1 %v7010_v58  ;;  %v7101_v57 = vld [vmem:[%s10108_s1 + $0xb70] ss:$8 sps:$4 sm:$0xff]   ;;  %v7106_v58 = vld [vmem:[%s10108_s1 + $0x284] ss:$8 sps:$4 sm:$0xff]  }
  0x79   : > { %5152 = vmatprep.subr.bf16.mxu0 %v7013_v59  ;;  %v7109_v59 = vld [vmem:[%s10108_s1 + $0xb84] ss:$8 sps:$4 sm:$0xff]  }
  0x7b   : > { %4586 = vmatpush1.bf16.msra.mxu1 %v7008_v60  ;;  %v7104_v60 = vld [vmem:[%s10108_s1 + $0x280] ss:$8 sps:$4 sm:$0xff]  }
  0x7c   : > { %5153 = vmatpush1.bf16.msra.mxu0 %v7011_v61  ;;  %4587 = vmatprep.subr.bf16.mxu1 %v7018_v62  ;;  %v7107_v61 = vld [vmem:[%s10108_s1 + $0xb80] ss:$8 sps:$4 sm:$0xff]   ;;  %v7112_v62 = vld [vmem:[%s10108_s1 + $0x294] ss:$8 sps:$4 sm:$0xff]  }
  0x7d   : > { %5154 = vmatprep.subr.bf16.mxu0 %v7023_v63  ;;  %v7115_v63 = vld [vmem:[%s10108_s1 + $0xb94] ss:$8 sps:$4 sm:$0xff]  }
  0x7f   : > { %4588 = vmatpush1.bf16.msra.mxu1 %v7016_v0  ;;  %v7110_v0 = vld [vmem:[%s10108_s1 + $0x290] ss:$8 sps:$4 sm:$0xff]  }
  0x80   : > { %5155 = vmatpush1.bf16.msra.mxu0 %v7021_v1  ;;  %4589 = vmatprep.subr.bf16.mxu1 %v7028_v2  ;;  %v7113_v1 = vld [vmem:[%s10108_s1 + $0xb90] ss:$8 sps:$4 sm:$0xff]   ;;  %v7118_v2 = vld [vmem:[%s10108_s1 + $0x2a4] ss:$8 sps:$4 sm:$0xff]  }
  0x81   : > { %5156 = vmatprep.subr.bf16.mxu0 %v7031_v3  ;;  %v7121_v3 = vld [vmem:[%s10108_s1 + $0xba4] ss:$8 sps:$4 sm:$0xff]  }
  0x83   : > { %4590 = vmatpush1.bf16.msra.mxu1 %v7026_v4  ;;  %v7116_v4 = vld [vmem:[%s10108_s1 + $0x2a0] ss:$8 sps:$4 sm:$0xff]  }
  0x84   : > { %5157 = vmatpush1.bf16.msra.mxu0 %v7029_v5  ;;  %4591 = vmatprep.subr.bf16.mxu1 %v7036_v6  ;;  %v7119_v5 = vld [vmem:[%s10108_s1 + $0xba0] ss:$8 sps:$4 sm:$0xff]   ;;  %v7124_v6 = vld [vmem:[%s10108_s1 + $0x2b4] ss:$8 sps:$4 sm:$0xff]  }
  0x85   : > { %5158 = vmatprep.subr.bf16.mxu0 %v7041_v7  ;;  %v7127_v7 = vld [vmem:[%s10108_s1 + $0xbb4] ss:$8 sps:$4 sm:$0xff]  }
  0x87   : > { %4592 = vmatpush1.bf16.msra.mxu1 %v7034_v8  ;;  %v7122_v8 = vld [vmem:[%s10108_s1 + $0x2b0] ss:$8 sps:$4 sm:$0xff]  }
  0x88   : > { %5159 = vmatpush1.bf16.msra.mxu0 %v7039_v9  ;;  %4593 = vmatprep.subr.bf16.mxu1 %v7046_v10  ;;  %v7125_v9 = vld [vmem:[%s10108_s1 + $0xbb0] ss:$8 sps:$4 sm:$0xff]   ;;  %v7132_v10 = vld [vmem:[%s10108_s1 + $0x2c4] ss:$8 sps:$4 sm:$0xff]  }
  0x89   : > { %5160 = vmatprep.subr.bf16.mxu0 %v7049_v11  ;;  %v7137_v11 = vld [vmem:[%s10108_s1 + $0xbc4] ss:$8 sps:$4 sm:$0xff]  }
  0x8b   : > { %4594 = vmatpush1.bf16.msra.mxu1 %v7044_v12  ;;  %v7130_v12 = vld [vmem:[%s10108_s1 + $0x2c0] ss:$8 sps:$4 sm:$0xff]  }
  0x8c   : > { %5161 = vmatpush1.bf16.msra.mxu0 %v7047_v13  ;;  %4626 = vmatprep.subr.bf16.mxu1 %v7055_v14  ;;  %v7135_v13 = vld [vmem:[%s10108_s1 + $0xbc0] ss:$8 sps:$4 sm:$0xff]   ;;  %v7142_v14 = vld [vmem:[%s10108_s1 + $0x2d4] ss:$8 sps:$4 sm:$0xff]  }
  0x8d   : > { %5193 = vmatprep.subr.bf16.mxu0 %v7061_v15  ;;  %v7145_v15 = vld [vmem:[%s10108_s1 + $0xbd4] ss:$8 sps:$4 sm:$0xff]  }
  0x8e   : > { %4596 = vmatmul.mubr.bf16.vlgmr.msra.gmra.mrb[0].mxu1 %v7050_v16  ;;  %v7140_v16 = vld [vmem:[%s10108_s1 + $0x2d0] ss:$8 sps:$4 sm:$0xff]  }
  0x8f   : > { %5163 = vmatmul.mubr.bf16.vlgmr.msra.gmra.mrb[0].mxu0 %v7056_v18  ;;  %4627 = vmatpush1.bf16.msra.mxu1 %v7053_v17  ;;  %v7143_v17 = vld [vmem:[%s10108_s1 + $0xbd0] ss:$8 sps:$4 sm:$0xff]   ;;  %v7150_v18 = vld [vmem:[%s10108_s1 + $0x2e4] ss:$8 sps:$4 sm:$0xff]  }
  0x90   : > { %5194 = vmatpush1.bf16.msra.mxu0 %v7059_v19  ;;  %4628 = vmatprep.subr.bf16.mxu1 %v7064_v20  ;;  %v7155_v19 = vld [vmem:[%s10108_s1 + $0xbe4] ss:$8 sps:$4 sm:$0xff]   ;;  %v7148_v20 = vld [vmem:[%s10108_s1 + $0x2e0] ss:$8 sps:$4 sm:$0xff]  }
  0x91   : > { %5195 = vmatprep.subr.bf16.mxu0 %v7067_v21  ;;  %4605 = vmatprep.mubr.bf16.mxu1 %v7128_v22  ;;  %v7153_v21 = vld [vmem:[%s10108_s1 + $0xbe0] ss:$8 sps:$4 sm:$0xff]   ;;  %v7160_v22 = vld [vmem:[%s10108_s1 + $0x2f4] ss:$8 sps:$4 sm:$0xff]  }
  0x92   : > { %5172 = vmatprep.mubr.bf16.mxu0 %v7133_v23  ;;  %v7163_v23 = vld [vmem:[%s10108_s1 + $0xbf4] ss:$8 sps:$4 sm:$0xff]  }
  0x93   : > { %4629 = vmatpush1.bf16.msra.mxu1 %v7062_v24  ;;  %v7158_v24 = vld [vmem:[%s10108_s1 + $0x2f0] ss:$8 sps:$4 sm:$0xff]  }
  0x94   : > { %5196 = vmatpush1.bf16.msra.mxu0 %v7065_v25  ;;  %4630 = vmatprep.subr.bf16.mxu1 %v7070_v26  ;;  %v7161_v25 = vld [vmem:[%s10108_s1 + $0xbf0] ss:$8 sps:$4 sm:$0xff]   ;;  %v7169_v26 = vld [vmem:[%s10108_s1 + $0x304] ss:$8 sps:$4 sm:$0xff]  }
  0x95   : > { %5197 = vmatprep.subr.bf16.mxu0 %v7073_v27  ;;  %v7175_v27 = vld [vmem:[%s10108_s1 + $0xc04] ss:$8 sps:$4 sm:$0xff]  }
  0x96   : > { %4606 = vmatmul.mubr.bf16.gmra.mrb[4].mxu1 %v7138_v30  ;;  %v7170_v30 = vld [vmem:[%s8191_s10 + $0x58] ss:$152 sps:$4 sm:$0xff]  }
  0x97   : > { %5173 = vmatmul.mubr.bf16.gmra.mrb[4].mxu0 %v7139_v31  ;;  %4631 = vmatpush1.bf16.msra.mxu1 %v7068_v28  ;;  %v7164_v28 = vld [vmem:[%s8191_s10 + $0x10] ss:$152 sps:$4 sm:$0xff]  }
  0x98   : > { %5198 = vmatpush1.bf16.msra.mxu0 %v7071_v29  ;;  %4632 = vmatprep.subr.bf16.mxu1 %v7076_v32  ;;  %v7167_v29 = vld [vmem:[%s10108_s1 + $0x300] ss:$8 sps:$4 sm:$0xff]   ;;  %v7178_v32 = vld [vmem:[%s10108_s1 + $0x314] ss:$8 sps:$4 sm:$0xff]  }
  0x99   : > { %5199 = vmatprep.subr.bf16.mxu0 %v7079_v33  ;;  %4615 = vmatprep.mubr.bf16.mxu1 %v7146_v34  ;;  %v7173_v31 = vld [vmem:[%s10108_s1 + $0xc00] ss:$8 sps:$4 sm:$0xff]   ;;  %v7181_v33 = vld [vmem:[%s10108_s1 + $0xc14] ss:$8 sps:$4 sm:$0xff]  }
  0x9a   : > { %5182 = vmatprep.mubr.bf16.mxu0 %v7151_v35  ;;  %v7242_v34 = vld [vmem:[%s8191_s10 + $0x144] ss:$152 sps:$4 sm:$0xff]  }
  0x9b   : > { %4633 = vmatpush1.bf16.msra.mxu1 %v7074_v36  ;;  %v7247_v35 = vld [vmem:[%s8191_s10 + $0x18c] ss:$152 sps:$4 sm:$0xff]   ;;  %v7176_v36 = vld [vmem:[%s10108_s1 + $0x310] ss:$8 sps:$4 sm:$0xff]  }
  0x9c   : > { %5200 = vmatpush1.bf16.msra.mxu0 %v7077_v37  ;;  %4634 = vmatprep.subr.bf16.mxu1 %v7082_v38  ;;  %v7179_v37 = vld [vmem:[%s10108_s1 + $0xc10] ss:$8 sps:$4 sm:$0xff]   ;;  %v7184_v38 = vld [vmem:[%s10108_s1 + $0x324] ss:$8 sps:$4 sm:$0xff]  }
  0x9d   : > { %5201 = vmatprep.subr.bf16.mxu0 %v7085_v39  ;;  %v7187_v39 = vld [vmem:[%s10108_s1 + $0xc24] ss:$8 sps:$4 sm:$0xff]  }
  0x9e   : > { %4616 = vmatmul.mubr.bf16.gmra.mrb[8].mxu1 %v7156_v42  ;;  %v7252_v42 = vld [vmem:[%s8191_s10 + $0x140] ss:$152 sps:$4 sm:$0xff]  }
  0x9f   : > { %5183 = vmatmul.mubr.bf16.gmra.mrb[8].mxu0 %v7157_v43  ;;  %4635 = vmatpush1.bf16.msra.mxu1 %v7080_v40  ;;  %v7182_v40 = vld [vmem:[%s10108_s1 + $0x320] ss:$8 sps:$4 sm:$0xff]  }
  0xa0   : > { %5202 = vmatpush1.bf16.msra.mxu0 %v7083_v41  ;;  %4636 = vmatprep.subr.bf16.mxu1 %v7088_v44  ;;  %v7185_v41 = vld [vmem:[%s10108_s1 + $0xc20] ss:$8 sps:$4 sm:$0xff]   ;;  %v7190_v44 = vld [vmem:[%s10108_s1 + $0x334] ss:$8 sps:$4 sm:$0xff]  }
  0xa1   : > { %5203 = vmatprep.subr.bf16.mxu0 %v7091_v45  ;;  %4658 = vmatprep.mubr.bf16.mxu1 %v7166_v47  ;;  %v7253_v43 = vld [vmem:[%s8191_s10 + $0x188] ss:$152 sps:$4 sm:$0xff]   ;;  %v7193_v45 = vld [vmem:[%s10108_s1 + $0xc34] ss:$8 sps:$4 sm:$0xff]  }
  0xa2   : > { %5225 = vmatprep.mubr.bf16.mxu0 %v7172_v49  ;;  %v7265_v47 = vld [vmem:[%s8191_s10 + $0x2bc] ss:$152 sps:$4 sm:$0xff]   ;;  %v7191_v49 = vld [vmem:[%s10108_s1 + $0xc30] ss:$8 sps:$4 sm:$0xff]  }
  0xa3   : > { %4637 = vmatpush1.bf16.msra.mxu1 %v7086_v46  ;;  %v7260_v46 = vld [vmem:[%s8191_s10 + $0x274] ss:$152 sps:$4 sm:$0xff]  }
  0xa4   : > { %5204 = vmatpush1.bf16.msra.mxu0 %v7089_v48  ;;  %4638 = vmatprep.subr.bf16.mxu1 %v7094_v50  ;;  %v7188_v48 = vld [vmem:[%s10108_s1 + $0x330] ss:$8 sps:$4 sm:$0xff]   ;;  %v7196_v50 = vld [vmem:[%s10108_s1 + $0x344] ss:$8 sps:$4 sm:$0xff]  }
  0xa5   : > { %5205 = vmatprep.subr.bf16.mxu0 %v7097_v51  ;;  %v7199_v51 = vld [vmem:[%s10108_s1 + $0xc44] ss:$8 sps:$4 sm:$0xff]  }
  0xa7   : > { %4639 = vmatpush1.bf16.msra.mxu1 %v7092_v52  ;;  %v7194_v52 = vld [vmem:[%s10108_s1 + $0x340] ss:$8 sps:$4 sm:$0xff]  }
  0xa8   : > { %5206 = vmatpush1.bf16.msra.mxu0 %v7095_v53  ;;  %4640 = vmatprep.subr.bf16.mxu1 %v7100_v54  ;;  %v7197_v53 = vld [vmem:[%s10108_s1 + $0xc40] ss:$8 sps:$4 sm:$0xff]  }
  0xa9   : > { %5207 = vmatprep.subr.bf16.mxu0 %v7103_v55  ;;  %v7270_v54 = vld [vmem:[%s8191_s10 + $0x270] ss:$152 sps:$4 sm:$0xff]  }
  0xaa   : > { %v7271_v55 = vld [vmem:[%s8191_s10 + $0x2b8] ss:$152 sps:$4 sm:$0xff]  }
  0xab   : > { %4641 = vmatpush1.bf16.msra.mxu1 %v7098_v56  ;;  %v7202_v56 = vld [vmem:[%s10108_s1 + $0x354] ss:$8 sps:$4 sm:$0xff]  }
  0xac   : > { %5208 = vmatpush1.bf16.msra.mxu0 %v7101_v57  ;;  %4642 = vmatprep.subr.bf16.mxu1 %v7106_v58  ;;  %v7205_v57 = vld [vmem:[%s10108_s1 + $0xc54] ss:$8 sps:$4 sm:$0xff]  }
  0xad   : > { %5209 = vmatprep.subr.bf16.mxu0 %v7109_v59  ;;  %v7280_v58 = vld [vmem:[%s8191_s10 + $0x1c] ss:$152 sps:$4 sm:$0xff]  }
  0xae   : > { %v7286_v59 = vld [vmem:[%s8191_s10 + $0x64] ss:$152 sps:$4 sm:$0xff]  }
  0xaf   : > { %4643 = vmatpush1.bf16.msra.mxu1 %v7104_v60  ;;  %v7200_v60 = vld [vmem:[%s10108_s1 + $0x350] ss:$8 sps:$4 sm:$0xff]  }
  0xb0   : > { %5210 = vmatpush1.bf16.msra.mxu0 %v7107_v61  ;;  %4644 = vmatprep.subr.bf16.mxu1 %v7112_v62  ;;  %v7203_v61 = vld [vmem:[%s10108_s1 + $0xc50] ss:$8 sps:$4 sm:$0xff]   ;;  %v7208_v62 = vld [vmem:[%s10108_s1 + $0x364] ss:$8 sps:$4 sm:$0xff]  }
  0xb1   : > { %5211 = vmatprep.subr.bf16.mxu0 %v7115_v63  ;;  %v7211_v63 = vld [vmem:[%s10108_s1 + $0xc64] ss:$8 sps:$4 sm:$0xff]  }
  0xb3   : > { %4645 = vmatpush1.bf16.msra.mxu1 %v7110_v0  ;;  %v7206_v0 = vld [vmem:[%s10108_s1 + $0x360] ss:$8 sps:$4 sm:$0xff]  }
  0xb4   : > { %5212 = vmatpush1.bf16.msra.mxu0 %v7113_v1  ;;  %4646 = vmatprep.subr.bf16.mxu1 %v7118_v2  ;;  %v7209_v1 = vld [vmem:[%s10108_s1 + $0xc60] ss:$8 sps:$4 sm:$0xff]   ;;  %v7214_v2 = vld [vmem:[%s10108_s1 + $0x374] ss:$8 sps:$4 sm:$0xff]  }
  0xb5   : > { %5213 = vmatprep.subr.bf16.mxu0 %v7121_v3  ;;  %v7217_v3 = vld [vmem:[%s10108_s1 + $0xc74] ss:$8 sps:$4 sm:$0xff]  }
  0xb7   : > { %4647 = vmatpush1.bf16.msra.mxu1 %v7116_v4  ;;  %v7212_v4 = vld [vmem:[%s10108_s1 + $0x370] ss:$8 sps:$4 sm:$0xff]  }
  0xb8   : > { %5214 = vmatpush1.bf16.msra.mxu0 %v7119_v5  ;;  %4648 = vmatprep.subr.bf16.mxu1 %v7124_v6  ;;  %v7215_v5 = vld [vmem:[%s10108_s1 + $0xc70] ss:$8 sps:$4 sm:$0xff]   ;;  %v7220_v6 = vld [vmem:[%s10108_s1 + $0x384] ss:$8 sps:$4 sm:$0xff]  }
  0xb9   : > { %5215 = vmatprep.subr.bf16.mxu0 %v7127_v7  ;;  %v7223_v7 = vld [vmem:[%s10108_s1 + $0xc84] ss:$8 sps:$4 sm:$0xff]  }
  0xbb   : > { %4649 = vmatpush1.bf16.msra.mxu1 %v7122_v8  ;;  %v7218_v8 = vld [vmem:[%s10108_s1 + $0x380] ss:$8 sps:$4 sm:$0xff]  }
  0xbc   : > { %5216 = vmatpush1.bf16.msra.mxu0 %v7125_v9  ;;  %4650 = vmatprep.subr.bf16.mxu1 %v7132_v10  ;;  %v7221_v9 = vld [vmem:[%s10108_s1 + $0xc80] ss:$8 sps:$4 sm:$0xff]   ;;  %v7226_v10 = vld [vmem:[%s10108_s1 + $0x394] ss:$8 sps:$4 sm:$0xff]  }
  0xbd   : > { %5217 = vmatprep.subr.bf16.mxu0 %v7137_v11  ;;  %v7229_v11 = vld [vmem:[%s10108_s1 + $0xc94] ss:$8 sps:$4 sm:$0xff]  }
  0xbf   : > { %4651 = vmatpush1.bf16.msra.mxu1 %v7130_v12  ;;  %v7224_v12 = vld [vmem:[%s10108_s1 + $0x390] ss:$8 sps:$4 sm:$0xff]  }
  0xc0   : > { %5218 = vmatpush1.bf16.msra.mxu0 %v7135_v13  ;;  %4652 = vmatprep.subr.bf16.mxu1 %v7142_v14  ;;  %v7227_v13 = vld [vmem:[%s10108_s1 + $0xc90] ss:$8 sps:$4 sm:$0xff]   ;;  %v7232_v14 = vld [vmem:[%s10108_s1 + $0x3a4] ss:$8 sps:$4 sm:$0xff]  }
  0xc1   : > { %5219 = vmatprep.subr.bf16.mxu0 %v7145_v15  ;;  %v7235_v15 = vld [vmem:[%s10108_s1 + $0xca4] ss:$8 sps:$4 sm:$0xff]  }
  0xc3   : > { %4653 = vmatpush1.bf16.msra.mxu1 %v7140_v16  ;;  %v7230_v16 = vld [vmem:[%s10108_s1 + $0x3a0] ss:$8 sps:$4 sm:$0xff]  }
  0xc4   : > { %5220 = vmatpush1.bf16.msra.mxu0 %v7143_v17  ;;  %4654 = vmatprep.subr.bf16.mxu1 %v7150_v18  ;;  %v7233_v17 = vld [vmem:[%s10108_s1 + $0xca0] ss:$8 sps:$4 sm:$0xff]   ;;  %v7238_v18 = vld [vmem:[%s10108_s1 + $0x3b4] ss:$8 sps:$4 sm:$0xff]  }
  0xc5   : > { %5221 = vmatprep.subr.bf16.mxu0 %v7155_v19  ;;  %v7241_v19 = vld [vmem:[%s10108_s1 + $0xcb4] ss:$8 sps:$4 sm:$0xff]  }
  0xc7   : > { %4655 = vmatpush1.bf16.msra.mxu1 %v7148_v20  ;;  %v7236_v20 = vld [vmem:[%s10108_s1 + $0x3b0] ss:$8 sps:$4 sm:$0xff]  }
  0xc8   : > { %5222 = vmatpush1.bf16.msra.mxu0 %v7153_v21  ;;  %4656 = vmatprep.subr.bf16.mxu1 %v7160_v22  ;;  %v7239_v21 = vld [vmem:[%s10108_s1 + $0xcb0] ss:$8 sps:$4 sm:$0xff]   ;;  %v7246_v22 = vld [vmem:[%s10108_s1 + $0x3c4] ss:$8 sps:$4 sm:$0xff]  }
  0xc9   : > { %5223 = vmatprep.subr.bf16.mxu0 %v7163_v23  ;;  %v7251_v23 = vld [vmem:[%s10108_s1 + $0xcc4] ss:$8 sps:$4 sm:$0xff]  }
  0xcb   : > { %4657 = vmatpush1.bf16.msra.mxu1 %v7158_v24  ;;  %v7244_v24 = vld [vmem:[%s10108_s1 + $0x3c0] ss:$8 sps:$4 sm:$0xff]  }
  0xcc   : > { %5224 = vmatpush1.bf16.msra.mxu0 %v7161_v25  ;;  %4689 = vmatprep.subr.bf16.mxu1 %v7169_v26  ;;  %v7249_v25 = vld [vmem:[%s10108_s1 + $0xcc0] ss:$8 sps:$4 sm:$0xff]   ;;  %v7256_v26 = vld [vmem:[%s10108_s1 + $0x3d4] ss:$8 sps:$4 sm:$0xff]  }
  0xcd   : > { %5256 = vmatprep.subr.bf16.mxu0 %v7175_v27  ;;  %v7259_v27 = vld [vmem:[%s10108_s1 + $0xcd4] ss:$8 sps:$4 sm:$0xff]  }
  0xce   : > { %4659 = vmatmul.mubr.bf16.vlgmr.msra.gmra.mrb[0].mxu1 %v7164_v28  ;;  %v7254_v28 = vld [vmem:[%s10108_s1 + $0x3d0] ss:$8 sps:$4 sm:$0xff]  }
  0xcf   : > { %5226 = vmatmul.mubr.bf16.vlgmr.msra.gmra.mrb[0].mxu0 %v7170_v30  ;;  %4690 = vmatpush1.bf16.msra.mxu1 %v7167_v29  ;;  %v7257_v29 = vld [vmem:[%s10108_s1 + $0xcd0] ss:$8 sps:$4 sm:$0xff]   ;;  %v7264_v30 = vld [vmem:[%s10108_s1 + $0x3e4] ss:$8 sps:$4 sm:$0xff]  }
  0xd0   : > { %5257 = vmatpush1.bf16.msra.mxu0 %v7173_v31  ;;  %4691 = vmatprep.subr.bf16.mxu1 %v7178_v32  ;;  %v7269_v31 = vld [vmem:[%s10108_s1 + $0xce4] ss:$8 sps:$4 sm:$0xff]   ;;  %v7262_v32 = vld [vmem:[%s10108_s1 + $0x3e0] ss:$8 sps:$4 sm:$0xff]  }
  0xd1   : > { %5258 = vmatprep.subr.bf16.mxu0 %v7181_v33  ;;  %4668 = vmatprep.mubr.bf16.mxu1 %v7242_v34  ;;  %v7267_v33 = vld [vmem:[%s10108_s1 + $0xce0] ss:$8 sps:$4 sm:$0xff]   ;;  %v7274_v34 = vld [vmem:[%s10108_s1 + $0x3f4] ss:$8 sps:$4 sm:$0xff]  }
  0xd2   : > { %5235 = vmatprep.mubr.bf16.mxu0 %v7247_v35  ;;  %v7277_v35 = vld [vmem:[%s10108_s1 + $0xcf4] ss:$8 sps:$4 sm:$0xff]  }
  0xd3   : > { %4692 = vmatpush1.bf16.msra.mxu1 %v7176_v36  ;;  %v7272_v36 = vld [vmem:[%s10108_s1 + $0x3f0] ss:$8 sps:$4 sm:$0xff]  }
  0xd4   : > { %5259 = vmatpush1.bf16.msra.mxu0 %v7179_v37  ;;  %4693 = vmatprep.subr.bf16.mxu1 %v7184_v38  ;;  %v7275_v37 = vld [vmem:[%s10108_s1 + $0xcf0] ss:$8 sps:$4 sm:$0xff]   ;;  %v7283_v38 = vld [vmem:[%s10108_s1 + $0x404] ss:$8 sps:$4 sm:$0xff]  }
  0xd5   : > { %5260 = vmatprep.subr.bf16.mxu0 %v7187_v39  ;;  %v7289_v39 = vld [vmem:[%s10108_s1 + $0xd04] ss:$8 sps:$4 sm:$0xff]  }
  0xd6   : > { %4669 = vmatmul.mubr.bf16.gmra.mrb[4].mxu1 %v7252_v42  ;;  %v7284_v42 = vld [vmem:[%s8191_s10 + $0x60] ss:$152 sps:$4 sm:$0xff]  }
  0xd7   : > { %5236 = vmatmul.mubr.bf16.gmra.mrb[4].mxu0 %v7253_v43  ;;  %4694 = vmatpush1.bf16.msra.mxu1 %v7182_v40  ;;  %v7278_v40 = vld [vmem:[%s8191_s10 + $0x18] ss:$152 sps:$4 sm:$0xff]   ;;  %v7287_v43 = vld [vmem:[%s10108_s1 + $0xd00] ss:$8 sps:$4 sm:$0xff]  }
  0xd8   : > { %5261 = vmatpush1.bf16.msra.mxu0 %v7185_v41  ;;  %4695 = vmatprep.subr.bf16.mxu1 %v7190_v44  ;;  %v7281_v41 = vld [vmem:[%s10108_s1 + $0x400] ss:$8 sps:$4 sm:$0xff]   ;;  %v7292_v44 = vld [vmem:[%s10108_s1 + $0x414] ss:$8 sps:$4 sm:$0xff]  }
  0xd9   : > { %5262 = vmatprep.subr.bf16.mxu0 %v7193_v45  ;;  %4678 = vmatprep.mubr.bf16.mxu1 %v7260_v46  ;;  %v7295_v45 = vld [vmem:[%s10108_s1 + $0xd14] ss:$8 sps:$4 sm:$0xff]   ;;  %v7356_v46 = vld [vmem:[%s8191_s10 + $0x14c] ss:$152 sps:$4 sm:$0xff]  }
  0xda   : > { %5245 = vmatprep.mubr.bf16.mxu0 %v7265_v47  ;;  %v7361_v47 = vld [vmem:[%s8191_s10 + $0x194] ss:$152 sps:$4 sm:$0xff]  }
  0xdb   : > { %4696 = vmatpush1.bf16.msra.mxu1 %v7188_v48  ;;  %v7290_v48 = vld [vmem:[%s10108_s1 + $0x410] ss:$8 sps:$4 sm:$0xff]  }
  0xdc   : > { %5263 = vmatpush1.bf16.msra.mxu0 %v7191_v49  ;;  %4697 = vmatprep.subr.bf16.mxu1 %v7196_v50  ;;  %v7293_v49 = vld [vmem:[%s10108_s1 + $0xd10] ss:$8 sps:$4 sm:$0xff]   ;;  %v7298_v50 = vld [vmem:[%s10108_s1 + $0x424] ss:$8 sps:$4 sm:$0xff]  }
  0xdd   : > { %5264 = vmatprep.subr.bf16.mxu0 %v7199_v51  ;;  %v7301_v51 = vld [vmem:[%s10108_s1 + $0xd24] ss:$8 sps:$4 sm:$0xff]  }
  0xde   : > { %4679 = vmatmul.mubr.bf16.gmra.mrb[8].mxu1 %v7270_v54  ;;  %v7366_v54 = vld [vmem:[%s8191_s10 + $0x148] ss:$152 sps:$4 sm:$0xff]  }
  0xdf   : > { %5246 = vmatmul.mubr.bf16.gmra.mrb[8].mxu0 %v7271_v55  ;;  %4698 = vmatpush1.bf16.msra.mxu1 %v7194_v52  ;;  %v7296_v52 = vld [vmem:[%s10108_s1 + $0x420] ss:$8 sps:$4 sm:$0xff]  }
  0xe0   : > { %5265 = vmatpush1.bf16.msra.mxu0 %v7197_v53  ;;  %4699 = vmatprep.subr.bf16.mxu1 %v7202_v56  ;;  %v7299_v53 = vld [vmem:[%s10108_s1 + $0xd20] ss:$8 sps:$4 sm:$0xff]   ;;  %v7304_v56 = vld [vmem:[%s10108_s1 + $0x434] ss:$8 sps:$4 sm:$0xff]  }
  0xe1   : > { %5266 = vmatprep.subr.bf16.mxu0 %v7205_v57  ;;  %4721 = vmatprep.mubr.bf16.mxu1 %v7280_v58  ;;  %v7367_v55 = vld [vmem:[%s8191_s10 + $0x190] ss:$152 sps:$4 sm:$0xff]   ;;  %v7307_v57 = vld [vmem:[%s10108_s1 + $0xd34] ss:$8 sps:$4 sm:$0xff]  }
  0xe2   : > { %5288 = vmatprep.mubr.bf16.mxu0 %v7286_v59  ;;  %v7374_v58 = vld [vmem:[%s8191_s10 + $0x27c] ss:$152 sps:$4 sm:$0xff]  }
  0xe3   : > { %4700 = vmatpush1.bf16.msra.mxu1 %v7200_v60  ;;  %v7379_v59 = vld [vmem:[%s8191_s10 + $0x2c4] ss:$152 sps:$4 sm:$0xff]   ;;  %v7302_v60 = vld [vmem:[%s10108_s1 + $0x430] ss:$8 sps:$4 sm:$0xff]  }
  0xe4   : > { %5267 = vmatpush1.bf16.msra.mxu0 %v7203_v61  ;;  %4701 = vmatprep.subr.bf16.mxu1 %v7208_v62  ;;  %v7305_v61 = vld [vmem:[%s10108_s1 + $0xd30] ss:$8 sps:$4 sm:$0xff]   ;;  %v7310_v62 = vld [vmem:[%s10108_s1 + $0x444] ss:$8 sps:$4 sm:$0xff]  }
  0xe5   : > { %5268 = vmatprep.subr.bf16.mxu0 %v7211_v63  ;;  %v7313_v63 = vld [vmem:[%s10108_s1 + $0xd44] ss:$8 sps:$4 sm:$0xff]  }
  0xe7   : > { %4702 = vmatpush1.bf16.msra.mxu1 %v7206_v0  ;;  %v7308_v0 = vld [vmem:[%s10108_s1 + $0x440] ss:$8 sps:$4 sm:$0xff]  }
  0xe8   : > { %5269 = vmatpush1.bf16.msra.mxu0 %v7209_v1  ;;  %4703 = vmatprep.subr.bf16.mxu1 %v7214_v2  ;;  %v7311_v1 = vld [vmem:[%s10108_s1 + $0xd40] ss:$8 sps:$4 sm:$0xff]   ;;  %v7384_v2 = vld [vmem:[%s8191_s10 + $0x278] ss:$152 sps:$4 sm:$0xff]  }
  0xe9   : > { %5270 = vmatprep.subr.bf16.mxu0 %v7217_v3  ;;  %v7385_v3 = vld [vmem:[%s8191_s10 + $0x2c0] ss:$152 sps:$4 sm:$0xff]  }
  0xeb   : > { %4704 = vmatpush1.bf16.msra.mxu1 %v7212_v4  ;;  %v7316_v4 = vld [vmem:[%s10108_s1 + $0x454] ss:$8 sps:$4 sm:$0xff]  }
  0xec   : > { %5271 = vmatpush1.bf16.msra.mxu0 %v7215_v5  ;;  %4705 = vmatprep.subr.bf16.mxu1 %v7220_v6  ;;  %v7319_v5 = vld [vmem:[%s10108_s1 + $0xd54] ss:$8 sps:$4 sm:$0xff]  }
  0xed   : > { %5272 = vmatprep.subr.bf16.mxu0 %v7223_v7  ;;  %v7394_v6 = vld [vmem:[%s8191_s10 + $0x24] ss:$152 sps:$4 sm:$0xff]  }
  0xee   : > { %v7400_v7 = vld [vmem:[%s8191_s10 + $0x6c] ss:$152 sps:$4 sm:$0xff]  }
  0xef   : > { %4706 = vmatpush1.bf16.msra.mxu1 %v7218_v8  ;;  %v7314_v8 = vld [vmem:[%s10108_s1 + $0x450] ss:$8 sps:$4 sm:$0xff]  }
  0xf0   : > { %5273 = vmatpush1.bf16.msra.mxu0 %v7221_v9  ;;  %4707 = vmatprep.subr.bf16.mxu1 %v7226_v10  ;;  %v7317_v9 = vld [vmem:[%s10108_s1 + $0xd50] ss:$8 sps:$4 sm:$0xff]   ;;  %v7322_v10 = vld [vmem:[%s10108_s1 + $0x464] ss:$8 sps:$4 sm:$0xff]  }
  0xf1   : > { %5274 = vmatprep.subr.bf16.mxu0 %v7229_v11  ;;  %v7325_v11 = vld [vmem:[%s10108_s1 + $0xd64] ss:$8 sps:$4 sm:$0xff]  }
  0xf3   : > { %4708 = vmatpush1.bf16.msra.mxu1 %v7224_v12  ;;  %v7320_v12 = vld [vmem:[%s10108_s1 + $0x460] ss:$8 sps:$4 sm:$0xff]  }
  0xf4   : > { %5275 = vmatpush1.bf16.msra.mxu0 %v7227_v13  ;;  %4709 = vmatprep.subr.bf16.mxu1 %v7232_v14  ;;  %v7323_v13 = vld [vmem:[%s10108_s1 + $0xd60] ss:$8 sps:$4 sm:$0xff]   ;;  %v7328_v14 = vld [vmem:[%s10108_s1 + $0x474] ss:$8 sps:$4 sm:$0xff]  }
  0xf5   : > { %5276 = vmatprep.subr.bf16.mxu0 %v7235_v15  ;;  %v7331_v15 = vld [vmem:[%s10108_s1 + $0xd74] ss:$8 sps:$4 sm:$0xff]  }
  0xf7   : > { %4710 = vmatpush1.bf16.msra.mxu1 %v7230_v16  ;;  %v7326_v16 = vld [vmem:[%s10108_s1 + $0x470] ss:$8 sps:$4 sm:$0xff]  }
  0xf8   : > { %5277 = vmatpush1.bf16.msra.mxu0 %v7233_v17  ;;  %4711 = vmatprep.subr.bf16.mxu1 %v7238_v18  ;;  %v7329_v17 = vld [vmem:[%s10108_s1 + $0xd70] ss:$8 sps:$4 sm:$0xff]   ;;  %v7334_v18 = vld [vmem:[%s10108_s1 + $0x484] ss:$8 sps:$4 sm:$0xff]  }
  0xf9   : > { %5278 = vmatprep.subr.bf16.mxu0 %v7241_v19  ;;  %v7337_v19 = vld [vmem:[%s10108_s1 + $0xd84] ss:$8 sps:$4 sm:$0xff]  }
  0xfb   : > { %4712 = vmatpush1.bf16.msra.mxu1 %v7236_v20  ;;  %v7332_v20 = vld [vmem:[%s10108_s1 + $0x480] ss:$8 sps:$4 sm:$0xff]  }
  0xfc   : > { %5279 = vmatpush1.bf16.msra.mxu0 %v7239_v21  ;;  %4713 = vmatprep.subr.bf16.mxu1 %v7246_v22  ;;  %v7335_v21 = vld [vmem:[%s10108_s1 + $0xd80] ss:$8 sps:$4 sm:$0xff]   ;;  %v7340_v22 = vld [vmem:[%s10108_s1 + $0x494] ss:$8 sps:$4 sm:$0xff]  }
  0xfd   : > { %5280 = vmatprep.subr.bf16.mxu0 %v7251_v23  ;;  %v7343_v23 = vld [vmem:[%s10108_s1 + $0xd94] ss:$8 sps:$4 sm:$0xff]  }
  0xff   : > { %4714 = vmatpush1.bf16.msra.mxu1 %v7244_v24  ;;  %v7338_v24 = vld [vmem:[%s10108_s1 + $0x490] ss:$8 sps:$4 sm:$0xff]  }
 0x100   : > { %5281 = vmatpush1.bf16.msra.mxu0 %v7249_v25  ;;  %4715 = vmatprep.subr.bf16.mxu1 %v7256_v26  ;;  %v7341_v25 = vld [vmem:[%s10108_s1 + $0xd90] ss:$8 sps:$4 sm:$0xff]   ;;  %v7346_v26 = vld [vmem:[%s10108_s1 + $0x4a4] ss:$8 sps:$4 sm:$0xff]  }
 0x101   : > { %5282 = vmatprep.subr.bf16.mxu0 %v7259_v27  ;;  %v7349_v27 = vld [vmem:[%s10108_s1 + $0xda4] ss:$8 sps:$4 sm:$0xff]  }
 0x103   : > { %4716 = vmatpush1.bf16.msra.mxu1 %v7254_v28  ;;  %v7344_v28 = vld [vmem:[%s10108_s1 + $0x4a0] ss:$8 sps:$4 sm:$0xff]  }
 0x104   : > { %5283 = vmatpush1.bf16.msra.mxu0 %v7257_v29  ;;  %4717 = vmatprep.subr.bf16.mxu1 %v7264_v30  ;;  %v7347_v29 = vld [vmem:[%s10108_s1 + $0xda0] ss:$8 sps:$4 sm:$0xff]   ;;  %v7352_v30 = vld [vmem:[%s10108_s1 + $0x4b4] ss:$8 sps:$4 sm:$0xff]  }
 0x105   : > { %5284 = vmatprep.subr.bf16.mxu0 %v7269_v31  ;;  %v7355_v31 = vld [vmem:[%s10108_s1 + $0xdb4] ss:$8 sps:$4 sm:$0xff]  }
 0x107   : > { %4718 = vmatpush1.bf16.msra.mxu1 %v7262_v32  ;;  %v7350_v32 = vld [vmem:[%s10108_s1 + $0x4b0] ss:$8 sps:$4 sm:$0xff]  }
 0x108   : > { %5285 = vmatpush1.bf16.msra.mxu0 %v7267_v33  ;;  %4719 = vmatprep.subr.bf16.mxu1 %v7274_v34  ;;  %v7353_v33 = vld [vmem:[%s10108_s1 + $0xdb0] ss:$8 sps:$4 sm:$0xff]   ;;  %v7360_v34 = vld [vmem:[%s10108_s1 + $0x4c4] ss:$8 sps:$4 sm:$0xff]  }
 0x109   : > { %5286 = vmatprep.subr.bf16.mxu0 %v7277_v35  ;;  %v7365_v35 = vld [vmem:[%s10108_s1 + $0xdc4] ss:$8 sps:$4 sm:$0xff]  }
 0x10b   : > { %4720 = vmatpush1.bf16.msra.mxu1 %v7272_v36  ;;  %v7358_v36 = vld [vmem:[%s10108_s1 + $0x4c0] ss:$8 sps:$4 sm:$0xff]  }
 0x10c   : > { %5287 = vmatpush1.bf16.msra.mxu0 %v7275_v37  ;;  %4752 = vmatprep.subr.bf16.mxu1 %v7283_v38  ;;  %v7363_v37 = vld [vmem:[%s10108_s1 + $0xdc0] ss:$8 sps:$4 sm:$0xff]   ;;  %v7370_v38 = vld [vmem:[%s10108_s1 + $0x4d4] ss:$8 sps:$4 sm:$0xff]  }
 0x10d   : > { %5319 = vmatprep.subr.bf16.mxu0 %v7289_v39  ;;  %v7373_v39 = vld [vmem:[%s10108_s1 + $0xdd4] ss:$8 sps:$4 sm:$0xff]  }
 0x10e   : > { %4722 = vmatmul.mubr.bf16.vlgmr.msra.gmra.mrb[0].mxu1 %v7278_v40  ;;  %v7368_v40 = vld [vmem:[%s10108_s1 + $0x4d0] ss:$8 sps:$4 sm:$0xff]  }
 0x10f   : > { %5289 = vmatmul.mubr.bf16.vlgmr.msra.gmra.mrb[0].mxu0 %v7284_v42  ;;  %4753 = vmatpush1.bf16.msra.mxu1 %v7281_v41  ;;  %v7371_v41 = vld [vmem:[%s10108_s1 + $0xdd0] ss:$8 sps:$4 sm:$0xff]   ;;  %v7378_v42 = vld [vmem:[%s10108_s1 + $0x4e4] ss:$8 sps:$4 sm:$0xff]  }
 0x110   : > { %5320 = vmatpush1.bf16.msra.mxu0 %v7287_v43  ;;  %4754 = vmatprep.subr.bf16.mxu1 %v7292_v44  ;;  %v7383_v43 = vld [vmem:[%s10108_s1 + $0xde4] ss:$8 sps:$4 sm:$0xff]   ;;  %v7376_v44 = vld [vmem:[%s10108_s1 + $0x4e0] ss:$8 sps:$4 sm:$0xff]  }
 0x111   : > { %5321 = vmatprep.subr.bf16.mxu0 %v7295_v45  ;;  %4731 = vmatprep.mubr.bf16.mxu1 %v7356_v46  ;;  %v7381_v45 = vld [vmem:[%s10108_s1 + $0xde0] ss:$8 sps:$4 sm:$0xff]   ;;  %v7388_v46 = vld [vmem:[%s10108_s1 + $0x4f4] ss:$8 sps:$4 sm:$0xff]  }
 0x112   : > { %5298 = vmatprep.mubr.bf16.mxu0 %v7361_v47  ;;  %v7391_v47 = vld [vmem:[%s10108_s1 + $0xdf4] ss:$8 sps:$4 sm:$0xff]  }
 0x113   : > { %4755 = vmatpush1.bf16.msra.mxu1 %v7290_v48  ;;  %v7386_v48 = vld [vmem:[%s10108_s1 + $0x4f0] ss:$8 sps:$4 sm:$0xff]  }
 0x114   : > { %5322 = vmatpush1.bf16.msra.mxu0 %v7293_v49  ;;  %4756 = vmatprep.subr.bf16.mxu1 %v7298_v50  ;;  %v7389_v49 = vld [vmem:[%s10108_s1 + $0xdf0] ss:$8 sps:$4 sm:$0xff]   ;;  %v7397_v50 = vld [vmem:[%s10108_s1 + $0x504] ss:$8 sps:$4 sm:$0xff]  }
 0x115   : > { %5323 = vmatprep.subr.bf16.mxu0 %v7301_v51  ;;  %v7403_v51 = vld [vmem:[%s10108_s1 + $0xe04] ss:$8 sps:$4 sm:$0xff]  }
 0x116   : > { %4732 = vmatmul.mubr.bf16.gmra.mrb[4].mxu1 %v7366_v54  ;;  %v7398_v54 = vld [vmem:[%s8191_s10 + $0x68] ss:$152 sps:$4 sm:$0xff]  }
 0x117   : > { %5299 = vmatmul.mubr.bf16.gmra.mrb[4].mxu0 %v7367_v55  ;;  %4757 = vmatpush1.bf16.msra.mxu1 %v7296_v52  ;;  %v7392_v52 = vld [vmem:[%s8191_s10 + $0x20] ss:$152 sps:$4 sm:$0xff]  }
 0x118   : > { %5324 = vmatpush1.bf16.msra.mxu0 %v7299_v53  ;;  %4758 = vmatprep.subr.bf16.mxu1 %v7304_v56  ;;  %v7395_v53 = vld [vmem:[%s10108_s1 + $0x500] ss:$8 sps:$4 sm:$0xff]   ;;  %v7406_v56 = vld [vmem:[%s10108_s1 + $0x514] ss:$8 sps:$4 sm:$0xff]  }
 0x119   : > { %5325 = vmatprep.subr.bf16.mxu0 %v7307_v57  ;;  %4741 = vmatprep.mubr.bf16.mxu1 %v7374_v58  ;;  %v7401_v55 = vld [vmem:[%s10108_s1 + $0xe00] ss:$8 sps:$4 sm:$0xff]   ;;  %v7409_v57 = vld [vmem:[%s10108_s1 + $0xe14] ss:$8 sps:$4 sm:$0xff]  }
 0x11a   : > { %5308 = vmatprep.mubr.bf16.mxu0 %v7379_v59  ;;  %v7470_v58 = vld [vmem:[%s8191_s10 + $0x154] ss:$152 sps:$4 sm:$0xff]  }
 0x11b   : > { %4759 = vmatpush1.bf16.msra.mxu1 %v7302_v60  ;;  %v7475_v59 = vld [vmem:[%s8191_s10 + $0x19c] ss:$152 sps:$4 sm:$0xff]   ;;  %v7404_v60 = vld [vmem:[%s10108_s1 + $0x510] ss:$8 sps:$4 sm:$0xff]  }
 0x11c   : > { %5326 = vmatpush1.bf16.msra.mxu0 %v7305_v61  ;;  %4760 = vmatprep.subr.bf16.mxu1 %v7310_v62  ;;  %v7407_v61 = vld [vmem:[%s10108_s1 + $0xe10] ss:$8 sps:$4 sm:$0xff]   ;;  %v7412_v62 = vld [vmem:[%s10108_s1 + $0x524] ss:$8 sps:$4 sm:$0xff]  }
 0x11d   : > { %5327 = vmatprep.subr.bf16.mxu0 %v7313_v63  ;;  %v7415_v63 = vld [vmem:[%s10108_s1 + $0xe24] ss:$8 sps:$4 sm:$0xff]  }
 0x11e   : > { %4742 = vmatmul.mubr.bf16.gmra.mrb[8].mxu1 %v7384_v2  ;;  %v7480_v2 = vld [vmem:[%s8191_s10 + $0x150] ss:$152 sps:$4 sm:$0xff]  }
 0x11f   : > { %5309 = vmatmul.mubr.bf16.gmra.mrb[8].mxu0 %v7385_v3  ;;  %4761 = vmatpush1.bf16.msra.mxu1 %v7308_v0  ;;  %v7410_v0 = vld [vmem:[%s10108_s1 + $0x520] ss:$8 sps:$4 sm:$0xff]   ;;  %v7481_v3 = vld [vmem:[%s8191_s10 + $0x198] ss:$152 sps:$4 sm:$0xff]  }
 0x120   : > { %5328 = vmatpush1.bf16.msra.mxu0 %v7311_v1  ;;  %4762 = vmatprep.subr.bf16.mxu1 %v7316_v4  ;;  %v7413_v1 = vld [vmem:[%s10108_s1 + $0xe20] ss:$8 sps:$4 sm:$0xff]   ;;  %v7418_v4 = vld [vmem:[%s10108_s1 + $0x534] ss:$8 sps:$4 sm:$0xff]  }
 0x121   : > { %5329 = vmatprep.subr.bf16.mxu0 %v7319_v5  ;;  %4784 = vmatprep.mubr.bf16.mxu1 %v7394_v6  ;;  %v7421_v5 = vld [vmem:[%s10108_s1 + $0xe34] ss:$8 sps:$4 sm:$0xff]  }
 0x122   : > { %5351 = vmatprep.mubr.bf16.mxu0 %v7400_v7  ;;  %v7488_v6 = vld [vmem:[%s8191_s10 + $0x284] ss:$152 sps:$4 sm:$0xff]  }
 0x123   : > { %4763 = vmatpush1.bf16.msra.mxu1 %v7314_v8  ;;  %v7493_v7 = vld [vmem:[%s8191_s10 + $0x2cc] ss:$152 sps:$4 sm:$0xff]   ;;  %v7416_v8 = vld [vmem:[%s10108_s1 + $0x530] ss:$8 sps:$4 sm:$0xff]  }
 0x124   : > { %5330 = vmatpush1.bf16.msra.mxu0 %v7317_v9  ;;  %4764 = vmatprep.subr.bf16.mxu1 %v7322_v10  ;;  %v7419_v9 = vld [vmem:[%s10108_s1 + $0xe30] ss:$8 sps:$4 sm:$0xff]   ;;  %v7424_v10 = vld [vmem:[%s10108_s1 + $0x544] ss:$8 sps:$4 sm:$0xff]  }
 0x125   : > { %5331 = vmatprep.subr.bf16.mxu0 %v7325_v11  ;;  %v7427_v11 = vld [vmem:[%s10108_s1 + $0xe44] ss:$8 sps:$4 sm:$0xff]  }
 0x127   : > { %4765 = vmatpush1.bf16.msra.mxu1 %v7320_v12  ;;  %v7422_v12 = vld [vmem:[%s10108_s1 + $0x540] ss:$8 sps:$4 sm:$0xff]  }
 0x128   : > { %5332 = vmatpush1.bf16.msra.mxu0 %v7323_v13  ;;  %4766 = vmatprep.subr.bf16.mxu1 %v7328_v14  ;;  %v7425_v13 = vld [vmem:[%s10108_s1 + $0xe40] ss:$8 sps:$4 sm:$0xff]  }
 0x129   : > { %5333 = vmatprep.subr.bf16.mxu0 %v7331_v15  ;;  %v7498_v14 = vld [vmem:[%s8191_s10 + $0x280] ss:$152 sps:$4 sm:$0xff]  }
 0x12a   : > { %v7499_v15 = vld [vmem:[%s8191_s10 + $0x2c8] ss:$152 sps:$4 sm:$0xff]  }
 0x12b   : > { %4767 = vmatpush1.bf16.msra.mxu1 %v7326_v16  ;;  %v7430_v16 = vld [vmem:[%s10108_s1 + $0x554] ss:$8 sps:$4 sm:$0xff]  }
 0x12c   : > { %5334 = vmatpush1.bf16.msra.mxu0 %v7329_v17  ;;  %4768 = vmatprep.subr.bf16.mxu1 %v7334_v18  ;;  %v7433_v17 = vld [vmem:[%s10108_s1 + $0xe54] ss:$8 sps:$4 sm:$0xff]   ;;  %v7508_v18 = vld [vmem:[%s8191_s10 + $0x2c] ss:$152 sps:$4 sm:$0xff]  }
 0x12d   : > { %5335 = vmatprep.subr.bf16.mxu0 %v7337_v19  ;;  %v7514_v19 = vld [vmem:[%s8191_s10 + $0x74] ss:$152 sps:$4 sm:$0xff]  }
 0x12f   : > { %4769 = vmatpush1.bf16.msra.mxu1 %v7332_v20  ;;  %v7428_v20 = vld [vmem:[%s10108_s1 + $0x550] ss:$8 sps:$4 sm:$0xff]  }
 0x130   : > { %5336 = vmatpush1.bf16.msra.mxu0 %v7335_v21  ;;  %4770 = vmatprep.subr.bf16.mxu1 %v7340_v22  ;;  %v7431_v21 = vld [vmem:[%s10108_s1 + $0xe50] ss:$8 sps:$4 sm:$0xff]   ;;  %v7436_v22 = vld [vmem:[%s10108_s1 + $0x564] ss:$8 sps:$4 sm:$0xff]  }
 0x131   : > { %5337 = vmatprep.subr.bf16.mxu0 %v7343_v23  ;;  %v7439_v23 = vld [vmem:[%s10108_s1 + $0xe64] ss:$8 sps:$4 sm:$0xff]  }
 0x133   : > { %4771 = vmatpush1.bf16.msra.mxu1 %v7338_v24  ;;  %v7434_v24 = vld [vmem:[%s10108_s1 + $0x560] ss:$8 sps:$4 sm:$0xff]  }
 0x134   : > { %5338 = vmatpush1.bf16.msra.mxu0 %v7341_v25  ;;  %4772 = vmatprep.subr.bf16.mxu1 %v7346_v26  ;;  %v7437_v25 = vld [vmem:[%s10108_s1 + $0xe60] ss:$8 sps:$4 sm:$0xff]   ;;  %v7442_v26 = vld [vmem:[%s10108_s1 + $0x574] ss:$8 sps:$4 sm:$0xff]  }
 0x135   : > { %5339 = vmatprep.subr.bf16.mxu0 %v7349_v27  ;;  %v7445_v27 = vld [vmem:[%s10108_s1 + $0xe74] ss:$8 sps:$4 sm:$0xff]  }
 0x137   : > { %4773 = vmatpush1.bf16.msra.mxu1 %v7344_v28  ;;  %v7440_v28 = vld [vmem:[%s10108_s1 + $0x570] ss:$8 sps:$4 sm:$0xff]  }
 0x138   : > { %5340 = vmatpush1.bf16.msra.mxu0 %v7347_v29  ;;  %4774 = vmatprep.subr.bf16.mxu1 %v7352_v30  ;;  %v7443_v29 = vld [vmem:[%s10108_s1 + $0xe70] ss:$8 sps:$4 sm:$0xff]   ;;  %v7448_v30 = vld [vmem:[%s10108_s1 + $0x584] ss:$8 sps:$4 sm:$0xff]  }
 0x139   : > { %5341 = vmatprep.subr.bf16.mxu0 %v7355_v31  ;;  %v7451_v31 = vld [vmem:[%s10108_s1 + $0xe84] ss:$8 sps:$4 sm:$0xff]  }
 0x13b   : > { %4775 = vmatpush1.bf16.msra.mxu1 %v7350_v32  ;;  %v7446_v32 = vld [vmem:[%s10108_s1 + $0x580] ss:$8 sps:$4 sm:$0xff]  }
 0x13c   : > { %5342 = vmatpush1.bf16.msra.mxu0 %v7353_v33  ;;  %4776 = vmatprep.subr.bf16.mxu1 %v7360_v34  ;;  %v7449_v33 = vld [vmem:[%s10108_s1 + $0xe80] ss:$8 sps:$4 sm:$0xff]   ;;  %v7454_v34 = vld [vmem:[%s10108_s1 + $0x594] ss:$8 sps:$4 sm:$0xff]  }
 0x13d   : > { %5343 = vmatprep.subr.bf16.mxu0 %v7365_v35  ;;  %v7457_v35 = vld [vmem:[%s10108_s1 + $0xe94] ss:$8 sps:$4 sm:$0xff]  }
 0x13f   : > { %4777 = vmatpush1.bf16.msra.mxu1 %v7358_v36  ;;  %v7452_v36 = vld [vmem:[%s10108_s1 + $0x590] ss:$8 sps:$4 sm:$0xff]  }
 0x140   : > { %5344 = vmatpush1.bf16.msra.mxu0 %v7363_v37  ;;  %4778 = vmatprep.subr.bf16.mxu1 %v7370_v38  ;;  %v7455_v37 = vld [vmem:[%s10108_s1 + $0xe90] ss:$8 sps:$4 sm:$0xff]   ;;  %v7460_v38 = vld [vmem:[%s10108_s1 + $0x5a4] ss:$8 sps:$4 sm:$0xff]  }
 0x141   : > { %5345 = vmatprep.subr.bf16.mxu0 %v7373_v39  ;;  %v7463_v39 = vld [vmem:[%s10108_s1 + $0xea4] ss:$8 sps:$4 sm:$0xff]  }
 0x143   : > { %4779 = vmatpush1.bf16.msra.mxu1 %v7368_v40  ;;  %v7458_v40 = vld [vmem:[%s10108_s1 + $0x5a0] ss:$8 sps:$4 sm:$0xff]  }
 0x144   : > { %5346 = vmatpush1.bf16.msra.mxu0 %v7371_v41  ;;  %4780 = vmatprep.subr.bf16.mxu1 %v7378_v42  ;;  %v7461_v41 = vld [vmem:[%s10108_s1 + $0xea0] ss:$8 sps:$4 sm:$0xff]   ;;  %v7466_v42 = vld [vmem:[%s10108_s1 + $0x5b4] ss:$8 sps:$4 sm:$0xff]  }
 0x145   : > { %5347 = vmatprep.subr.bf16.mxu0 %v7383_v43  ;;  %v7469_v43 = vld [vmem:[%s10108_s1 + $0xeb4] ss:$8 sps:$4 sm:$0xff]  }
 0x147   : > { %4781 = vmatpush1.bf16.msra.mxu1 %v7376_v44  ;;  %v7464_v44 = vld [vmem:[%s10108_s1 + $0x5b0] ss:$8 sps:$4 sm:$0xff]  }
 0x148   : > { %5348 = vmatpush1.bf16.msra.mxu0 %v7381_v45  ;;  %4782 = vmatprep.subr.bf16.mxu1 %v7388_v46  ;;  %v7467_v45 = vld [vmem:[%s10108_s1 + $0xeb0] ss:$8 sps:$4 sm:$0xff]   ;;  %v7474_v46 = vld [vmem:[%s10108_s1 + $0x5c4] ss:$8 sps:$4 sm:$0xff]  }
 0x149   : > { %5349 = vmatprep.subr.bf16.mxu0 %v7391_v47  ;;  %v7479_v47 = vld [vmem:[%s10108_s1 + $0xec4] ss:$8 sps:$4 sm:$0xff]  }
 0x14b   : > { %4783 = vmatpush1.bf16.msra.mxu1 %v7386_v48  ;;  %v7472_v48 = vld [vmem:[%s10108_s1 + $0x5c0] ss:$8 sps:$4 sm:$0xff]  }
 0x14c   : > { %5350 = vmatpush1.bf16.msra.mxu0 %v7389_v49  ;;  %4815 = vmatprep.subr.bf16.mxu1 %v7397_v50  ;;  %v7477_v49 = vld [vmem:[%s10108_s1 + $0xec0] ss:$8 sps:$4 sm:$0xff]   ;;  %v7484_v50 = vld [vmem:[%s10108_s1 + $0x5d4] ss:$8 sps:$4 sm:$0xff]  }
 0x14d   : > { %5382 = vmatprep.subr.bf16.mxu0 %v7403_v51  ;;  %v7487_v51 = vld [vmem:[%s10108_s1 + $0xed4] ss:$8 sps:$4 sm:$0xff]  }
 0x14e   : > { %4785 = vmatmul.mubr.bf16.vlgmr.msra.gmra.mrb[0].mxu1 %v7392_v52  ;;  %v7482_v52 = vld [vmem:[%s10108_s1 + $0x5d0] ss:$8 sps:$4 sm:$0xff]  }
 0x14f   : > { %5352 = vmatmul.mubr.bf16.vlgmr.msra.gmra.mrb[0].mxu0 %v7398_v54  ;;  %4816 = vmatpush1.bf16.msra.mxu1 %v7395_v53  ;;  %v7485_v53 = vld [vmem:[%s10108_s1 + $0xed0] ss:$8 sps:$4 sm:$0xff]   ;;  %v7492_v54 = vld [vmem:[%s10108_s1 + $0x5e4] ss:$8 sps:$4 sm:$0xff]  }
 0x150   : > { %5383 = vmatpush1.bf16.msra.mxu0 %v7401_v55  ;;  %4817 = vmatprep.subr.bf16.mxu1 %v7406_v56  ;;  %v7497_v55 = vld [vmem:[%s10108_s1 + $0xee4] ss:$8 sps:$4 sm:$0xff]   ;;  %v7490_v56 = vld [vmem:[%s10108_s1 + $0x5e0] ss:$8 sps:$4 sm:$0xff]  }
 0x151   : > { %5384 = vmatprep.subr.bf16.mxu0 %v7409_v57  ;;  %4794 = vmatprep.mubr.bf16.mxu1 %v7470_v58  ;;  %v7495_v57 = vld [vmem:[%s10108_s1 + $0xee0] ss:$8 sps:$4 sm:$0xff]   ;;  %v7502_v58 = vld [vmem:[%s10108_s1 + $0x5f4] ss:$8 sps:$4 sm:$0xff]  }
 0x152   : > { %5361 = vmatprep.mubr.bf16.mxu0 %v7475_v59  ;;  %v7505_v59 = vld [vmem:[%s10108_s1 + $0xef4] ss:$8 sps:$4 sm:$0xff]  }
 0x153   : > { %4818 = vmatpush1.bf16.msra.mxu1 %v7404_v60  ;;  %v7500_v60 = vld [vmem:[%s10108_s1 + $0x5f0] ss:$8 sps:$4 sm:$0xff]  }
 0x154   : > { %5385 = vmatpush1.bf16.msra.mxu0 %v7407_v61  ;;  %4819 = vmatprep.subr.bf16.mxu1 %v7412_v62  ;;  %v7503_v61 = vld [vmem:[%s10108_s1 + $0xef0] ss:$8 sps:$4 sm:$0xff]   ;;  %v7511_v62 = vld [vmem:[%s10108_s1 + $0x604] ss:$8 sps:$4 sm:$0xff]  }
 0x155   : > { %5386 = vmatprep.subr.bf16.mxu0 %v7415_v63  ;;  %v7517_v63 = vld [vmem:[%s10108_s1 + $0xf04] ss:$8 sps:$4 sm:$0xff]  }
 0x156   : > { %4795 = vmatmul.mubr.bf16.gmra.mrb[4].mxu1 %v7480_v2  ;;  %v7512_v2 = vld [vmem:[%s8191_s10 + $0x70] ss:$152 sps:$4 sm:$0xff]  }
 0x157   : > { %5362 = vmatmul.mubr.bf16.gmra.mrb[4].mxu0 %v7481_v3  ;;  %4820 = vmatpush1.bf16.msra.mxu1 %v7410_v0  ;;  %v7506_v0 = vld [vmem:[%s8191_s10 + $0x28] ss:$152 sps:$4 sm:$0xff]  }
 0x158   : > { %5387 = vmatpush1.bf16.msra.mxu0 %v7413_v1  ;;  %4821 = vmatprep.subr.bf16.mxu1 %v7418_v4  ;;  %v7509_v1 = vld [vmem:[%s10108_s1 + $0x600] ss:$8 sps:$4 sm:$0xff]   ;;  %v7520_v4 = vld [vmem:[%s10108_s1 + $0x614] ss:$8 sps:$4 sm:$0xff]  }
 0x159   : > { %5388 = vmatprep.subr.bf16.mxu0 %v7421_v5  ;;  %4804 = vmatprep.mubr.bf16.mxu1 %v7488_v6  ;;  %v7515_v3 = vld [vmem:[%s10108_s1 + $0xf00] ss:$8 sps:$4 sm:$0xff]   ;;  %v7523_v5 = vld [vmem:[%s10108_s1 + $0xf14] ss:$8 sps:$4 sm:$0xff]  }
 0x15a   : > { %5371 = vmatprep.mubr.bf16.mxu0 %v7493_v7  ;;  %v7584_v6 = vld [vmem:[%s8191_s10 + $0x15c] ss:$152 sps:$4 sm:$0xff]  }
 0x15b   : > { %4822 = vmatpush1.bf16.msra.mxu1 %v7416_v8  ;;  %v7589_v7 = vld [vmem:[%s8191_s10 + $0x1a4] ss:$152 sps:$4 sm:$0xff]   ;;  %v7518_v8 = vld [vmem:[%s10108_s1 + $0x610] ss:$8 sps:$4 sm:$0xff]  }
 0x15c   : > { %5389 = vmatpush1.bf16.msra.mxu0 %v7419_v9  ;;  %4823 = vmatprep.subr.bf16.mxu1 %v7424_v10  ;;  %v7521_v9 = vld [vmem:[%s10108_s1 + $0xf10] ss:$8 sps:$4 sm:$0xff]   ;;  %v7526_v10 = vld [vmem:[%s10108_s1 + $0x624] ss:$8 sps:$4 sm:$0xff]  }
 0x15d   : > { %5390 = vmatprep.subr.bf16.mxu0 %v7427_v11  ;;  %v7529_v11 = vld [vmem:[%s10108_s1 + $0xf24] ss:$8 sps:$4 sm:$0xff]  }
 0x15e   : > { %4805 = vmatmul.mubr.bf16.gmra.mrb[8].mxu1 %v7498_v14  ;;  %v7595_v14 = vld [vmem:[%s8191_s10 + $0x1a0] ss:$152 sps:$4 sm:$0xff]  }
 0x15f   : > { %5372 = vmatmul.mubr.bf16.gmra.mrb[8].mxu0 %v7499_v15  ;;  %4824 = vmatpush1.bf16.msra.mxu1 %v7422_v12  ;;  %v7524_v12 = vld [vmem:[%s10108_s1 + $0x620] ss:$8 sps:$4 sm:$0xff]  }
 0x160   : > { %5391 = vmatpush1.bf16.msra.mxu0 %v7425_v13  ;;  %4825 = vmatprep.subr.bf16.mxu1 %v7430_v16  ;;  %v7594_v13 = vld [vmem:[%s8191_s10 + $0x158] ss:$152 sps:$4 sm:$0xff]   ;;  %v7527_v15 = vld [vmem:[%s10108_s1 + $0xf20] ss:$8 sps:$4 sm:$0xff]   ;;  %v7532_v16 = vld [vmem:[%s10108_s1 + $0x634] ss:$8 sps:$4 sm:$0xff]  }
 0x161   : > { %5392 = vmatprep.subr.bf16.mxu0 %v7433_v17  ;;  %4847 = vmatprep.mubr.bf16.mxu1 %v7508_v18  ;;  %v7535_v17 = vld [vmem:[%s10108_s1 + $0xf34] ss:$8 sps:$4 sm:$0xff]   ;;  %v7602_v18 = vld [vmem:[%s8191_s10 + $0x28c] ss:$152 sps:$4 sm:$0xff]  }
 0x162   : > { %5414 = vmatprep.mubr.bf16.mxu0 %v7514_v19  ;;  %v7607_v19 = vld [vmem:[%s8191_s10 + $0x2d4] ss:$152 sps:$4 sm:$0xff]  }
 0x163   : > { %4826 = vmatpush1.bf16.msra.mxu1 %v7428_v20  ;;  %v7530_v20 = vld [vmem:[%s10108_s1 + $0x630] ss:$8 sps:$4 sm:$0xff]  }
 0x164   : > { %5393 = vmatpush1.bf16.msra.mxu0 %v7431_v21  ;;  %4827 = vmatprep.subr.bf16.mxu1 %v7436_v22  ;;  %v7533_v21 = vld [vmem:[%s10108_s1 + $0xf30] ss:$8 sps:$4 sm:$0xff]   ;;  %v7538_v22 = vld [vmem:[%s10108_s1 + $0x644] ss:$8 sps:$4 sm:$0xff]  }
 0x165   : > { %5394 = vmatprep.subr.bf16.mxu0 %v7439_v23  ;;  %v7541_v23 = vld [vmem:[%s10108_s1 + $0xf44] ss:$8 sps:$4 sm:$0xff]  }
 0x167   : > { %4828 = vmatpush1.bf16.msra.mxu1 %v7434_v24  ;;  %v7536_v24 = vld [vmem:[%s10108_s1 + $0x640] ss:$8 sps:$4 sm:$0xff]  }
 0x168   : > { %5395 = vmatpush1.bf16.msra.mxu0 %v7437_v25  ;;  %4829 = vmatprep.subr.bf16.mxu1 %v7442_v26  ;;  %v7539_v25 = vld [vmem:[%s10108_s1 + $0xf40] ss:$8 sps:$4 sm:$0xff]  }
 0x169   : > { %5396 = vmatprep.subr.bf16.mxu0 %v7445_v27  ;;  %v7612_v26 = vld [vmem:[%s8191_s10 + $0x288] ss:$152 sps:$4 sm:$0xff]  }
 0x16a   : > { %v7613_v27 = vld [vmem:[%s8191_s10 + $0x2d0] ss:$152 sps:$4 sm:$0xff]  }
 0x16b   : > { %4830 = vmatpush1.bf16.msra.mxu1 %v7440_v28  ;;  %v7544_v28 = vld [vmem:[%s10108_s1 + $0x654] ss:$8 sps:$4 sm:$0xff]  }
 0x16c   : > { %5397 = vmatpush1.bf16.msra.mxu0 %v7443_v29  ;;  %4831 = vmatprep.subr.bf16.mxu1 %v7448_v30  ;;  %v7547_v29 = vld [vmem:[%s10108_s1 + $0xf54] ss:$8 sps:$4 sm:$0xff]  }
 0x16d   : > { %5398 = vmatprep.subr.bf16.mxu0 %v7451_v31  ;;  %v7622_v30 = vld [vmem:[%s8191_s10 + $0x34] ss:$152 sps:$4 sm:$0xff]  }
 0x16e   : > { %v7628_v31 = vld [vmem:[%s8191_s10 + $0x7c] ss:$152 sps:$4 sm:$0xff]  }
 0x16f   : > { %4832 = vmatpush1.bf16.msra.mxu1 %v7446_v32  ;;  %v7542_v32 = vld [vmem:[%s10108_s1 + $0x650] ss:$8 sps:$4 sm:$0xff]  }
 0x170   : > { %5399 = vmatpush1.bf16.msra.mxu0 %v7449_v33  ;;  %4833 = vmatprep.subr.bf16.mxu1 %v7454_v34  ;;  %v7545_v33 = vld [vmem:[%s10108_s1 + $0xf50] ss:$8 sps:$4 sm:$0xff]   ;;  %v7550_v34 = vld [vmem:[%s10108_s1 + $0x664] ss:$8 sps:$4 sm:$0xff]  }
 0x171   : > { %5400 = vmatprep.subr.bf16.mxu0 %v7457_v35  ;;  %v7553_v35 = vld [vmem:[%s10108_s1 + $0xf64] ss:$8 sps:$4 sm:$0xff]  }
 0x173   : > { %4834 = vmatpush1.bf16.msra.mxu1 %v7452_v36  ;;  %v7548_v36 = vld [vmem:[%s10108_s1 + $0x660] ss:$8 sps:$4 sm:$0xff]  }
 0x174   : > { %5401 = vmatpush1.bf16.msra.mxu0 %v7455_v37  ;;  %4835 = vmatprep.subr.bf16.mxu1 %v7460_v38  ;;  %v7551_v37 = vld [vmem:[%s10108_s1 + $0xf60] ss:$8 sps:$4 sm:$0xff]   ;;  %v7556_v38 = vld [vmem:[%s10108_s1 + $0x674] ss:$8 sps:$4 sm:$0xff]  }
 0x175   : > { %5402 = vmatprep.subr.bf16.mxu0 %v7463_v39  ;;  %v7559_v39 = vld [vmem:[%s10108_s1 + $0xf74] ss:$8 sps:$4 sm:$0xff]  }
 0x177   : > { %4836 = vmatpush1.bf16.msra.mxu1 %v7458_v40  ;;  %v7554_v40 = vld [vmem:[%s10108_s1 + $0x670] ss:$8 sps:$4 sm:$0xff]  }
 0x178   : > { %5403 = vmatpush1.bf16.msra.mxu0 %v7461_v41  ;;  %4837 = vmatprep.subr.bf16.mxu1 %v7466_v42  ;;  %v7557_v41 = vld [vmem:[%s10108_s1 + $0xf70] ss:$8 sps:$4 sm:$0xff]   ;;  %v7562_v42 = vld [vmem:[%s10108_s1 + $0x684] ss:$8 sps:$4 sm:$0xff]  }
 0x179   : > { %5404 = vmatprep.subr.bf16.mxu0 %v7469_v43  ;;  %v7565_v43 = vld [vmem:[%s10108_s1 + $0xf84] ss:$8 sps:$4 sm:$0xff]  }
 0x17b   : > { %4838 = vmatpush1.bf16.msra.mxu1 %v7464_v44  ;;  %v7560_v44 = vld [vmem:[%s10108_s1 + $0x680] ss:$8 sps:$4 sm:$0xff]  }
 0x17c   : > { %5405 = vmatpush1.bf16.msra.mxu0 %v7467_v45  ;;  %4839 = vmatprep.subr.bf16.mxu1 %v7474_v46  ;;  %v7563_v45 = vld [vmem:[%s10108_s1 + $0xf80] ss:$8 sps:$4 sm:$0xff]   ;;  %v7568_v46 = vld [vmem:[%s10108_s1 + $0x694] ss:$8 sps:$4 sm:$0xff]  }
 0x17d   : > { %5406 = vmatprep.subr.bf16.mxu0 %v7479_v47  ;;  %v7571_v47 = vld [vmem:[%s10108_s1 + $0xf94] ss:$8 sps:$4 sm:$0xff]  }
 0x17f   : > { %4840 = vmatpush1.bf16.msra.mxu1 %v7472_v48  ;;  %v7566_v48 = vld [vmem:[%s10108_s1 + $0x690] ss:$8 sps:$4 sm:$0xff]  }
 0x180   : > { %5407 = vmatpush1.bf16.msra.mxu0 %v7477_v49  ;;  %4841 = vmatprep.subr.bf16.mxu1 %v7484_v50  ;;  %v7569_v49 = vld [vmem:[%s10108_s1 + $0xf90] ss:$8 sps:$4 sm:$0xff]   ;;  %v7574_v50 = vld [vmem:[%s10108_s1 + $0x6a4] ss:$8 sps:$4 sm:$0xff]  }
 0x181   : > { %5408 = vmatprep.subr.bf16.mxu0 %v7487_v51  ;;  %v7577_v51 = vld [vmem:[%s10108_s1 + $0xfa4] ss:$8 sps:$4 sm:$0xff]  }
 0x183   : > { %4842 = vmatpush1.bf16.msra.mxu1 %v7482_v52  ;;  %v7572_v52 = vld [vmem:[%s10108_s1 + $0x6a0] ss:$8 sps:$4 sm:$0xff]  }
 0x184   : > { %5409 = vmatpush1.bf16.msra.mxu0 %v7485_v53  ;;  %4843 = vmatprep.subr.bf16.mxu1 %v7492_v54  ;;  %v7575_v53 = vld [vmem:[%s10108_s1 + $0xfa0] ss:$8 sps:$4 sm:$0xff]   ;;  %v7580_v54 = vld [vmem:[%s10108_s1 + $0x6b4] ss:$8 sps:$4 sm:$0xff]  }
 0x185   : > { %5410 = vmatprep.subr.bf16.mxu0 %v7497_v55  ;;  %v7583_v55 = vld [vmem:[%s10108_s1 + $0xfb4] ss:$8 sps:$4 sm:$0xff]  }
 0x187   : > { %4844 = vmatpush1.bf16.msra.mxu1 %v7490_v56  ;;  %v7578_v56 = vld [vmem:[%s10108_s1 + $0x6b0] ss:$8 sps:$4 sm:$0xff]  }
 0x188   : > { %5411 = vmatpush1.bf16.msra.mxu0 %v7495_v57  ;;  %4845 = vmatprep.subr.bf16.mxu1 %v7502_v58  ;;  %v7581_v57 = vld [vmem:[%s10108_s1 + $0xfb0] ss:$8 sps:$4 sm:$0xff]   ;;  %v7588_v58 = vld [vmem:[%s10108_s1 + $0x6c4] ss:$8 sps:$4 sm:$0xff]  }
 0x189   : > { %5412 = vmatprep.subr.bf16.mxu0 %v7505_v59  ;;  %v7593_v59 = vld [vmem:[%s10108_s1 + $0xfc4] ss:$8 sps:$4 sm:$0xff]  }
 0x18b   : > { %4846 = vmatpush1.bf16.msra.mxu1 %v7500_v60  ;;  %v7586_v60 = vld [vmem:[%s10108_s1 + $0x6c0] ss:$8 sps:$4 sm:$0xff]  }
 0x18c   : > { %5413 = vmatpush1.bf16.msra.mxu0 %v7503_v61  ;;  %4878 = vmatprep.subr.bf16.mxu1 %v7511_v62  ;;  %v7591_v61 = vld [vmem:[%s10108_s1 + $0xfc0] ss:$8 sps:$4 sm:$0xff]   ;;  %v7598_v62 = vld [vmem:[%s10108_s1 + $0x6d4] ss:$8 sps:$4 sm:$0xff]  }
 0x18d   : > { %5445 = vmatprep.subr.bf16.mxu0 %v7517_v63  ;;  %v7601_v63 = vld [vmem:[%s10108_s1 + $0xfd4] ss:$8 sps:$4 sm:$0xff]  }
 0x18e   : > { %4848 = vmatmul.mubr.bf16.vlgmr.msra.gmra.mrb[0].mxu1 %v7506_v0  ;;  %v7596_v0 = vld [vmem:[%s10108_s1 + $0x6d0] ss:$8 sps:$4 sm:$0xff]  }
 0x18f   : > { %5415 = vmatmul.mubr.bf16.vlgmr.msra.gmra.mrb[0].mxu0 %v7512_v2  ;;  %4879 = vmatpush1.bf16.msra.mxu1 %v7509_v1  ;;  %v7599_v1 = vld [vmem:[%s10108_s1 + $0xfd0] ss:$8 sps:$4 sm:$0xff]   ;;  %v7606_v2 = vld [vmem:[%s10108_s1 + $0x6e4] ss:$8 sps:$4 sm:$0xff]  }
 0x190   : > { %5446 = vmatpush1.bf16.msra.mxu0 %v7515_v3  ;;  %4880 = vmatprep.subr.bf16.mxu1 %v7520_v4  ;;  %v7611_v3 = vld [vmem:[%s10108_s1 + $0xfe4] ss:$8 sps:$4 sm:$0xff]   ;;  %v7604_v4 = vld [vmem:[%s10108_s1 + $0x6e0] ss:$8 sps:$4 sm:$0xff]  }
 0x191   : > { %5447 = vmatprep.subr.bf16.mxu0 %v7523_v5  ;;  %4857 = vmatprep.mubr.bf16.mxu1 %v7584_v6  ;;  %v7609_v5 = vld [vmem:[%s10108_s1 + $0xfe0] ss:$8 sps:$4 sm:$0xff]   ;;  %v7616_v6 = vld [vmem:[%s10108_s1 + $0x6f4] ss:$8 sps:$4 sm:$0xff]  }
 0x192   : > { %5424 = vmatprep.mubr.bf16.mxu0 %v7589_v7  ;;  %v7619_v7 = vld [vmem:[%s10108_s1 + $0xff4] ss:$8 sps:$4 sm:$0xff]  }
 0x193   : > { %4881 = vmatpush1.bf16.msra.mxu1 %v7518_v8  ;;  %v7614_v8 = vld [vmem:[%s10108_s1 + $0x6f0] ss:$8 sps:$4 sm:$0xff]  }
 0x194   : > { %5448 = vmatpush1.bf16.msra.mxu0 %v7521_v9  ;;  %4882 = vmatprep.subr.bf16.mxu1 %v7526_v10  ;;  %v7617_v9 = vld [vmem:[%s10108_s1 + $0xff0] ss:$8 sps:$4 sm:$0xff]   ;;  %v7625_v10 = vld [vmem:[%s10108_s1 + $0x704] ss:$8 sps:$4 sm:$0xff]  }
 0x195   : > { %5449 = vmatprep.subr.bf16.mxu0 %v7529_v11  ;;  %v7631_v11 = vld [vmem:[%s10108_s1 + $0x1004] ss:$8 sps:$4 sm:$0xff]  }
 0x196   : > { %4858 = vmatmul.mubr.bf16.gmra.mrb[4].mxu1 %v7594_v13  ;;  %v7623_v13 = vld [vmem:[%s10108_s1 + $0x700] ss:$8 sps:$4 sm:$0xff]  }
 0x197   : > { %5425 = vmatmul.mubr.bf16.gmra.mrb[4].mxu0 %v7595_v14  ;;  %4883 = vmatpush1.bf16.msra.mxu1 %v7524_v12  ;;  %v7620_v12 = vld [vmem:[%s8191_s10 + $0x30] ss:$152 sps:$4 sm:$0xff]  }
 0x198   : > { %5450 = vmatpush1.bf16.msra.mxu0 %v7527_v15  ;;  %4884 = vmatprep.subr.bf16.mxu1 %v7532_v16  ;;  %v7626_v14 = vld [vmem:[%s8191_s10 + $0x78] ss:$152 sps:$4 sm:$0xff]   ;;  %v7629_v15 = vld [vmem:[%s10108_s1 + $0x1000] ss:$8 sps:$4 sm:$0xff]   ;;  %v7634_v16 = vld [vmem:[%s10108_s1 + $0x714] ss:$8 sps:$4 sm:$0xff]  }
 0x199   : > { %5451 = vmatprep.subr.bf16.mxu0 %v7535_v17  ;;  %4867 = vmatprep.mubr.bf16.mxu1 %v7602_v18  ;;  %v7637_v17 = vld [vmem:[%s10108_s1 + $0x1014] ss:$8 sps:$4 sm:$0xff]   ;;  %v7632_v18 = vld [vmem:[%s10108_s1 + $0x710] ss:$8 sps:$4 sm:$0xff]  }
 0x19a   : > { %5434 = vmatprep.mubr.bf16.mxu0 %v7607_v19  ;;  %v7698_v19 = vld [vmem:[%s8191_s10 + $0x164] ss:$152 sps:$4 sm:$0xff]  }
 0x19b   : > { %4885 = vmatpush1.bf16.msra.mxu1 %v7530_v20  ;;  %v7703_v20 = vld [vmem:[%s8191_s10 + $0x1ac] ss:$152 sps:$4 sm:$0xff]  }
 0x19c   : > { %5452 = vmatpush1.bf16.msra.mxu0 %v7533_v21  ;;  %4886 = vmatprep.subr.bf16.mxu1 %v7538_v22  ;;  %v7635_v21 = vld [vmem:[%s10108_s1 + $0x1010] ss:$8 sps:$4 sm:$0xff]   ;;  %v7640_v22 = vld [vmem:[%s10108_s1 + $0x724] ss:$8 sps:$4 sm:$0xff]  }
 0x19d   : > { %5453 = vmatprep.subr.bf16.mxu0 %v7541_v23  ;;  %v7643_v23 = vld [vmem:[%s10108_s1 + $0x1024] ss:$8 sps:$4 sm:$0xff]  }
 0x19e   : > { %4868 = vmatmul.mubr.bf16.gmra.mrb[8].mxu1 %v7612_v26  ;;  %v7638_v26 = vld [vmem:[%s10108_s1 + $0x720] ss:$8 sps:$4 sm:$0xff]  }
 0x19f   : > { %5435 = vmatmul.mubr.bf16.gmra.mrb[8].mxu0 %v7613_v27  ;;  %4887 = vmatpush1.bf16.msra.mxu1 %v7536_v24  ;;  %v7708_v24 = vld [vmem:[%s8191_s10 + $0x160] ss:$152 sps:$4 sm:$0xff]  }
 0x1a0   : > { %5454 = vmatpush1.bf16.msra.mxu0 %v7539_v25  ;;  %4888 = vmatprep.subr.bf16.mxu1 %v7544_v28  ;;  %v7709_v25 = vld [vmem:[%s8191_s10 + $0x1a8] ss:$152 sps:$4 sm:$0xff]   ;;  %v7646_v28 = vld [vmem:[%s10108_s1 + $0x734] ss:$8 sps:$4 sm:$0xff]  }
 0x1a1   : > { %5455 = vmatprep.subr.bf16.mxu0 %v7547_v29  ;;  %4910 = vmatprep.mubr.bf16.mxu1 %v7622_v30  ;;  %v7641_v27 = vld [vmem:[%s10108_s1 + $0x1020] ss:$8 sps:$4 sm:$0xff]   ;;  %v7649_v29 = vld [vmem:[%s10108_s1 + $0x1034] ss:$8 sps:$4 sm:$0xff]  }
 0x1a2   : > { %5477 = vmatprep.mubr.bf16.mxu0 %v7628_v31  ;;  %v7716_v30 = vld [vmem:[%s8191_s10 + $0x294] ss:$152 sps:$4 sm:$0xff]   ;;  %v7644_v31 = vld [vmem:[%s10108_s1 + $0x730] ss:$8 sps:$4 sm:$0xff]  }
 0x1a3   : > { %4889 = vmatpush1.bf16.msra.mxu1 %v7542_v32  ;;  %v7647_v32 = vld [vmem:[%s10108_s1 + $0x1030] ss:$8 sps:$4 sm:$0xff]  }
 0x1a4   : > { %5456 = vmatpush1.bf16.msra.mxu0 %v7545_v33  ;;  %4890 = vmatprep.subr.bf16.mxu1 %v7550_v34  ;;  %v7721_v33 = vld [vmem:[%s8191_s10 + $0x2dc] ss:$152 sps:$4 sm:$0xff]   ;;  %v7652_v34 = vld [vmem:[%s10108_s1 + $0x744] ss:$8 sps:$4 sm:$0xff]  }
 0x1a5   : > { %5457 = vmatprep.subr.bf16.mxu0 %v7553_v35  ;;  %v7655_v35 = vld [vmem:[%s10108_s1 + $0x1044] ss:$8 sps:$4 sm:$0xff]  }
 0x1a7   : > { %4891 = vmatpush1.bf16.msra.mxu1 %v7548_v36  ;;  %v7726_v36 = vld [vmem:[%s8191_s10 + $0x290] ss:$152 sps:$4 sm:$0xff]  }
 0x1a8   : > { %5458 = vmatpush1.bf16.msra.mxu0 %v7551_v37  ;;  %4892 = vmatprep.subr.bf16.mxu1 %v7556_v38  ;;  %v7727_v37 = vld [vmem:[%s8191_s10 + $0x2d8] ss:$152 sps:$4 sm:$0xff]   ;;  %v7650_v38 = vld [vmem:[%s10108_s1 + $0x740] ss:$8 sps:$4 sm:$0xff]  }
 0x1a9   : > { %5459 = vmatprep.subr.bf16.mxu0 %v7559_v39  ;;  %v7653_v39 = vld [vmem:[%s10108_s1 + $0x1040] ss:$8 sps:$4 sm:$0xff]  }
 0x1ab   : > { %4893 = vmatpush1.bf16.msra.mxu1 %v7554_v40  ;;  %v7658_v40 = vld [vmem:[%s10108_s1 + $0x754] ss:$8 sps:$4 sm:$0xff]  }
 0x1ac   : > { %5460 = vmatpush1.bf16.msra.mxu0 %v7557_v41  ;;  %4894 = vmatprep.subr.bf16.mxu1 %v7562_v42  ;;  %v7661_v41 = vld [vmem:[%s10108_s1 + $0x1054] ss:$8 sps:$4 sm:$0xff]  }
 0x1ad   : > { %5461 = vmatprep.subr.bf16.mxu0 %v7565_v43  ;;  %v7736_v42 = vld [vmem:[%s8191_s10 + $0x3c] ss:$152 sps:$4 sm:$0xff]   ;;  %v7656_v43 = vld [vmem:[%s10108_s1 + $0x750] ss:$8 sps:$4 sm:$0xff]  }
 0x1af   : > { %4895 = vmatpush1.bf16.msra.mxu1 %v7560_v44  ;;  %v7659_v44 = vld [vmem:[%s10108_s1 + $0x1050] ss:$8 sps:$4 sm:$0xff]  }
 0x1b0   : > { %5462 = vmatpush1.bf16.msra.mxu0 %v7563_v45  ;;  %4896 = vmatprep.subr.bf16.mxu1 %v7568_v46  ;;  %v7742_v45 = vld [vmem:[%s8191_s10 + $0x84] ss:$152 sps:$4 sm:$0xff]  }
 0x1b1   : > { %5463 = vmatprep.subr.bf16.mxu0 %v7571_v47  ;;  %v7664_v46 = vld [vmem:[%s10108_s1 + $0x764] ss:$8 sps:$4 sm:$0xff]  }
 0x1b2   : > { %v7667_v47 = vld [vmem:[%s10108_s1 + $0x1064] ss:$8 sps:$4 sm:$0xff]  }
 0x1b3   : > { %4897 = vmatpush1.bf16.msra.mxu1 %v7566_v48  ;;  %v7662_v48 = vld [vmem:[%s10108_s1 + $0x760] ss:$8 sps:$4 sm:$0xff]  }
 0x1b4   : > { %5464 = vmatpush1.bf16.msra.mxu0 %v7569_v49  ;;  %4898 = vmatprep.subr.bf16.mxu1 %v7574_v50  ;;  %v7665_v49 = vld [vmem:[%s10108_s1 + $0x1060] ss:$8 sps:$4 sm:$0xff]   ;;  %v7670_v50 = vld [vmem:[%s10108_s1 + $0x774] ss:$8 sps:$4 sm:$0xff]  }
 0x1b5   : > { %5465 = vmatprep.subr.bf16.mxu0 %v7577_v51  ;;  %v7673_v51 = vld [vmem:[%s10108_s1 + $0x1074] ss:$8 sps:$4 sm:$0xff]  }
 0x1b7   : > { %4899 = vmatpush1.bf16.msra.mxu1 %v7572_v52  ;;  %v7668_v52 = vld [vmem:[%s10108_s1 + $0x770] ss:$8 sps:$4 sm:$0xff]  }
 0x1b8   : > { %5466 = vmatpush1.bf16.msra.mxu0 %v7575_v53  ;;  %4900 = vmatprep.subr.bf16.mxu1 %v7580_v54  ;;  %v7671_v53 = vld [vmem:[%s10108_s1 + $0x1070] ss:$8 sps:$4 sm:$0xff]   ;;  %v7676_v54 = vld [vmem:[%s10108_s1 + $0x784] ss:$8 sps:$4 sm:$0xff]  }
 0x1b9   : > { %5467 = vmatprep.subr.bf16.mxu0 %v7583_v55  ;;  %v7679_v55 = vld [vmem:[%s10108_s1 + $0x1084] ss:$8 sps:$4 sm:$0xff]  }
 0x1bb   : > { %4901 = vmatpush1.bf16.msra.mxu1 %v7578_v56  ;;  %v7674_v56 = vld [vmem:[%s10108_s1 + $0x780] ss:$8 sps:$4 sm:$0xff]  }
 0x1bc   : > { %5468 = vmatpush1.bf16.msra.mxu0 %v7581_v57  ;;  %4902 = vmatprep.subr.bf16.mxu1 %v7588_v58  ;;  %v7677_v57 = vld [vmem:[%s10108_s1 + $0x1080] ss:$8 sps:$4 sm:$0xff]   ;;  %v7682_v58 = vld [vmem:[%s10108_s1 + $0x794] ss:$8 sps:$4 sm:$0xff]  }
 0x1bd   : > { %5469 = vmatprep.subr.bf16.mxu0 %v7593_v59  ;;  %v7685_v59 = vld [vmem:[%s10108_s1 + $0x1094] ss:$8 sps:$4 sm:$0xff]  }
 0x1bf   : > { %4903 = vmatpush1.bf16.msra.mxu1 %v7586_v60  ;;  %v7680_v60 = vld [vmem:[%s10108_s1 + $0x790] ss:$8 sps:$4 sm:$0xff]  }
 0x1c0   : > { %5470 = vmatpush1.bf16.msra.mxu0 %v7591_v61  ;;  %4904 = vmatprep.subr.bf16.mxu1 %v7598_v62  ;;  %v7683_v61 = vld [vmem:[%s10108_s1 + $0x1090] ss:$8 sps:$4 sm:$0xff]   ;;  %v7688_v62 = vld [vmem:[%s10108_s1 + $0x7a4] ss:$8 sps:$4 sm:$0xff]  }
 0x1c1   : > { %5471 = vmatprep.subr.bf16.mxu0 %v7601_v63  ;;  %v7691_v63 = vld [vmem:[%s10108_s1 + $0x10a4] ss:$8 sps:$4 sm:$0xff]  }
 0x1c3   : > { %4905 = vmatpush1.bf16.msra.mxu1 %v7596_v0  ;;  %v7686_v0 = vld [vmem:[%s10108_s1 + $0x7a0] ss:$8 sps:$4 sm:$0xff]  }
 0x1c4   : > { %5472 = vmatpush1.bf16.msra.mxu0 %v7599_v1  ;;  %4906 = vmatprep.subr.bf16.mxu1 %v7606_v2  ;;  %v7689_v1 = vld [vmem:[%s10108_s1 + $0x10a0] ss:$8 sps:$4 sm:$0xff]   ;;  %v7694_v2 = vld [vmem:[%s10108_s1 + $0x7b4] ss:$8 sps:$4 sm:$0xff]  }
 0x1c5   : > { %5473 = vmatprep.subr.bf16.mxu0 %v7611_v3  ;;  %v7697_v3 = vld [vmem:[%s10108_s1 + $0x10b4] ss:$8 sps:$4 sm:$0xff]  }
 0x1c7   : > { %4907 = vmatpush1.bf16.msra.mxu1 %v7604_v4  ;;  %v7692_v4 = vld [vmem:[%s10108_s1 + $0x7b0] ss:$8 sps:$4 sm:$0xff]  }
 0x1c8   : > { %5474 = vmatpush1.bf16.msra.mxu0 %v7609_v5  ;;  %4908 = vmatprep.subr.bf16.mxu1 %v7616_v6  ;;  %v7695_v5 = vld [vmem:[%s10108_s1 + $0x10b0] ss:$8 sps:$4 sm:$0xff]   ;;  %v7702_v6 = vld [vmem:[%s10108_s1 + $0x7c4] ss:$8 sps:$4 sm:$0xff]  }
 0x1c9   : > { %5475 = vmatprep.subr.bf16.mxu0 %v7619_v7  ;;  %v7707_v7 = vld [vmem:[%s10108_s1 + $0x10c4] ss:$8 sps:$4 sm:$0xff]  }
 0x1cb   : > { %4909 = vmatpush1.bf16.msra.mxu1 %v7614_v8  ;;  %v7700_v8 = vld [vmem:[%s10108_s1 + $0x7c0] ss:$8 sps:$4 sm:$0xff]  }
 0x1cc   : > { %5476 = vmatpush1.bf16.msra.mxu0 %v7617_v9  ;;  %4941 = vmatprep.subr.bf16.mxu1 %v7625_v10  ;;  %v7705_v9 = vld [vmem:[%s10108_s1 + $0x10c0] ss:$8 sps:$4 sm:$0xff]   ;;  %v7712_v10 = vld [vmem:[%s10108_s1 + $0x7d4] ss:$8 sps:$4 sm:$0xff]  }
 0x1cd   : > { %5508 = vmatprep.subr.bf16.mxu0 %v7631_v11  ;;  %v7715_v11 = vld [vmem:[%s10108_s1 + $0x10d4] ss:$8 sps:$4 sm:$0xff]  }
 0x1ce   : > { %4911 = vmatmul.mubr.bf16.vlgmr.msra.gmra.mrb[0].mxu1 %v7620_v12  ;;  %v5734_v12 = vld [vmem:[%s10110_s3 + $0x68] sm:$0xff] }
 0x1cf   : > { %5478 = vmatmul.mubr.bf16.vlgmr.msra.gmra.mrb[0].mxu0 %v7626_v14  ;;  %4942 = vmatpush1.bf16.msra.mxu1 %v7623_v13  ;;  %v5736_v13 = vld [vmem:[%s10110_s3 + $0x78] sm:$0xff]  ;;  %5738 = vst.msk [vmem:[%s9659_s28 + $0x68] sm:$0xff] %vm4490_vm0, %v5734_v12  ;;  %v7802_v12 = vld [vmem:[%s10108_s1 + $0x8a4] ss:$8 sps:$4 sm:$0xff]  }
 0x1d0   : > { %5509 = vmatpush1.bf16.msra.mxu0 %v7629_v15  ;;  %4943 = vmatprep.subr.bf16.mxu1 %v7634_v16  ;;  %5740 = vst.msk [vmem:[%s9659_s28 + $0x78] sm:$0xff] %vm4490_vm0, %v5736_v13  ;;  %v7710_v14 = vld [vmem:[%s10108_s1 + $0x7d0] ss:$8 sps:$4 sm:$0xff]   ;;  %v7720_v16 = vld [vmem:[%s10108_s1 + $0x7e4] ss:$8 sps:$4 sm:$0xff]  }
 0x1d1   : > { %5510 = vmatprep.subr.bf16.mxu0 %v7637_v17  ;;  %4920 = vmatprep.mubr.bf16.mxu1 %v7698_v19  ;;  %v7713_v15 = vld [vmem:[%s10108_s1 + $0x10d0] ss:$8 sps:$4 sm:$0xff]   ;;  %v7725_v17 = vld [vmem:[%s10108_s1 + $0x10e4] ss:$8 sps:$4 sm:$0xff]   ;;  %v7723_v19 = vld [vmem:[%s10108_s1 + $0x10e0] ss:$8 sps:$4 sm:$0xff]  }
 0x1d2   : > { %5487 = vmatprep.mubr.bf16.mxu0 %v7703_v20  ;;  %v7730_v20 = vld [vmem:[%s10108_s1 + $0x7f4] ss:$8 sps:$4 sm:$0xff]   ;;  %v7805_v13 = vld [vmem:[%s10108_s1 + $0x11a4] ss:$8 sps:$4 sm:$0xff]  }
 0x1d3   : > { %4944 = vmatpush1.bf16.msra.mxu1 %v7632_v18  ;;  %v7718_v18 = vld [vmem:[%s10108_s1 + $0x7e0] ss:$8 sps:$4 sm:$0xff]  }
 0x1d4   : > { %5511 = vmatpush1.bf16.msra.mxu0 %v7635_v21  ;;  %4945 = vmatprep.subr.bf16.mxu1 %v7640_v22  ;;  %v7733_v21 = vld [vmem:[%s10108_s1 + $0x10f4] ss:$8 sps:$4 sm:$0xff]   ;;  %v7728_v22 = vld [vmem:[%s10108_s1 + $0x7f0] ss:$8 sps:$4 sm:$0xff]  }
 0x1d5   : > { %5512 = vmatprep.subr.bf16.mxu0 %v7643_v23  ;;  %v7731_v23 = vld [vmem:[%s10108_s1 + $0x10f0] ss:$8 sps:$4 sm:$0xff]  }
 0x1d6   : > { %4921 = vmatmul.mubr.bf16.gmra.mrb[4].mxu1 %v7708_v24  ;;  %v7739_v24 = vld [vmem:[%s10108_s1 + $0x804] ss:$8 sps:$4 sm:$0xff]  }
 0x1d7   : > { %5488 = vmatmul.mubr.bf16.gmra.mrb[4].mxu0 %v7709_v25  ;;  %4946 = vmatpush1.bf16.msra.mxu1 %v7638_v26  ;;  %v7745_v25 = vld [vmem:[%s10108_s1 + $0x1104] ss:$8 sps:$4 sm:$0xff]   ;;  %v7734_v26 = vld [vmem:[%s8191_s10 + $0x38] ss:$152 sps:$4 sm:$0xff]  }
 0x1d8   : > { %5513 = vmatpush1.bf16.msra.mxu0 %v7641_v27  ;;  %4947 = vmatprep.subr.bf16.mxu1 %v7646_v28  ;;  %v7740_v27 = vld [vmem:[%s8191_s10 + $0x80] ss:$152 sps:$4 sm:$0xff]  }
 0x1d9   : > { %5514 = vmatprep.subr.bf16.mxu0 %v7649_v29  ;;  %4930 = vmatprep.mubr.bf16.mxu1 %v7716_v30  ;;  %v7737_v28 = vld [vmem:[%s10108_s1 + $0x800] ss:$8 sps:$4 sm:$0xff]   ;;  %v7748_v30 = vld [vmem:[%s10108_s1 + $0x814] ss:$8 sps:$4 sm:$0xff]  }
 0x1da   : > { %5497 = vmatprep.mubr.bf16.mxu0 %v7721_v33  ;;  %v7743_v29 = vld [vmem:[%s10108_s1 + $0x1100] ss:$8 sps:$4 sm:$0xff]   ;;  %v7814_v33 = vld [vmem:[%s8191_s10 + $0x1b4] ss:$152 sps:$4 sm:$0xff]  }
 0x1db   : > { %4948 = vmatpush1.bf16.msra.mxu1 %v7644_v31  ;;  %v7751_v31 = vld [vmem:[%s10108_s1 + $0x1114] ss:$8 sps:$4 sm:$0xff]  }
 0x1dc   : > { %5515 = vmatpush1.bf16.msra.mxu0 %v7647_v32  ;;  %4949 = vmatprep.subr.bf16.mxu1 %v7652_v34  ;;  %v7812_v32 = vld [vmem:[%s8191_s10 + $0x16c] ss:$152 sps:$4 sm:$0xff]   ;;  %v7746_v34 = vld [vmem:[%s10108_s1 + $0x810] ss:$8 sps:$4 sm:$0xff]  }
 0x1dd   : > { %5516 = vmatprep.subr.bf16.mxu0 %v7655_v35  ;;  %v7749_v35 = vld [vmem:[%s10108_s1 + $0x1110] ss:$8 sps:$4 sm:$0xff]  }
 0x1de   : > { %4931 = vmatmul.mubr.bf16.gmra.mrb[8].mxu1 %v7726_v36  ;;  %v7754_v36 = vld [vmem:[%s10108_s1 + $0x824] ss:$8 sps:$4 sm:$0xff]  }
 0x1df   : > { %5498 = vmatmul.mubr.bf16.gmra.mrb[8].mxu0 %v7727_v37  ;;  %4950 = vmatpush1.bf16.msra.mxu1 %v7650_v38  ;;  %v7757_v37 = vld [vmem:[%s10108_s1 + $0x1124] ss:$8 sps:$4 sm:$0xff]   ;;  %v7816_v38 = vld [vmem:[%s8191_s10 + $0x168] ss:$152 sps:$4 sm:$0xff]  }
 0x1e0   : > { %5517 = vmatpush1.bf16.msra.mxu0 %v7653_v39  ;;  %4951 = vmatprep.subr.bf16.mxu1 %v7658_v40  ;;  %v7820_v39 = vld [vmem:[%s8191_s10 + $0x1b0] ss:$152 sps:$4 sm:$0xff]  }
 0x1e1   : > { %5518 = vmatprep.subr.bf16.mxu0 %v7661_v41  ;;  %4973 = vmatprep.mubr.bf16.mxu1 %v7736_v42  ;;  %v7752_v40 = vld [vmem:[%s10108_s1 + $0x820] ss:$8 sps:$4 sm:$0xff]   ;;  %v7760_v42 = vld [vmem:[%s10108_s1 + $0x834] ss:$8 sps:$4 sm:$0xff]  }
 0x1e2   : > { %5540 = vmatprep.mubr.bf16.mxu0 %v7742_v45  ;;  %v7755_v41 = vld [vmem:[%s10108_s1 + $0x1120] ss:$8 sps:$4 sm:$0xff]   ;;  %v7832_v45 = vld [vmem:[%s8191_s10 + $0x2e4] ss:$152 sps:$4 sm:$0xff]  }
 0x1e3   : > { %4952 = vmatpush1.bf16.msra.mxu1 %v7656_v43  ;;  %v7763_v43 = vld [vmem:[%s10108_s1 + $0x1134] ss:$8 sps:$4 sm:$0xff]  }
 0x1e4   : > { %5519 = vmatpush1.bf16.msra.mxu0 %v7659_v44  ;;  %4953 = vmatprep.subr.bf16.mxu1 %v7664_v46  ;;  %v7830_v44 = vld [vmem:[%s8191_s10 + $0x29c] ss:$152 sps:$4 sm:$0xff]   ;;  %v7758_v46 = vld [vmem:[%s10108_s1 + $0x830] ss:$8 sps:$4 sm:$0xff]  }
 0x1e5   : > { %5520 = vmatprep.subr.bf16.mxu0 %v7667_v47  ;;  %v7761_v47 = vld [vmem:[%s10108_s1 + $0x1130] ss:$8 sps:$4 sm:$0xff]  }
 0x1e7   : > { %4954 = vmatpush1.bf16.msra.mxu1 %v7662_v48  ;;  %v7766_v48 = vld [vmem:[%s10108_s1 + $0x844] ss:$8 sps:$4 sm:$0xff]  }
 0x1e8   : > { %5521 = vmatpush1.bf16.msra.mxu0 %v7665_v49  ;;  %4955 = vmatprep.subr.bf16.mxu1 %v7670_v50  ;;  %v7769_v49 = vld [vmem:[%s10108_s1 + $0x1144] ss:$8 sps:$4 sm:$0xff]   ;;  %v7834_v50 = vld [vmem:[%s8191_s10 + $0x298] ss:$152 sps:$4 sm:$0xff]  }
 0x1e9   : > { %5522 = vmatprep.subr.bf16.mxu0 %v7673_v51  ;;  %v7838_v51 = vld [vmem:[%s8191_s10 + $0x2e0] ss:$152 sps:$4 sm:$0xff]  }
 0x1eb   : > { %4956 = vmatpush1.bf16.msra.mxu1 %v7668_v52  ;;  %v7764_v52 = vld [vmem:[%s10108_s1 + $0x840] ss:$8 sps:$4 sm:$0xff]  }
 0x1ec   : > { %5523 = vmatpush1.bf16.msra.mxu0 %v7671_v53  ;;  %4957 = vmatprep.subr.bf16.mxu1 %v7676_v54  ;;  %v7767_v53 = vld [vmem:[%s10108_s1 + $0x1140] ss:$8 sps:$4 sm:$0xff]   ;;  %v7772_v54 = vld [vmem:[%s10108_s1 + $0x854] ss:$8 sps:$4 sm:$0xff]  }
 0x1ed   : > { %5524 = vmatprep.subr.bf16.mxu0 %v7679_v55  ;;  %v7775_v55 = vld [vmem:[%s10108_s1 + $0x1154] ss:$8 sps:$4 sm:$0xff]  }
 0x1ef   : > { %4958 = vmatpush1.bf16.msra.mxu1 %v7674_v56  ;;  %v7850_v56 = vld [vmem:[%s8191_s10 + $0x44] ss:$152 sps:$4 sm:$0xff]  }
 0x1f0   : > { %5525 = vmatpush1.bf16.msra.mxu0 %v7677_v57  ;;  %4959 = vmatprep.subr.bf16.mxu1 %v7682_v58  ;;  %v7853_v57 = vld [vmem:[%s8191_s10 + $0x8c] ss:$152 sps:$4 sm:$0xff]   ;;  %v7770_v58 = vld [vmem:[%s10108_s1 + $0x850] ss:$8 sps:$4 sm:$0xff]  }
 0x1f1   : > { %5526 = vmatprep.subr.bf16.mxu0 %v7685_v59  ;;  %v7773_v59 = vld [vmem:[%s10108_s1 + $0x1150] ss:$8 sps:$4 sm:$0xff]  }
 0x1f3   : > { %4960 = vmatpush1.bf16.msra.mxu1 %v7680_v60  ;;  %v7778_v60 = vld [vmem:[%s10108_s1 + $0x864] ss:$8 sps:$4 sm:$0xff]  }
 0x1f4   : > { %5527 = vmatpush1.bf16.msra.mxu0 %v7683_v61  ;;  %4961 = vmatprep.subr.bf16.mxu1 %v7688_v62  ;;  %v7781_v61 = vld [vmem:[%s10108_s1 + $0x1164] ss:$8 sps:$4 sm:$0xff]   ;;  %v7776_v62 = vld [vmem:[%s10108_s1 + $0x860] ss:$8 sps:$4 sm:$0xff]  }
 0x1f5   : > { %5528 = vmatprep.subr.bf16.mxu0 %v7691_v63  ;;  %v7779_v63 = vld [vmem:[%s10108_s1 + $0x1160] ss:$8 sps:$4 sm:$0xff]  }
 0x1f7   : > { %4962 = vmatpush1.bf16.msra.mxu1 %v7686_v0  ;;  %v7784_v0 = vld [vmem:[%s10108_s1 + $0x874] ss:$8 sps:$4 sm:$0xff]  }
 0x1f8   : > { %5529 = vmatpush1.bf16.msra.mxu0 %v7689_v1  ;;  %4963 = vmatprep.subr.bf16.mxu1 %v7694_v2  ;;  %v7787_v1 = vld [vmem:[%s10108_s1 + $0x1174] ss:$8 sps:$4 sm:$0xff]   ;;  %v7782_v2 = vld [vmem:[%s10108_s1 + $0x870] ss:$8 sps:$4 sm:$0xff]  }
 0x1f9   : > { %5530 = vmatprep.subr.bf16.mxu0 %v7697_v3  ;;  %v7785_v3 = vld [vmem:[%s10108_s1 + $0x1170] ss:$8 sps:$4 sm:$0xff]  }
 0x1fb   : > { %4964 = vmatpush1.bf16.msra.mxu1 %v7692_v4  ;;  %v7790_v4 = vld [vmem:[%s10108_s1 + $0x884] ss:$8 sps:$4 sm:$0xff]  }
 0x1fc   : > { %5531 = vmatpush1.bf16.msra.mxu0 %v7695_v5  ;;  %4965 = vmatprep.subr.bf16.mxu1 %v7702_v6  ;;  %v7793_v5 = vld [vmem:[%s10108_s1 + $0x1184] ss:$8 sps:$4 sm:$0xff]   ;;  %v7788_v6 = vld [vmem:[%s10108_s1 + $0x880] ss:$8 sps:$4 sm:$0xff]  }
 0x1fd   : > { %5532 = vmatprep.subr.bf16.mxu0 %v7707_v7  ;;  %v7791_v7 = vld [vmem:[%s10108_s1 + $0x1180] ss:$8 sps:$4 sm:$0xff]  }
 0x1ff   : > { %4966 = vmatpush1.bf16.msra.mxu1 %v7700_v8  ;;  %v7796_v8 = vld [vmem:[%s10108_s1 + $0x894] ss:$8 sps:$4 sm:$0xff]  }
 0x200   : > { %5533 = vmatpush1.bf16.msra.mxu0 %v7705_v9  ;;  %4967 = vmatprep.subr.bf16.mxu1 %v7712_v10  ;;  %v7799_v9 = vld [vmem:[%s10108_s1 + $0x1194] ss:$8 sps:$4 sm:$0xff]   ;;  %v7794_v10 = vld [vmem:[%s10108_s1 + $0x890] ss:$8 sps:$4 sm:$0xff]  }
 0x201   : > { %5534 = vmatprep.subr.bf16.mxu0 %v7715_v11  ;;  %v7797_v11 = vld [vmem:[%s10108_s1 + $0x1190] ss:$8 sps:$4 sm:$0xff]  }
 0x203   : > { %4968 = vmatpush1.bf16.msra.mxu1 %v7710_v14  ;;  %v7800_v14 = vld [vmem:[%s10108_s1 + $0x8a0] ss:$8 sps:$4 sm:$0xff]  }
 0x204   : > { %5535 = vmatpush1.bf16.msra.mxu0 %v7713_v15  ;;  %4969 = vmatprep.subr.bf16.mxu1 %v7720_v16  ;;  %v7803_v15 = vld [vmem:[%s10108_s1 + $0x11a0] ss:$8 sps:$4 sm:$0xff]   ;;  %v7808_v16 = vld [vmem:[%s10108_s1 + $0x8b4] ss:$8 sps:$4 sm:$0xff]  }
 0x205   : > { %5536 = vmatprep.subr.bf16.mxu0 %v7725_v17  ;;  %v7811_v17 = vld [vmem:[%s10108_s1 + $0x11b4] ss:$8 sps:$4 sm:$0xff]  }
 0x207   : > { %4970 = vmatpush1.bf16.msra.mxu1 %v7718_v18  ;;  %v7806_v18 = vld [vmem:[%s10108_s1 + $0x8b0] ss:$8 sps:$4 sm:$0xff]  }
 0x208   : > { %5537 = vmatpush1.bf16.msra.mxu0 %v7723_v19  ;;  %4971 = vmatprep.subr.bf16.mxu1 %v7730_v20  ;;  %v7809_v19 = vld [vmem:[%s10108_s1 + $0x11b0] ss:$8 sps:$4 sm:$0xff]   ;;  %v7819_v20 = vld [vmem:[%s10108_s1 + $0x8c4] ss:$8 sps:$4 sm:$0xff]  }
 0x209   : > { %5538 = vmatprep.subr.bf16.mxu0 %v7733_v21  ;;  %v7823_v21 = vld [vmem:[%s10108_s1 + $0x11c4] ss:$8 sps:$4 sm:$0xff]  }
 0x20b   : > { %4972 = vmatpush1.bf16.msra.mxu1 %v7728_v22  ;;  %v7817_v22 = vld [vmem:[%s10108_s1 + $0x8c0] ss:$8 sps:$4 sm:$0xff]  }
 0x20c   : > { %5539 = vmatpush1.bf16.msra.mxu0 %v7731_v23  ;;  %5004 = vmatprep.subr.bf16.mxu1 %v7739_v24  ;;  %v7821_v23 = vld [vmem:[%s10108_s1 + $0x11c0] ss:$8 sps:$4 sm:$0xff]   ;;  %v7826_v24 = vld [vmem:[%s10108_s1 + $0x8d4] ss:$8 sps:$4 sm:$0xff]  }
 0x20d   : > { %5571 = vmatprep.subr.bf16.mxu0 %v7745_v25  ;;  %v7829_v25 = vld [vmem:[%s10108_s1 + $0x11d4] ss:$8 sps:$4 sm:$0xff]  }
 0x20e   : > { %4974 = vmatmul.mubr.bf16.vlgmr.msra.gmra.mrb[0].mxu1 %v7734_v26  ;;  %v7824_v26 = vld [vmem:[%s10108_s1 + $0x8d0] ss:$8 sps:$4 sm:$0xff]  }
 0x20f   : > { %5541 = vmatmul.mubr.bf16.vlgmr.msra.gmra.mrb[0].mxu0 %v7740_v27  ;;  %5005 = vmatpush1.bf16.msra.mxu1 %v7737_v28  ;;  %v7827_v27 = vld [vmem:[%s10108_s1 + $0x11d0] ss:$8 sps:$4 sm:$0xff]   ;;  %v7837_v28 = vld [vmem:[%s10108_s1 + $0x8e4] ss:$8 sps:$4 sm:$0xff]  }
 0x210   : > { %5572 = vmatpush1.bf16.msra.mxu0 %v7743_v29  ;;  %5006 = vmatprep.subr.bf16.mxu1 %v7748_v30  ;;  %v7841_v29 = vld [vmem:[%s10108_s1 + $0x11e4] ss:$8 sps:$4 sm:$0xff]   ;;  %v7835_v30 = vld [vmem:[%s10108_s1 + $0x8e0] ss:$8 sps:$4 sm:$0xff]  }
 0x211   : > { %5573 = vmatprep.subr.bf16.mxu0 %v7751_v31  ;;  %4983 = vmatprep.mubr.bf16.mxu1 %v7812_v32  ;;  %v7839_v31 = vld [vmem:[%s10108_s1 + $0x11e0] ss:$8 sps:$4 sm:$0xff]   ;;  %v7844_v32 = vld [vmem:[%s10108_s1 + $0x8f4] ss:$8 sps:$4 sm:$0xff]  }
 0x212   : > { %5550 = vmatprep.mubr.bf16.mxu0 %v7814_v33  ;;  %v7847_v33 = vld [vmem:[%s10108_s1 + $0x11f4] ss:$8 sps:$4 sm:$0xff]  }
 0x213   : > { %5007 = vmatpush1.bf16.msra.mxu1 %v7746_v34  ;;  %v7842_v34 = vld [vmem:[%s10108_s1 + $0x8f0] ss:$8 sps:$4 sm:$0xff]  }
 0x214   : > { %5574 = vmatpush1.bf16.msra.mxu0 %v7749_v35  ;;  %5008 = vmatprep.subr.bf16.mxu1 %v7754_v36  ;;  %v7845_v35 = vld [vmem:[%s10108_s1 + $0x11f0] ss:$8 sps:$4 sm:$0xff]   ;;  %v7856_v36 = vld [vmem:[%s10108_s1 + $0x1204] ss:$8 sps:$4 sm:$0xff]  }
 0x215   : > { %5575 = vmatprep.subr.bf16.mxu0 %v7757_v37  ;;  %v7848_v37 = vld [vmem:[%s8191_s10 + $0x40] ss:$152 sps:$4 sm:$0xff]  }
 0x216   : > { %4984 = vmatmul.mubr.bf16.gmra.mrb[4].mxu1 %v7816_v38  ;;  %v7851_v38 = vld [vmem:[%s8191_s10 + $0x88] ss:$152 sps:$4 sm:$0xff]  }
 0x217   : > { %5551 = vmatmul.mubr.bf16.gmra.mrb[4].mxu0 %v7820_v39  ;;  %5009 = vmatpush1.bf16.msra.mxu1 %v7752_v40  ;;  %v7854_v39 = vld [vmem:[%s10108_s1 + $0x1200] ss:$8 sps:$4 sm:$0xff]   ;;  %v7859_v40 = vld [vmem:[%s10108_s1 + $0x1214] ss:$8 sps:$4 sm:$0xff]  }
 0x218   : > { %5576 = vmatpush1.bf16.msra.mxu0 %v7755_v41  ;;  %5010 = vmatprep.subr.bf16.mxu1 %v7760_v42  ;;  %v7860_v41 = vld [vmem:[%s8191_s10 + $0x174] ss:$152 sps:$4 sm:$0xff]  }
 0x219   : > { %5577 = vmatprep.subr.bf16.mxu0 %v7763_v43  ;;  %4993 = vmatprep.mubr.bf16.mxu1 %v7830_v44  ;;  %v7862_v42 = vld [vmem:[%s8191_s10 + $0x1bc] ss:$152 sps:$4 sm:$0xff]   ;;  %v7857_v43 = vld [vmem:[%s10108_s1 + $0x1210] ss:$8 sps:$4 sm:$0xff]   ;;  %v7868_v44 = vld [vmem:[%s10108_s1 + $0x1224] ss:$8 sps:$4 sm:$0xff]  }
 0x21a   : > { %5560 = vmatprep.mubr.bf16.mxu0 %v7832_v45  ;;  %v7864_v45 = vld [vmem:[%s8191_s10 + $0x170] ss:$152 sps:$4 sm:$0xff]  }
 0x21b   : > { %5011 = vmatpush1.bf16.msra.mxu1 %v7758_v46  ;;  %v7865_v46 = vld [vmem:[%s8191_s10 + $0x1b8] ss:$152 sps:$4 sm:$0xff]  }
 0x21c   : > { %5578 = vmatpush1.bf16.msra.mxu0 %v7761_v47  ;;  %5012 = vmatprep.subr.bf16.mxu1 %v7766_v48  ;;  %v7866_v47 = vld [vmem:[%s10108_s1 + $0x1220] ss:$8 sps:$4 sm:$0xff]   ;;  %v7871_v48 = vld [vmem:[%s10108_s1 + $0x1234] ss:$8 sps:$4 sm:$0xff]  }
 0x21d   : > { %5579 = vmatprep.subr.bf16.mxu0 %v7769_v49  ;;  %v7872_v49 = vld [vmem:[%s8191_s10 + $0x2a4] ss:$152 sps:$4 sm:$0xff]  }
 0x21e   : > { %4994 = vmatmul.mubr.bf16.gmra.mrb[8].mxu1 %v7834_v50  ;;  %v7874_v50 = vld [vmem:[%s8191_s10 + $0x2ec] ss:$152 sps:$4 sm:$0xff]  }
 0x21f   : > { %5561 = vmatmul.mubr.bf16.gmra.mrb[8].mxu0 %v7838_v51  ;;  %5013 = vmatpush1.bf16.msra.mxu1 %v7764_v52  ;;  %v7869_v51 = vld [vmem:[%s10108_s1 + $0x1230] ss:$8 sps:$4 sm:$0xff]   ;;  %v7880_v52 = vld [vmem:[%s10108_s1 + $0x1244] ss:$8 sps:$4 sm:$0xff]  }
 0x220   : > { %5580 = vmatpush1.bf16.msra.mxu0 %v7767_v53  ;;  %5014 = vmatprep.subr.bf16.mxu1 %v7772_v54  ;;  %v7876_v53 = vld [vmem:[%s8191_s10 + $0x2a0] ss:$152 sps:$4 sm:$0xff]  }
 0x221   : > { %5581 = vmatprep.subr.bf16.mxu0 %v7775_v55  ;;  %5036 = vmatprep.mubr.bf16.mxu1 %v7850_v56  ;;  %v7877_v54 = vld [vmem:[%s8191_s10 + $0x2e8] ss:$152 sps:$4 sm:$0xff]   ;;  %v7883_v56 = vld [vmem:[%s10108_s1 + $0x1254] ss:$8 sps:$4 sm:$0xff]  }
 0x222   : > { %5603 = vmatprep.mubr.bf16.mxu0 %v7853_v57  ;;  %v7878_v55 = vld [vmem:[%s10108_s1 + $0x1240] ss:$8 sps:$4 sm:$0xff]   ;;  %v7904_v57 = vld [vmem:[%s8191_s10 + $0x94] ss:$152 sps:$4 sm:$0xff]  }
 0x223   : > { %5015 = vmatpush1.bf16.msra.mxu1 %v7770_v58  ;;  %v7907_v58 = vld [vmem:[%s8191_s10 + $0x1c4] ss:$152 sps:$4 sm:$0xff]  }
 0x224   : > { %5582 = vmatpush1.bf16.msra.mxu0 %v7773_v59  ;;  %5016 = vmatprep.subr.bf16.mxu1 %v7778_v60  ;;  %v7881_v59 = vld [vmem:[%s10108_s1 + $0x1250] ss:$8 sps:$4 sm:$0xff]   ;;  %v7886_v60 = vld [vmem:[%s10108_s1 + $0x1264] ss:$8 sps:$4 sm:$0xff]  }
 0x225   : > { %5583 = vmatprep.subr.bf16.mxu0 %v7781_v61  ;;  %v7884_v61 = vld [vmem:[%s10108_s1 + $0x1260] ss:$8 sps:$4 sm:$0xff]  }
 0x227   : > { %5017 = vmatpush1.bf16.msra.mxu1 %v7776_v62  ;;  %v7889_v62 = vld [vmem:[%s10108_s1 + $0x1274] ss:$8 sps:$4 sm:$0xff]  }
 0x228   : > { %5584 = vmatpush1.bf16.msra.mxu0 %v7779_v63  ;;  %5018 = vmatprep.subr.bf16.mxu1 %v7784_v0  ;;  %v7887_v63 = vld [vmem:[%s10108_s1 + $0x1270] ss:$8 sps:$4 sm:$0xff]   ;;  %v7892_v0 = vld [vmem:[%s10108_s1 + $0x1284] ss:$8 sps:$4 sm:$0xff]  }
 0x229   : > { %5585 = vmatprep.subr.bf16.mxu0 %v7787_v1  ;;  %v7890_v1 = vld [vmem:[%s10108_s1 + $0x1280] ss:$8 sps:$4 sm:$0xff]  }
 0x22b   : > { %5019 = vmatpush1.bf16.msra.mxu1 %v7782_v2  ;;  %v7895_v2 = vld [vmem:[%s10108_s1 + $0x1294] ss:$8 sps:$4 sm:$0xff]  }
 0x22c   : > { %5586 = vmatpush1.bf16.msra.mxu0 %v7785_v3  ;;  %5020 = vmatprep.subr.bf16.mxu1 %v7790_v4  ;;  %v7893_v3 = vld [vmem:[%s10108_s1 + $0x1290] ss:$8 sps:$4 sm:$0xff]   ;;  %v7898_v4 = vld [vmem:[%s10108_s1 + $0x12a4] ss:$8 sps:$4 sm:$0xff]  }
 0x22d   : > { %5587 = vmatprep.subr.bf16.mxu0 %v7793_v5  ;;  %v7896_v5 = vld [vmem:[%s10108_s1 + $0x12a0] ss:$8 sps:$4 sm:$0xff]  }
 0x22f   : > { %5021 = vmatpush1.bf16.msra.mxu1 %v7788_v6  ;;  %v7901_v6 = vld [vmem:[%s10108_s1 + $0x12b4] ss:$8 sps:$4 sm:$0xff]  }
 0x230   : > { %5588 = vmatpush1.bf16.msra.mxu0 %v7791_v7  ;;  %5022 = vmatprep.subr.bf16.mxu1 %v7796_v8  ;;  %v7899_v7 = vld [vmem:[%s10108_s1 + $0x12b0] ss:$8 sps:$4 sm:$0xff]  }
 0x231   : > { %5589 = vmatprep.subr.bf16.mxu0 %v7799_v9  ;;  %v7902_v8 = vld [vmem:[%s8191_s10 + $0x90] ss:$152 sps:$4 sm:$0xff]   ;;  %v7905_v9 = vld [vmem:[%s8191_s10 + $0x1c0] ss:$152 sps:$4 sm:$0xff]  }
 0x233   : > { %5023 = vmatpush1.bf16.msra.mxu1 %v7794_v10  ;;  %v7908_v10 = vld [vmem:[%s8191_s10 + $0x2f4] ss:$152 sps:$4 sm:$0xff]  }
 0x234   : > { %5590 = vmatpush1.bf16.msra.mxu0 %v7797_v11  ;;  %5024 = vmatprep.subr.bf16.mxu1 %v7802_v12  ;;  %v7910_v11 = vld [vmem:[%s8191_s10 + $0x2f0] ss:$152 sps:$4 sm:$0xff]   ;;  %v5733_v12 = vld [vmem:[%s10110_s3 + $0x60] sm:$0xff]  ;;  %s7911_s10 = scalar_lea.vmem %s10057_s27, 2048 }
 0x235   : > { %5591 = vmatprep.subr.bf16.mxu0 %v7805_v13  ;;  %v5735_v13 = vld [vmem:[%s10110_s3 + $0x70] sm:$0xff]  ;;  %5737 = vst [vmem:[%s9659_s28 + $0x60] sm:$0xff] %v5733_v12  ;;  %p7912_p11 = scmp.ne.s32.totalorder %s10057_s27, %s7911_s10  ;;  %p7919_p1 = scmp.lt.s32.totalorder %s7917_s12, %s7911_s10 }
 0x236   : > { %5739 = vst [vmem:[%s9659_s28 + $0x70] sm:$0xff] %v5735_v13  ;;  %v5703_v12 = vld [vmem:[%s10110_s3 + $0x30] sm:$0xff] }
 0x237   : > { %5025 = vmatpush1.bf16.msra.mxu1 %v7800_v14  ;;  %v913_v14 = vlaneseq  ;;  %p7913_p12 = pnand %p7912_p11, %p8041_p5  ;;  %p7920_p2 = por %p7919_p1, %p7918_p0 }
 0x238   : > { %5592 = vmatpush1.bf16.msra.mxu0 %v7803_v15  ;;  %5026 = vmatprep.subr.bf16.mxu1 %v7808_v16 }
 0x239   : > { %5593 = vmatprep.subr.bf16.mxu0 %v7811_v17  ;;  %v914_v15 = vshrl.u32 %v913_v14, 7  ;;  %p7914_p13 = pneg %p7913_p12 }
 0x23b   : > { %5027 = vmatpush1.bf16.msra.mxu1 %v7806_v18  ;;  %p7921_p3 = pnand %p7920_p2, %p7914_p13 }
 0x23c   : > { %5594 = vmatpush1.bf16.msra.mxu0 %v7809_v19  ;;  %5028 = vmatprep.subr.bf16.mxu1 %v7819_v20  ;;  %v915_v19 = vsub.s32 0, %v914_v15 }
 0x23d   : > { %5595 = vmatprep.subr.bf16.mxu0 %v7823_v21  ;;  %v911_v21 = vld [vmem:[%s10109_s2] sm:$0x3] }
 0x23f   : > { %5029 = vmatpush1.bf16.msra.mxu1 %v7817_v22  ;;  %v919_v22 = vsub.s32 1, %v914_v15 }
 0x240   : > { %5596 = vmatpush1.bf16.msra.mxu0 %v7821_v23  ;;  %5030 = vmatprep.subr.bf16.mxu1 %v7826_v24  ;;  %v916_v23 = vrot.slane %v911_v21, %v915_v19 }
 0x241   : > { %5597 = vmatprep.subr.bf16.mxu0 %v7829_v25  ;;  %v920_v24 = vrot.slane %v911_v21, %v919_v22 }
 0x243   : > { %5031 = vmatpush1.bf16.msra.mxu1 %v7824_v26 }
 0x244   : > { %5598 = vmatpush1.bf16.msra.mxu0 %v7827_v27  ;;  %5032 = vmatprep.subr.bf16.mxu1 %v7837_v28 }
 0x245   : > { %5599 = vmatprep.subr.bf16.mxu0 %v7841_v29 }
 0x247   : > { %5033 = vmatpush1.bf16.msra.mxu1 %v7835_v30 }
 0x248   : > { %5600 = vmatpush1.bf16.msra.mxu0 %v7839_v31  ;;  %5034 = vmatprep.subr.bf16.mxu1 %v7844_v32 }
 0x249   : > { %5601 = vmatprep.subr.bf16.mxu0 %v7847_v33 }
 0x24b   : > { %5035 = vmatpush1.bf16.msra.mxu1 %v7842_v34 }
 0x24c   : > { %5602 = vmatpush1.bf16.msra.mxu0 %v7845_v35  ;;  %6546 = vmatprep.subr.bf16.mxu1 %v7856_v36 }
 0x24d   : > { %5634 = vmatprep.subr.bf16.mxu0 %v7856_v36 }
 0x24e   : > { %5037 = vmatmul.mubr.bf16.vlgmr.msra.gmra.mrb[0].mxu1 %v7848_v37 }
 0x24f   : > { %5604 = vmatmul.mubr.bf16.vlgmr.msra.gmra.mrb[0].mxu0 %v7851_v38  ;;  %6558 = vmatpush1.bf16.msra.mxu1 %v7854_v39 }
 0x250   : > { %5635 = vmatpush1.bf16.msra.mxu0 %v7854_v39  ;;  %6547 = vmatprep.subr.bf16.mxu1 %v7859_v40 }
 0x251   : > { %5636 = vmatprep.subr.bf16.mxu0 %v7859_v40  ;;  %5046 = vmatprep.mubr.bf16.mxu1 %v7860_v41 }
 0x252   : > { %5613 = vmatprep.mubr.bf16.mxu0 %v7862_v42 }
 0x253   : > { %6559 = vmatpush1.bf16.msra.mxu1 %v7857_v43 }
 0x254   : > { %5637 = vmatpush1.bf16.msra.mxu0 %v7857_v43  ;;  %6548 = vmatprep.subr.bf16.mxu1 %v7868_v44 }
 0x255   : > { %5638 = vmatprep.subr.bf16.mxu0 %v7868_v44 }
 0x256   : > { %5047 = vmatmul.mubr.bf16.gmra.mrb[4].mxu1 %v7864_v45 }
 0x257   : > { %5614 = vmatmul.mubr.bf16.gmra.mrb[4].mxu0 %v7865_v46  ;;  %6560 = vmatpush1.bf16.msra.mxu1 %v7866_v47 }
 0x258   : > { %5639 = vmatpush1.bf16.msra.mxu0 %v7866_v47  ;;  %6549 = vmatprep.subr.bf16.mxu1 %v7871_v48 }
 0x259   : > { %5640 = vmatprep.subr.bf16.mxu0 %v7871_v48  ;;  %5056 = vmatprep.mubr.bf16.mxu1 %v7872_v49 }
 0x25a   : > { %5623 = vmatprep.mubr.bf16.mxu0 %v7874_v50 }
 0x25b   : > { %6561 = vmatpush1.bf16.msra.mxu1 %v7869_v51 }
 0x25c   : > { %5641 = vmatpush1.bf16.msra.mxu0 %v7869_v51  ;;  %6550 = vmatprep.subr.bf16.mxu1 %v7880_v52 }
 0x25d   : > { %5642 = vmatprep.subr.bf16.mxu0 %v7880_v52 }
 0x25e   : > { %5057 = vmatmul.mubr.bf16.gmra.mrb[8].mxu1 %v7876_v53 }
 0x25f   : > { %5624 = vmatmul.mubr.bf16.gmra.mrb[8].mxu0 %v7877_v54  ;;  %6562 = vmatpush1.bf16.msra.mxu1 %v7878_v55 }
 0x260   : > { %5643 = vmatpush1.bf16.msra.mxu0 %v7878_v55  ;;  %6551 = vmatprep.subr.bf16.mxu1 %v7883_v56 }
 0x261   : > { %5644 = vmatprep.subr.bf16.mxu0 %v7883_v56  ;;  %6537 = vmatprep.mubr.msk.bf16.mxu0 %vm4490_vm0, %v7904_v57 }
 0x262   : > { %6538 = vmatprep.mubr.msk.bf16.mxu1 %vm4490_vm0, %v7907_v58 }
 0x263   : > { %6563 = vmatpush1.bf16.msra.mxu1 %v7881_v59 }
 0x264   : > { %5645 = vmatpush1.bf16.msra.mxu0 %v7881_v59  ;;  %6552 = vmatprep.subr.bf16.mxu1 %v7886_v60 }
 0x265   : > { %5646 = vmatprep.subr.bf16.mxu0 %v7886_v60  ;;  %v5697_v60 = vld [vmem:[%s10110_s3] sm:$0xff] }
 0x267   : > { %6564 = vmatpush1.bf16.msra.mxu1 %v7884_v61 }
 0x268   : > { %5647 = vmatpush1.bf16.msra.mxu0 %v7884_v61  ;;  %6553 = vmatprep.subr.bf16.mxu1 %v7889_v62 }
 0x269   : > { %5648 = vmatprep.subr.bf16.mxu0 %v7889_v62  ;;  %v5701_v62 = vld [vmem:[%s10110_s3 + $0x20] sm:$0xff] }
 0x26b   : > { %6565 = vmatpush1.bf16.msra.mxu1 %v7887_v63 }
 0x26c   : > { %5649 = vmatpush1.bf16.msra.mxu0 %v7887_v63  ;;  %6554 = vmatprep.subr.bf16.mxu1 %v7892_v0 }
 0x26d   : > { %5650 = vmatprep.subr.bf16.mxu0 %v7892_v0 }
 0x26f   : > { %6566 = vmatpush1.bf16.msra.mxu1 %v7890_v1 }
 0x270   : > { %5651 = vmatpush1.bf16.msra.mxu0 %v7890_v1  ;;  %6555 = vmatprep.subr.bf16.mxu1 %v7895_v2 }
 0x271   : > { %5652 = vmatprep.subr.bf16.mxu0 %v7895_v2 }
 0x273   : > { %6567 = vmatpush1.bf16.msra.mxu1 %v7893_v3 }
 0x274   : > { %5653 = vmatpush1.bf16.msra.mxu0 %v7893_v3  ;;  %6556 = vmatprep.subr.bf16.mxu1 %v7898_v4  ;;  %v5698_v3 = vld [vmem:[%s10110_s3 + $0x8] sm:$0xff] }
 0x275   : > { %5654 = vmatprep.subr.bf16.mxu0 %v7898_v4 }
 0x277   : > { %6568 = vmatpush1.bf16.msra.mxu1 %v7896_v5 }
 0x278   : > { %5655 = vmatpush1.bf16.msra.mxu0 %v7896_v5  ;;  %6557 = vmatprep.subr.bf16.mxu1 %v7901_v6  ;;  %v5702_v5 = vld [vmem:[%s10110_s3 + $0x28] sm:$0xff] }
 0x279   : > { %5656 = vmatprep.subr.bf16.mxu0 %v7901_v6 }
 0x27b   : > { %6569 = vmatpush1.bf16.msra.mxu1 %v7899_v7 }
 0x27c   : > { %5657 = vmatpush1.bf16.msra.mxu0 %v7899_v7 }
 0x27e   : > { %5677 = vmatmul.mubr.bf16.vlgmr.msra.gmra.mrb[12].mxu1 %v7905_v9 }
 0x27f   : > { %5667 = vmatmul.mubr.bf16.vlgmr.msra.gmra.mrb[0].mxu0 %v7902_v8  ;;  %6539 = vmatprep.mubr.msk.bf16.mxu1 %vm4490_vm0, %v7908_v10  ;;  %v5699_v10 = vld [vmem:[%s10110_s3 + $0x10] sm:$0xff] }
 0x286   : > { %5687 = vmatmul.mubr.bf16.gmra.mrb[16].mxu1 %v7910_v11 }
 0x321   : > { %v5038_v16 = vpop.f32.mrb[0].mxu1 }
 0x322   : > { %v5040_v17 = vpop.f32.mrb[1].mxu1  ;;  %v6570_v57 = vadd.f32 %v5038_v16, %v916_v23 }
 0x323   : > { %v5042_v18 = vpop.f32.mrb[2].mxu1  ;;  %v6572_v58 = vadd.f32 %v5040_v17, %v920_v24 }
 0x324   : > { %v5044_v20 = vpop.f32.mrb[3].mxu1  ;;  %v6574_v63 = vadd.f32 %v5042_v18, %v916_v23  ;;  %v5700_v18 = vld [vmem:[%s10110_s3 + $0x18] sm:$0xff] }
 0x325   : > { %v6576_v6 = vadd.f32 %v5044_v20, %v920_v24  ;;  %v5704_v20 = vld [vmem:[%s10110_s3 + $0x38] sm:$0xff] }
 0x329   : > { %v5048_v25 = vpop.f32.mrb[4].mxu1 }
 0x32a   : > { %v5615_v26 = vpop.f32.mrb[4].mxu0  ;;  %v6578_v27 = vadd.f32 %v5048_v25, %v916_v23  ;;  %v5050_v28 = vpop.f32.mrb[5].mxu1 }
 0x32b   : > { %v5617_v29 = vpop.f32.mrb[5].mxu0  ;;  %v6581_v30 = vadd.f32 %v5050_v28, %v920_v24  ;;  %v5052_v31 = vpop.f32.mrb[6].mxu1 }
 0x32c   : > { %v5619_v32 = vpop.f32.mrb[6].mxu0  ;;  %v6579_v33 = vadd.f32 %v6578_v27, %v5615_v26  ;;  %v6584_v34 = vadd.f32 %v5052_v31, %v916_v23  ;;  %v5054_v35 = vpop.f32.mrb[7].mxu1 }
 0x32d   : > { %v5621_v36 = vpop.f32.mrb[7].mxu0  ;;  %v6582_v37 = vadd.f32 %v6581_v30, %v5617_v29  ;;  %v6587_v38 = vadd.f32 %v5054_v35, %v920_v24  ;;  %v5705_v30 = vld [vmem:[%s10110_s3 + $0x40] sm:$0xff] }
 0x32e   : > { %v6585_v39 = vadd.f32 %v6584_v34, %v5619_v32 }
 0x32f   : > { %v6588_v40 = vadd.f32 %v6587_v38, %v5621_v36  ;;  %v5707_v36 = vld [vmem:[%s10110_s3 + $0x50] sm:$0xff] }
 0x331   : > { %v5058_v41 = vpop.f32.mrb[8].mxu1 }
 0x332   : > { %v5625_v42 = vpop.f32.mrb[8].mxu0  ;;  %v6590_v43 = vadd.f32 %v5058_v41, %v916_v23  ;;  %v5060_v44 = vpop.f32.mrb[9].mxu1 }
 0x333   : > { %v5627_v45 = vpop.f32.mrb[9].mxu0  ;;  %v6593_v46 = vadd.f32 %v5060_v44, %v920_v24  ;;  %v5062_v47 = vpop.f32.mrb[10].mxu1 }
 0x334   : > { %v5629_v48 = vpop.f32.mrb[10].mxu0  ;;  %v6591_v49 = vadd.f32 %v6590_v43, %v5625_v42  ;;  %v6596_v50 = vadd.f32 %v5062_v47, %v916_v23  ;;  %v5064_v51 = vpop.f32.mrb[11].mxu1 }
 0x335   : > { %v5631_v52 = vpop.f32.mrb[11].mxu0  ;;  %v6594_v53 = vadd.f32 %v6593_v46, %v5627_v45  ;;  %v6599_v54 = vadd.f32 %v5064_v51, %v920_v24 }
 0x336   : > { %v6597_v55 = vadd.f32 %v6596_v50, %v5629_v48 }
 0x337   : > { %v6600_v56 = vadd.f32 %v6599_v54, %v5631_v52 }
 0x351   : > { %v5678_v61 = vpop.f32.mrb[12].mxu1 }
 0x352   : > { %v5668_v59 = vpop.f32.mrb[0].mxu0  ;;  %v6580_v1 = vadd.f32 %v6579_v33, %v5678_v61  ;;  %v5680_v4 = vpop.f32.mrb[13].mxu1  ;;  %v5706_v33 = vld [vmem:[%s10110_s3 + $0x48] sm:$0xff] }
 0x353   : > { %v6571_v0 = vadd.f32 %v6570_v57, %v5668_v59  ;;  %v5670_v2 = vpop.f32.mrb[1].mxu0  ;;  %v6583_v8 = vadd.f32 %v6582_v37, %v5680_v4  ;;  %v5682_v11 = vpop.f32.mrb[14].mxu1 }
 0x354   : > { %v6573_v7 = vadd.f32 %v6572_v58, %v5670_v2  ;;  %v5672_v9 = vpop.f32.mrb[2].mxu0  ;;  %v5713_v14 = vadd.f32 %v6580_v1, %v5701_v62  ;;  %v6586_v16 = vadd.f32 %v6585_v39, %v5682_v11  ;;  %v5684_v19 = vpop.f32.mrb[15].mxu1 }
 0x355   : > { %v5709_v13 = vadd.f32 %v6571_v0, %v5697_v60  ;;  %v6575_v15 = vadd.f32 %v6574_v63, %v5672_v9  ;;  %v5674_v17 = vpop.f32.mrb[3].mxu0  ;;  %v5714_v22 = vadd.f32 %v6583_v8, %v5702_v5  ;;  %v6589_v24 = vadd.f32 %v6588_v40, %v5684_v19  ;;  %v5708_v40 = vld [vmem:[%s10110_s3 + $0x58] sm:$0xff] }
 0x356   : > { %v5710_v21 = vadd.f32 %v6573_v7, %v5698_v3  ;;  %v6577_v23 = vadd.f32 %v6576_v6, %v5674_v17  ;;  %5725 = vst [vmem:[%s9659_s28 + $0x20] sm:$0xff] %v5713_v14  ;;  %v5715_v26 = vadd.f32 %v6586_v16, %v5703_v12 }
 0x357   : > { %5721 = vst [vmem:[%s9659_s28] sm:$0xff] %v5709_v13  ;;  %v5711_v25 = vadd.f32 %v6575_v15, %v5699_v10  ;;  %5726 = vst.msk [vmem:[%s9659_s28 + $0x28] sm:$0xff] %vm4490_vm0, %v5714_v22  ;;  %v5716_v28 = vadd.f32 %v6589_v24, %v5704_v20 }
 0x358   : > { %5722 = vst.msk [vmem:[%s9659_s28 + $0x8] sm:$0xff] %vm4490_vm0, %v5710_v21  ;;  %v5712_v27 = vadd.f32 %v6577_v23, %v5700_v18  ;;  %5727 = vst [vmem:[%s9659_s28 + $0x30] sm:$0xff] %v5715_v26 }
 0x359   : > { %5723 = vst [vmem:[%s9659_s28 + $0x10] sm:$0xff] %v5711_v25  ;;  %5728 = vst.msk [vmem:[%s9659_s28 + $0x38] sm:$0xff] %vm4490_vm0, %v5716_v28  ;;  %v5688_v29 = vpop.f32.mrb[16].mxu1 }
 0x35a   : > { %5724 = vst.msk [vmem:[%s9659_s28 + $0x18] sm:$0xff] %vm4490_vm0, %v5712_v27  ;;  %v6592_v31 = vadd.f32 %v6591_v49, %v5688_v29  ;;  %v5690_v32 = vpop.f32.mrb[17].mxu1 }
 0x35b   : > { %v6595_v34 = vadd.f32 %v6594_v53, %v5690_v32  ;;  %v5692_v35 = vpop.f32.mrb[18].mxu1 }
 0x35c   : > { %v5717_v37 = vadd.f32 %v6592_v31, %v5705_v30  ;;  %v6598_v38 = vadd.f32 %v6597_v55, %v5692_v35  ;;  %v5694_v39 = vpop.f32.mrb[19].mxu1 }
 0x35d   : > { %v5718_v41 = vadd.f32 %v6595_v34, %v5706_v33  ;;  %v6601_v42 = vadd.f32 %v6600_v56, %v5694_v39 }
 0x35e   : > { %5729 = vst [vmem:[%s9659_s28 + $0x40] sm:$0xff] %v5717_v37  ;;  %v5719_v43 = vadd.f32 %v6598_v38, %v5707_v36 }
 0x35f   : > { %5730 = vst.msk [vmem:[%s9659_s28 + $0x48] sm:$0xff] %vm4490_vm0, %v5718_v41  ;;  %v5720_v44 = vadd.f32 %v6601_v42, %v5708_v40 }
 0x360   : > { %5731 = vst [vmem:[%s9659_s28 + $0x50] sm:$0xff] %v5719_v43 }
 0x361   : > { %5732 = vst.msk [vmem:[%s9659_s28 + $0x58] sm:$0xff] %vm4490_vm0, %v5720_v44 }
 0x362   : > { %7924 = shalt.err (!%p7921_p3)
}
 0x363   : > { %s7925_s11 = scalar_lea.hbm %s10055_s8, 2048  ;;  %s7929_s14 = scalar_lea.hbm %s10111_s4, 4096 }
 0x364   : > { %p7926_p4 = scmp.ne.s32.totalorder %s10055_s8, %s7925_s11  ;;  %p7930_p9 = scmp.lt.u32.totalorder %s10055_s8, %s10111_s4 }
 0x365   : > { %p7931_p10 = scmp.lt.u32.totalorder %s7929_s14, %s7925_s11  ;;  %p7933_p12 = scmp.lt.u32.totalorder %s7925_s11, %s10055_s8 }
 0x366   : > { %p7927_p7 = pnand %p7926_p4, %p8041_p5 }
 0x367   : > { %p7932_p11 = por %p7931_p10, %p7930_p9 }
 0x368   : > { %p7928_p8 = pneg %p7927_p7 }
 0x369   : > { %p7934_p13 = por %p7933_p12, %p7932_p11 }
 0x36b   : > { %p7935_p0 = pnand %p7934_p13, %p7928_p8 }
 0x36d   : > { %7938 = shalt.err (!%p7935_p0)
}
 0x36e   : > { %s7976_s22 = smov 256   ;;  %s7977_s29 = smov 16  }
 0x36f   : > { %6799 = dma.vmem_to_hbm [thread:$0]  (%p8041_p5), %s10057_s27, 2048, %s10055_s8, %s10066_s19, %s7976_s22, %s7976_s22, %s7977_s29  }
 0x370 PF: > { %p6805_p1 = scmp.ge.s32.totalorder %s7973_s18, 2  ;;  %s5770_s30 = sand.u32 1, %s7961_s15  }
 0x371   : > { %s5771_s5 = scalar_lea.sflag [#allocation3], %s5770_s30 }
 0x372   : > { %p6802_p2 = pnand %p6805_p1, %p8045_p6 }
 0x374   : > { %7956 = dma.done.wait (!%p6802_p2), %s5771_s5, 2048  }
 0x375   : > { %7958 = vsyncadd (!%p6802_p2), %s5771_s5, 4294965248  ;;  %p14_p3 = scmp.ge.s32.totalorder %s8028_s21, 4   ;;  %s10114_s15 = smov %s7965_s16 }
 0x376   : > { %s10115_s16 = smov %s7969_s17  ;;  %s10116_s17 = smov %s8039_s24 }
 0x377   : > { %s10117_s18 = smov %s8028_s21  ;;  %16 = sbr.rel (!%p14_p3) target bundleno = 3 (0x3), region = 71 }
 0x37e   :  { %5776 = vsyncpa [#allocation3], 1 }
 0x37f   :  { %5778 = vsyncpa [#allocation3 + $0x1], 1 }

</bundles_post_ra>
